<compile_context>
chip_gen: v5e
topology: v5e:2x2
jax: 0.10.0
libtpu: 0.0.40
codegen_flags: <defaults>
</compile_context>

<pallas_src>
import jax
import jax.numpy as jnp
from jax.experimental import pallas as pl
from jax.experimental.pallas import tpu as pltpu


def encoder_cnn_kernel(feat_ref, w_ref, pvec_ref, feats_out_ref, cnn_out_ref):
    # feat_ref:  [B, HW, C]  bf16/f32  (C on lanes)
    # w_ref:     [C, E]      bf16      (Linear weight, pre-transposed)
    # pvec_ref:  [3, E]      f32       rows = (bias, gamma, beta)
    # feats_out: [B, E]      f32
    # cnn_out:   [B, C]      f32

    # --- AdaptiveAvgPool2d(1) + view(B, -1): global average pool over HW ------
    feat = feat_ref[...].astype(jnp.float32)               # upcast -> f32 accumulation
    hw = feat.shape[1]
    pooled = jnp.sum(feat, axis=1) * (1.0 / hw)            # [B, C] f32, VPU reduce
    cnn_out_ref[...] = pooled.astype(cnn_out_ref.dtype)    # cnn_features

    # --- self.linear: pooled @ W^T + b  (W pre-transposed to [C, E], bf16) ----
    # NOTE: M=8 underfills MXU rows; the kernel is DMA/overhead-bound at these
    # shapes so MXU utilization is irrelevant (per review: don't invest here).
    pvec = pvec_ref[...]                                   # [3, E] f32
    y = jnp.dot(pooled.astype(jnp.bfloat16), w_ref[...],
                preferred_element_type=jnp.float32)        # [B, E] f32 acc on MXU
    y = y + pvec[0:1, :]                                   # + bias

    # --- self.bn: BatchNorm1d training mode (batch stats, biased var, eps=1e-5)
    mu = jnp.mean(y, axis=0, keepdims=True)                # [1, E]
    var = jnp.mean((y - mu) * (y - mu), axis=0, keepdims=True)
    inv = jax.lax.rsqrt(var + 1e-5)
    out = (y - mu) * inv * pvec[1:2, :] + pvec[2:3, :]
    feats_out_ref[...] = out.astype(feats_out_ref.dtype)


def encoder_cnn_forward(feat_hwc, w_bf16, b, gamma, beta):
    """feat_hwc: [B, HW, C] (bf16 or f32) -- resnet152 layer4 output, lane-dense.
       w_bf16:   [C, E] bf16 (PyTorch Linear weight transposed, cast once at setup).
       b/gamma/beta: [E] f32.
       Returns (features [B, E] f32, cnn_features [B, C] f32)."""
    B, HW, C = feat_hwc.shape
    E = w_bf16.shape[1]

    # Pack the three tiny per-feature vectors into one transfer.
    pvec = jnp.stack([b, gamma, beta], axis=0).astype(jnp.float32)   # [3, E]

    # Conservative VMEM estimate (double-buffered blocks); only raise the scoped
    # limit if a bigger spatial extent would overflow the v5e 16 MiB default.
    feat_bytes = B * HW * C * jnp.dtype(feat_hwc.dtype).itemsize
    vmem_est = 2 * (feat_bytes + C * E * 2 + 3 * E * 4 + B * E * 4 + B * C * 4) + (2 << 20)
    cp_kwargs = {}
    if vmem_est > (16 << 20):
        cp_kwargs["vmem_limit_bytes"] = int(min(vmem_est, 60 << 20))

    feats, cnn_feats = pl.pallas_call(
        encoder_cnn_kernel,
        out_shape=(
            jax.ShapeDtypeStruct((B, E), jnp.float32),   # features (linear + bn)
            jax.ShapeDtypeStruct((B, C), jnp.float32),   # cnn_features (pooled)
        ),
        grid=(1,),                                       # single step: no split losses
        in_specs=[
            pl.BlockSpec((B, HW, C), lambda i: (0, 0, 0)),   # full feature map
            pl.BlockSpec((C, E), lambda i: (0, 0)),          # full bf16 weight
            pl.BlockSpec((3, E), lambda i: (0, 0)),          # (bias, gamma, beta)
        ],
        out_specs=(
            pl.BlockSpec((B, E), lambda i: (0, 0)),
            pl.BlockSpec((B, C), lambda i: (0, 0)),
        ),
        compiler_params=pltpu.CompilerParams(
            dimension_semantics=("arbitrary",), **cp_kwargs),
    )(feat_hwc, w_bf16, pvec)
    return feats, cnn_feats


def _reference(feat_hwc, w_bf16, b, gamma, beta):
    """Pure-JAX reference applying the same bf16 quantization of the matmul
    inputs (f32 accumulation / f32 pool), so the kernel is checked against
    identical math.  Exact-f32 PyTorch parity would only be ~1e-3 relative."""
    feat = feat_hwc.astype(jnp.float32)
    pooled = jnp.mean(feat, axis=1)                                   # [B, C] f32
    pooled_q = pooled.astype(jnp.bfloat16).astype(jnp.float32)
    w_q = w_bf16.astype(jnp.float32)
    y = pooled_q @ w_q + b[None, :]
    mu = jnp.mean(y, axis=0, keepdims=True)
    var = jnp.mean((y - mu) ** 2, axis=0, keepdims=True)
    out = (y - mu) / jnp.sqrt(var + 1e-5) * gamma[None, :] + beta[None, :]
    return out, pooled


if __name__ == "__main__":
    # resnet152 layer4 output has C = 2048 channels (= resnet.fc.in_features);
    # embed_size = 256 as in the module default.  Small spatial extent.
    B, C, H, W, E = 8, 2048, 4, 4, 256
    HW = H * W

    key = jax.random.PRNGKey(0)
    k_feat, k_w = jax.random.split(key)

    # Backbone (not translated) is assumed to emit its last feature map directly
    # in lane-dense [B, HW, C] bf16 -- no wrapper transpose, half-size feat DMA.
    feat_hwc = jax.random.normal(k_feat, (B, HW, C), dtype=jnp.float32).astype(jnp.bfloat16)

    # init_weights(): linear.weight ~ N(0, 0.02), linear.bias = 0.
    w_pt = jax.random.normal(k_w, (E, C), dtype=jnp.float32) * 0.02   # PyTorch [E, C]
    w_bf16 = jnp.asarray(w_pt.T, dtype=jnp.bfloat16)                  # cast ONCE at setup
    b = jnp.zeros((E,), dtype=jnp.float32)
    # BatchNorm1d default affine init: gamma = 1, beta = 0.
    gamma = jnp.ones((E,), dtype=jnp.float32)
    beta = jnp.zeros((E,), dtype=jnp.float32)

    feats, cnn_feats = encoder_cnn_forward(feat_hwc, w_bf16, b, gamma, beta)
    jax.block_until_ready((feats, cnn_feats))

    ref_feats, ref_cnn = _reference(feat_hwc, w_bf16, b, gamma, beta)
    assert feats.shape == (B, E) and cnn_feats.shape == (B, C)
    assert jnp.allclose(cnn_feats, ref_cnn, atol=1e-3, rtol=1e-3)
    assert jnp.allclose(feats, ref_feats, atol=1e-2, rtol=1e-2)

    print("KERNEL_OK")
</pallas_src>

<mosaic_0001>
module attributes {stable_mosaic.version = 11 : i64} {
  func.func @encoder_cnn_kernel(%arg0: i32, %arg1: memref<8x16x2048xbf16, #tpu.memory_space<vmem>>, %arg2: memref<2048x256xbf16, #tpu.memory_space<vmem>>, %arg3: memref<3x256xf32, #tpu.memory_space<vmem>>, %arg4: memref<8x256xf32, #tpu.memory_space<vmem>>, %arg5: memref<8x2048xf32, #tpu.memory_space<vmem>>) attributes {dimension_semantics = [#tpu.dimension_semantics<arbitrary>], iteration_bounds = array<i64: 1>, scalar_prefetch = 0 : i64, scratch_operands = 0 : i64, tpu.core_type = #tpu.core_type<tc>, window_params = [{pipeline_mode = #tpu.pipeline_mode<synchronous>, transform_indices = @transform_0, window_bounds = array<i64: 8, 16, 2048>}, {pipeline_mode = #tpu.pipeline_mode<synchronous>, transform_indices = @transform_1, window_bounds = array<i64: 2048, 256>}, {pipeline_mode = #tpu.pipeline_mode<synchronous>, transform_indices = @transform_2, window_bounds = array<i64: 3, 256>}, {pipeline_mode = #tpu.pipeline_mode<synchronous>, transform_indices = @transform_3, window_bounds = array<i64: 8, 256>}, {pipeline_mode = #tpu.pipeline_mode<synchronous>, transform_indices = @transform_4, window_bounds = array<i64: 8, 2048>}]} {
    %c0 = arith.constant 0 : index
    %c0_0 = arith.constant 0 : index
    %c0_1 = arith.constant 0 : index
    %0 = vector.load %arg1[%c0, %c0_0, %c0_1] : memref<8x16x2048xbf16, #tpu.memory_space<vmem>>, vector<8x16x2048xbf16>
    %1 = arith.extf %0 : vector<8x16x2048xbf16> to vector<8x16x2048xf32>
    %cst = arith.constant dense<0.000000e+00> : vector<8x2048xf32>
    %2 = vector.multi_reduction <add>, %1, %cst [1] : vector<8x16x2048xf32> to vector<8x2048xf32>
    %cst_2 = arith.constant 6.250000e-02 : f32
    %3 = vector.broadcast %cst_2 : f32 to vector<8x2048xf32>
    %4 = arith.mulf %2, %3 : vector<8x2048xf32>
    %c0_3 = arith.constant 0 : index
    %c0_4 = arith.constant 0 : index
    %5 = vector.load %arg5[%c0_3, %c0_4] : memref<8x2048xf32, #tpu.memory_space<vmem>>, vector<8x2048xf32>
    tpu.vector_store %arg5[%c0_3, %c0_4], %4 {strides = array<i32>} : memref<8x2048xf32, #tpu.memory_space<vmem>>, vector<8x2048xf32>,
    %c0_5 = arith.constant 0 : index
    %c0_6 = arith.constant 0 : index
    %6 = vector.load %arg3[%c0_5, %c0_6] : memref<3x256xf32, #tpu.memory_space<vmem>>, vector<3x256xf32>
    %7 = arith.truncf %4 : vector<8x2048xf32> to vector<8x2048xbf16>
    %c0_7 = arith.constant 0 : index
    %c0_8 = arith.constant 0 : index
    %8 = vector.load %arg2[%c0_7, %c0_8] : memref<2048x256xbf16, #tpu.memory_space<vmem>>, vector<2048x256xbf16>
    %cst_9 = arith.constant dense<0.000000e+00> : vector<8x256xf32>
    %9 = tpu.matmul %7, %8, %cst_9 {dimension_numbers = #tpu.dot_dimension_numbers<[1], [0], [0], [1], [0, 0, 1, 1], [], []>} : vector<8x2048xbf16>, vector<2048x256xbf16>, vector<8x256xf32> -> vector<8x256xf32>
    %10 = vector.extract_strided_slice %6 {offsets = [0, 0], sizes = [1, 256], strides = [1, 1]} : vector<3x256xf32> to vector<1x256xf32>
    %11 = vector.broadcast %10 : vector<1x256xf32> to vector<8x256xf32>
    %12 = arith.addf %9, %11 : vector<8x256xf32>
    %cst_10 = arith.constant dense<0.000000e+00> : vector<256xf32>
    %13 = vector.multi_reduction <add>, %12, %cst_10 [0] : vector<8x256xf32> to vector<256xf32>
    %14 = vector.shape_cast %13 : vector<256xf32> to vector<1x256xf32>
    %cst_11 = arith.constant 8.000000e+00 : f32
    %15 = vector.broadcast %cst_11 : f32 to vector<1x256xf32>
    %16 = arith.divf %14, %15 : vector<1x256xf32>
    %17 = vector.broadcast %16 : vector<1x256xf32> to vector<8x256xf32>
    %18 = arith.subf %12, %17 : vector<8x256xf32>
    %19 = vector.broadcast %16 : vector<1x256xf32> to vector<8x256xf32>
    %20 = arith.subf %12, %19 : vector<8x256xf32>
    %21 = arith.mulf %18, %20 : vector<8x256xf32>
    %cst_12 = arith.constant dense<0.000000e+00> : vector<256xf32>
    %22 = vector.multi_reduction <add>, %21, %cst_12 [0] : vector<8x256xf32> to vector<256xf32>
    %23 = vector.shape_cast %22 : vector<256xf32> to vector<1x256xf32>
    %cst_13 = arith.constant 8.000000e+00 : f32
    %24 = vector.broadcast %cst_13 : f32 to vector<1x256xf32>
    %25 = arith.divf %23, %24 : vector<1x256xf32>
    %cst_14 = arith.constant 9.99999974E-6 : f32
    %26 = vector.broadcast %cst_14 : f32 to vector<1x256xf32>
    %27 = arith.addf %25, %26 : vector<1x256xf32>
    %28 = math.rsqrt %27 : vector<1x256xf32>
    %29 = vector.broadcast %16 : vector<1x256xf32> to vector<8x256xf32>
    %30 = arith.subf %12, %29 : vector<8x256xf32>
    %31 = vector.broadcast %28 : vector<1x256xf32> to vector<8x256xf32>
    %32 = arith.mulf %30, %31 : vector<8x256xf32>
    %33 = vector.extract_strided_slice %6 {offsets = [1, 0], sizes = [1, 256], strides = [1, 1]} : vector<3x256xf32> to vector<1x256xf32>
    %34 = vector.broadcast %33 : vector<1x256xf32> to vector<8x256xf32>
    %35 = arith.mulf %32, %34 : vector<8x256xf32>
    %36 = vector.extract_strided_slice %6 {offsets = [2, 0], sizes = [1, 256], strides = [1, 1]} : vector<3x256xf32> to vector<1x256xf32>
    %37 = vector.broadcast %36 : vector<1x256xf32> to vector<8x256xf32>
    %38 = arith.addf %35, %37 : vector<8x256xf32>
    %c0_15 = arith.constant 0 : index
    %c0_16 = arith.constant 0 : index
    %39 = vector.load %arg4[%c0_15, %c0_16] : memref<8x256xf32, #tpu.memory_space<vmem>>, vector<8x256xf32>
    tpu.vector_store %arg4[%c0_15, %c0_16], %38 {strides = array<i32>} : memref<8x256xf32, #tpu.memory_space<vmem>>, vector<8x256xf32>,
    return
  }
  func.func @transform_0(%arg0: i32) -> (i32, i32, i32) {
    %c0_i32 = arith.constant 0 : i32
    %c0_i32_0 = arith.constant 0 : i32
    %c0_i32_1 = arith.constant 0 : i32
    %c0_i32_2 = arith.constant 0 : i32
    return %c0_i32, %c0_i32_0, %c0_i32_1 : i32, i32, i32
  }
  func.func @transform_1(%arg0: i32) -> (i32, i32) {
    %c0_i32 = arith.constant 0 : i32
    %c0_i32_0 = arith.constant 0 : i32
    %c0_i32_1 = arith.constant 0 : i32
    return %c0_i32, %c0_i32_0 : i32, i32
  }
  func.func @transform_2(%arg0: i32) -> (i32, i32) {
    %c0_i32 = arith.constant 0 : i32
    %c0_i32_0 = arith.constant 0 : i32
    %c0_i32_1 = arith.constant 0 : i32
    return %c0_i32, %c0_i32_0 : i32, i32
  }
  func.func @transform_3(%arg0: i32) -> (i32, i32) {
    %c0_i32 = arith.constant 0 : i32
    %c0_i32_0 = arith.constant 0 : i32
    %c0_i32_1 = arith.constant 0 : i32
    return %c0_i32, %c0_i32_0 : i32, i32
  }
  func.func @transform_4(%arg0: i32) -> (i32, i32) {
    %c0_i32 = arith.constant 0 : i32
    %c0_i32_0 = arith.constant 0 : i32
    %c0_i32_1 = arith.constant 0 : i32
    return %c0_i32, %c0_i32_0 : i32, i32
  }
}

</mosaic_0001>

<bundles_post_ra>
// kernel: tpu_custom_call.1
= control target key start
LH: loop header
LB: loop body
LE: loop exit
PB: predicated region body
PF: predicated region fallthrough
CT: control target
= control target key end

     0   :  { %10 = vsyncpa [#allocation3], 0  ;;  %s7245_s0 = inlined_call_operand.hbm [shape: bf16[8,16,2048], index: 0, kind: input, shape index: {}]   ;;  %s7246_s1 = inlined_call_operand.hbm [shape: bf16[2048,256], index: 1, kind: input, shape index: {}]   ;;  %s7247_s2 = inlined_call_operand.hbm [shape: f32[3,256], index: 2, kind: input, shape index: {}]   ;;  %s7248_s3 = inlined_call_operand.hbm [shape: f32[8,256], index: 3, kind: output, shape index: {0}]   ;;  %s7249_s4 = inlined_call_operand.hbm [shape: f32[8,2048], index: 4, kind: output, shape index: {1}]  }
   0x1   :  { %11 = vsyncpa [#allocation6], 0 }
   0x2   :  { %12 = vsyncpa [#allocation4], 0  ;;  %s31_s17 = sshll.u32 %s7246_s1, 4  ;;  %s32_s17 = int_to_ptr.hbm [resolvable:$true] %s31_s17 }
   0x3   :  { %13 = vsyncpa [#allocation10], 0  ;;  %s5778_s18 = smov [#allocation5]   ;;  %s18_s22 = sshll.u32 %s7245_s0, 4  ;;  %s19_s22 = int_to_ptr.hbm [resolvable:$true] %s18_s22 }
   0x4   :  { %s33_s19 = sshll.u32 %s5778_s18, 4  ;;  %s5779_s23 = smov 128   ;;  %s34_s19 = int_to_ptr.vmem [resolvable:$true] %s33_s19 }
   0x5   :  { %s5780_s24 = smov 8   ;;  %s5781_s25 = smov [#allocation2]  }
   0x6   :  { %39 = dma.hbm_to_vmem [thread:$0]  %s32_s17, 32768, %s34_s19, [#allocation6], %s5779_s23, %s5779_s23, %s5780_s24  }
   0x7   :  { %s20_s26 = sshll.u32 %s5781_s25, 4  ;;  %s5782_s27 = smov 1024   ;;  %s21_s26 = int_to_ptr.vmem [resolvable:$true] %s20_s26 }
   0x8   :  { %s5783_s28 = smov 64   ;;  %s45_s30 = sshll.u32 %s7247_s2, 4  ;;  %s46_s30 = int_to_ptr.hbm [resolvable:$true] %s45_s30 }
   0x9   :  { %26 = dma.hbm_to_vmem [thread:$0]  %s19_s22, 16384, %s21_s26, [#allocation3], %s5782_s27, %s5782_s27, %s5783_s28  }
   0xa   :  { %s5784_s5 = smov [#allocation7]  }
   0xb   :  { %s47_s6 = sshll.u32 %s5784_s5, 4  ;;  %s48_s6 = int_to_ptr.vmem [resolvable:$true] %s47_s6 }
   0xc   :  { %50 = dma.hbm_to_vmem [thread:$0]  %s46_s30, 128, %s48_s6, [#allocation6]  }
   0xd   :  { %5770 = dma.done.wait [#allocation3], 16384  }
   0xe   :  { %5771 = vsyncadd [#allocation3], 4294950912 }
   0xf   :  { %5772 = dma.done.wait [#allocation6], 32896  }
  0x10   :  { %5773 = vsyncadd [#allocation6], 4294934400  ;;  %v4411_v0 = vld [vmem:[#allocation5 + $0x70] sm:$0xf]  ;;  %v5392_v1 = vld [vmem:[#allocation5 + $0x74] sm:$0xf0] }
  0x11   :  { %v4475_v2 = vld [vmem:[#allocation5 + $0xf0] sm:$0xf]  ;;  %v4412_v3 = vor.u32 %v5392_v1, %v4411_v0  ;;  %v5408_v4 = vld [vmem:[#allocation5 + $0xf4] sm:$0xf0]  ;;  %v4403_v11 = vld [vmem:[#allocation5 + $0x60] sm:$0xf] }
  0x12   :  { %v4539_v5 = vld [vmem:[#allocation5 + $0x170] sm:$0xf]  ;;  %v5424_v6 = vld [vmem:[#allocation5 + $0x174] sm:$0xf0]  ;;  %v4476_v7 = vor.u32 %v5408_v4, %v4475_v2  ;;  %v5390_v13 = vld [vmem:[#allocation5 + $0x64] sm:$0xf0] }
  0x13   :  { %v4540_v8 = vor.u32 %v5424_v6, %v4539_v5  ;;  %v4603_v9 = vld [vmem:[#allocation5 + $0x1f0] sm:$0xf]  ;;  %v5440_v10 = vld [vmem:[#allocation5 + $0x1f4] sm:$0xf0]  ;;  %3822 = vmatpush.bf16.msra.mxu0 %v4412_v3  ;;  %v4467_v14 = vld [vmem:[#allocation5 + $0xe0] sm:$0xf]  ;;  %v4404_v16 = vor.u32 %v5390_v13, %v4403_v11 }
  0x14   :  { %v4604_v12 = vor.u32 %v5440_v10, %v4603_v9  ;;  %v5406_v15 = vld [vmem:[#allocation5 + $0xe4] sm:$0xf0]  ;;  %3835 = vmatpush.bf16.msra.mxu1 %v4476_v7  ;;  %v4531_v18 = vld [vmem:[#allocation5 + $0x160] sm:$0xf]  ;;  %v4395_v23 = vld [vmem:[#allocation5 + $0x50] sm:$0xf] }
  0x15   :  { %3848 = vmatpush.bf16.msra.mxu2 %v4540_v8  ;;  %v4468_v17 = vor.u32 %v5406_v15, %v4467_v14  ;;  %v5422_v19 = vld [vmem:[#allocation5 + $0x164] sm:$0xf0]  ;;  %v4595_v20 = vld [vmem:[#allocation5 + $0x1e0] sm:$0xf]  ;;  %v5388_v24 = vld [vmem:[#allocation5 + $0x54] sm:$0xf0] }
  0x16   :  { %3861 = vmatpush.bf16.msra.mxu3 %v4604_v12  ;;  %v4532_v21 = vor.u32 %v5422_v19, %v4531_v18  ;;  %v5438_v22 = vld [vmem:[#allocation5 + $0x1e4] sm:$0xf0]  ;;  %v4459_v26 = vld [vmem:[#allocation5 + $0xd0] sm:$0xf]  ;;  %v5404_v27 = vld [vmem:[#allocation5 + $0xd4] sm:$0xf0]  ;;  %v4396_v29 = vor.u32 %v5388_v24, %v4395_v23 }
  0x17   :  { %v4596_v25 = vor.u32 %v5438_v22, %v4595_v20  ;;  %v4523_v28 = vld [vmem:[#allocation5 + $0x150] sm:$0xf]  ;;  %3823 = vmatpush.bf16.msra.mxu0 %v4404_v16  ;;  %v5420_v30 = vld [vmem:[#allocation5 + $0x154] sm:$0xf0]  ;;  %v4460_v33 = vor.u32 %v5404_v27, %v4459_v26  ;;  %v4387_v35 = vld [vmem:[#allocation5 + $0x40] sm:$0xf] }
  0x18   :  { %v4587_v31 = vld [vmem:[#allocation5 + $0x1d0] sm:$0xf]  ;;  %v5436_v32 = vld [vmem:[#allocation5 + $0x1d4] sm:$0xf0]  ;;  %3836 = vmatpush.bf16.msra.mxu1 %v4468_v17  ;;  %v4524_v34 = vor.u32 %v5420_v30, %v4523_v28  ;;  %v5386_v36 = vld [vmem:[#allocation5 + $0x44] sm:$0xf0] }
  0x19   :  { %3849 = vmatpush.bf16.msra.mxu2 %v4532_v21  ;;  %v4451_v37 = vld [vmem:[#allocation5 + $0xc0] sm:$0xf]  ;;  %v4588_v38 = vor.u32 %v5436_v32, %v4587_v31  ;;  %v5402_v39 = vld [vmem:[#allocation5 + $0xc4] sm:$0xf0]  ;;  %v4388_v44 = vor.u32 %v5386_v36, %v4387_v35  ;;  %v4379_v47 = vld [vmem:[#allocation5 + $0x30] sm:$0xf] }
  0x1a   :  { %3862 = vmatpush.bf16.msra.mxu3 %v4596_v25  ;;  %v4515_v40 = vld [vmem:[#allocation5 + $0x140] sm:$0xf]  ;;  %v5418_v41 = vld [vmem:[#allocation5 + $0x144] sm:$0xf0]  ;;  %v4452_v45 = vor.u32 %v5402_v39, %v4451_v37  ;;  %v5384_v48 = vld [vmem:[#allocation5 + $0x34] sm:$0xf0] }
  0x1b   :  { %v4579_v42 = vld [vmem:[#allocation5 + $0x1c0] sm:$0xf]  ;;  %v5434_v43 = vld [vmem:[#allocation5 + $0x1c4] sm:$0xf0]  ;;  %3824 = vmatpush.bf16.msra.mxu0 %v4396_v29  ;;  %v4516_v46 = vor.u32 %v5418_v41, %v4515_v40  ;;  %v4443_v49 = vld [vmem:[#allocation5 + $0xb0] sm:$0xf]  ;;  %v4380_v56 = vor.u32 %v5384_v48, %v4379_v47 }
  0x1c   :  { %3837 = vmatpush.bf16.msra.mxu1 %v4460_v33  ;;  %v4580_v50 = vor.u32 %v5434_v43, %v4579_v42  ;;  %v5400_v51 = vld [vmem:[#allocation5 + $0xb4] sm:$0xf0]  ;;  %v4507_v52 = vld [vmem:[#allocation5 + $0x130] sm:$0xf]  ;;  %v4371_v59 = vld [vmem:[#allocation5 + $0x20] sm:$0xf] }
  0x1d   :  { %3850 = vmatpush.bf16.msra.mxu2 %v4524_v34  ;;  %v5416_v53 = vld [vmem:[#allocation5 + $0x134] sm:$0xf0]  ;;  %v4571_v54 = vld [vmem:[#allocation5 + $0x1b0] sm:$0xf]  ;;  %v4444_v57 = vor.u32 %v5400_v51, %v4443_v49  ;;  %v5382_v60 = vld [vmem:[#allocation5 + $0x24] sm:$0xf0] }
  0x1e   :  { %3863 = vmatpush.bf16.msra.mxu3 %v4588_v38  ;;  %v5432_v55 = vld [vmem:[#allocation5 + $0x1b4] sm:$0xf0]  ;;  %v4508_v58 = vor.u32 %v5416_v53, %v4507_v52  ;;  %v4435_v61 = vld [vmem:[#allocation5 + $0xa0] sm:$0xf]  ;;  %v5398_v63 = vld [vmem:[#allocation5 + $0xa4] sm:$0xf0]  ;;  %v4372_v4 = vor.u32 %v5382_v60, %v4371_v59 }
  0x1f   :  { %3825 = vmatpush.bf16.msra.mxu0 %v4388_v44  ;;  %v4572_v62 = vor.u32 %v5432_v55, %v4571_v54  ;;  %v4499_v0 = vld [vmem:[#allocation5 + $0x120] sm:$0xf]  ;;  %v5414_v1 = vld [vmem:[#allocation5 + $0x124] sm:$0xf0]  ;;  %v4436_v5 = vor.u32 %v5398_v63, %v4435_v61  ;;  %v4363_v7 = vld [vmem:[#allocation5 + $0x10] sm:$0xf] }
  0x20   :  { %3838 = vmatpush.bf16.msra.mxu1 %v4452_v45  ;;  %v4563_v2 = vld [vmem:[#allocation5 + $0x1a0] sm:$0xf]  ;;  %v5430_v3 = vld [vmem:[#allocation5 + $0x1a4] sm:$0xf0]  ;;  %v4500_v6 = vor.u32 %v5414_v1, %v4499_v0  ;;  %v5380_v8 = vld [vmem:[#allocation5 + $0x14] sm:$0xf0] }
  0x21   :  { %3851 = vmatpush.bf16.msra.mxu2 %v4516_v46  ;;  %v4427_v9 = vld [vmem:[#allocation5 + $0x90] sm:$0xf]  ;;  %v4564_v10 = vor.u32 %v5430_v3, %v4563_v2  ;;  %v5396_v11 = vld [vmem:[#allocation5 + $0x94] sm:$0xf0]  ;;  %v4355_v16 = vld [vmem:[#allocation5] sm:$0xf]  ;;  %v4364_v17 = vor.u32 %v5380_v8, %v4363_v7 }
  0x22   :  { %3864 = vmatpush.bf16.msra.mxu3 %v4580_v50  ;;  %v4491_v12 = vld [vmem:[#allocation5 + $0x110] sm:$0xf]  ;;  %v5412_v13 = vld [vmem:[#allocation5 + $0x114] sm:$0xf0]  ;;  %v5378_v18 = vld [vmem:[#allocation5 + $0x4] sm:$0xf0]  ;;  %v4428_v21 = vor.u32 %v5396_v11, %v4427_v9 }
  0x23   :  { %3826 = vmatpush.bf16.msra.mxu0 %v4380_v56  ;;  %v4555_v14 = vld [vmem:[#allocation5 + $0x190] sm:$0xf]  ;;  %v5428_v15 = vld [vmem:[#allocation5 + $0x194] sm:$0xf0]  ;;  %v4419_v19 = vld [vmem:[#allocation5 + $0x80] sm:$0xf]  ;;  %v4492_v22 = vor.u32 %v5412_v13, %v4491_v12  ;;  %v4356_v33 = vor.u32 %v5378_v18, %v4355_v16 }
  0x24   :  { %3839 = vmatpush.bf16.msra.mxu1 %v4444_v57  ;;  %v5394_v20 = vld [vmem:[#allocation5 + $0x84] sm:$0xf0]  ;;  %v4483_v23 = vld [vmem:[#allocation5 + $0x100] sm:$0xf]  ;;  %v4556_v26 = vor.u32 %v5428_v15, %v4555_v14  ;;  %v4667_v28 = vld [vmem:[#allocation5 + $0x270] sm:$0xf] }
  0x25   :  { %3852 = vmatpush.bf16.msra.mxu2 %v4508_v58  ;;  %v5410_v24 = vld [vmem:[#allocation5 + $0x104] sm:$0xf0]  ;;  %v4547_v25 = vld [vmem:[#allocation5 + $0x180] sm:$0xf]  ;;  %v5456_v29 = vld [vmem:[#allocation5 + $0x274] sm:$0xf0]  ;;  %v4420_v37 = vor.u32 %v5394_v20, %v4419_v19 }
  0x26   :  { %3865 = vmatpush.bf16.msra.mxu3 %v4572_v62  ;;  %v5426_v27 = vld [vmem:[#allocation5 + $0x184] sm:$0xf0]  ;;  %v4731_v30 = vld [vmem:[#allocation5 + $0x2f0] sm:$0xf]  ;;  %v5472_v31 = vld [vmem:[#allocation5 + $0x2f4] sm:$0xf0]  ;;  %v4484_v38 = vor.u32 %v5410_v24, %v4483_v23  ;;  %v4668_v44 = vor.u32 %v5456_v29, %v4667_v28 }
  0x27   :  { %3827 = vmatpush.bf16.msra.mxu0 %v4372_v4  ;;  %v4795_v32 = vld [vmem:[#allocation5 + $0x370] sm:$0xf]  ;;  %v5488_v34 = vld [vmem:[#allocation5 + $0x374] sm:$0xf0]  ;;  %v5822_v39 = vld [vmem:[#allocation5 + $0x260] sm:$0xf]  ;;  %v4548_v43 = vor.u32 %v5426_v27, %v4547_v25  ;;  %v4732_v51 = vor.u32 %v5472_v31, %v4731_v30 }
  0x28   :  { %3840 = vmatpush.bf16.msra.mxu1 %v4436_v5  ;;  %v4859_v35 = vld [vmem:[#allocation5 + $0x3f0] sm:$0xf]  ;;  %v5504_v36 = vld [vmem:[#allocation5 + $0x3f4] sm:$0xf0]  ;;  %v5824_v40 = vld [vmem:[#allocation5 + $0x264] sm:$0xf0]  ;;  %v4796_v52 = vor.u32 %v5488_v34, %v4795_v32 }
  0x29   :  { %3853 = vmatpush.bf16.msra.mxu2 %v4500_v6  ;;  %v5826_v41 = vld [vmem:[#allocation5 + $0x2e0] sm:$0xf]  ;;  %v5828_v42 = vld [vmem:[#allocation5 + $0x2e4] sm:$0xf0]  ;;  %v5838_v49 = vld [vmem:[#allocation5 + $0x250] sm:$0xf]  ;;  %v4860_v61 = vor.u32 %v5504_v36, %v4859_v35  ;;  %v4660_v7 = vor.u32 %v5824_v40, %v5822_v39 }
  0x2a   :  { %3866 = vmatpush.bf16.msra.mxu3 %v4564_v10  ;;  %v5830_v45 = vld [vmem:[#allocation5 + $0x360] sm:$0xf]  ;;  %v5832_v46 = vld [vmem:[#allocation5 + $0x364] sm:$0xf0]  ;;  %v5840_v50 = vld [vmem:[#allocation5 + $0x254] sm:$0xf0]  ;;  %v4724_v8 = vor.u32 %v5828_v42, %v5826_v41 }
  0x2b   :  { %3828 = vmatpush.bf16.msra.mxu0 %v4364_v17  ;;  %v5834_v47 = vld [vmem:[#allocation5 + $0x3e0] sm:$0xf]  ;;  %v5836_v48 = vld [vmem:[#allocation5 + $0x3e4] sm:$0xf0]  ;;  %v5842_v53 = vld [vmem:[#allocation5 + $0x2d0] sm:$0xf]  ;;  %v4788_v12 = vor.u32 %v5832_v46, %v5830_v45  ;;  %v4652_v14 = vor.u32 %v5840_v50, %v5838_v49 }
  0x2c   :  { %3841 = vmatpush.bf16.msra.mxu1 %v4428_v21  ;;  %v5844_v54 = vld [vmem:[#allocation5 + $0x2d4] sm:$0xf0]  ;;  %v5846_v55 = vld [vmem:[#allocation5 + $0x350] sm:$0xf]  ;;  %v5854_v59 = vld [vmem:[#allocation5 + $0x240] sm:$0xf]  ;;  %v4852_v13 = vor.u32 %v5836_v48, %v5834_v47 }
  0x2d   :  { %3854 = vmatpush.bf16.msra.mxu2 %v4492_v22  ;;  %v5848_v56 = vld [vmem:[#allocation5 + $0x354] sm:$0xf0]  ;;  %v5850_v57 = vld [vmem:[#allocation5 + $0x3d0] sm:$0xf]  ;;  %v5856_v60 = vld [vmem:[#allocation5 + $0x244] sm:$0xf0]  ;;  %v4716_v18 = vor.u32 %v5844_v54, %v5842_v53 }
  0x2e   :  { %3867 = vmatpush.bf16.msra.mxu3 %v4556_v26  ;;  %v5852_v58 = vld [vmem:[#allocation5 + $0x3d4] sm:$0xf0]  ;;  %v5858_v62 = vld [vmem:[#allocation5 + $0x2c0] sm:$0xf]  ;;  %v5860_v63 = vld [vmem:[#allocation5 + $0x2c4] sm:$0xf0]  ;;  %v4780_v19 = vor.u32 %v5848_v56, %v5846_v55  ;;  %v4644_v21 = vor.u32 %v5856_v60, %v5854_v59 }
  0x2f   :  { %3829 = vmatpush.bf16.msra.mxu0 %v4356_v33  ;;  %v5862_v0 = vld [vmem:[#allocation5 + $0x340] sm:$0xf]  ;;  %v5864_v1 = vld [vmem:[#allocation5 + $0x344] sm:$0xf0]  ;;  %v5870_v4 = vld [vmem:[#allocation5 + $0x230] sm:$0xf]  ;;  %v4844_v20 = vor.u32 %v5852_v58, %v5850_v57 }
  0x30   :  { %v5866_v2 = vld [vmem:[#allocation5 + $0x3c0] sm:$0xf]  ;;  %v5868_v3 = vld [vmem:[#allocation5 + $0x3c4] sm:$0xf0]  ;;  %3842 = vmatpush.bf16.msra.mxu1 %v4420_v37  ;;  %v5872_v5 = vld [vmem:[#allocation5 + $0x234] sm:$0xf0] }
  0x31   :  { %3855 = vmatpush.bf16.msra.mxu2 %v4484_v38  ;;  %v5874_v6 = vld [vmem:[#allocation5 + $0x2b0] sm:$0xf]  ;;  %v5880_v9 = vld [vmem:[#allocation5 + $0x2b4] sm:$0xf0]  ;;  %v5896_v17 = vld [vmem:[#allocation5 + $0x220] sm:$0xf]  ;;  %v7296_v59 = vor.u32 %v5868_v3, %v5866_v2 }
  0x32   :  { %3868 = vmatpush.bf16.msra.mxu3 %v4548_v43  ;;  %v5882_v10 = vld [vmem:[#allocation5 + $0x330] sm:$0xf]  ;;  %v5884_v11 = vld [vmem:[#allocation5 + $0x334] sm:$0xf0]  ;;  %v5906_v22 = vld [vmem:[#allocation5 + $0x224] sm:$0xf0]  ;;  %v7298_v2 = vor.u32 %v5880_v9, %v5874_v6 }
  0x33   :  { %3874 = vmatpush.bf16.msrb.mxu0 %v4668_v44  ;;  %v5892_v15 = vld [vmem:[#allocation5 + $0x3b0] sm:$0xf]  ;;  %v5894_v16 = vld [vmem:[#allocation5 + $0x3b4] sm:$0xf0]  ;;  %v5908_v23 = vld [vmem:[#allocation5 + $0x2a0] sm:$0xf]  ;;  %v7299_v3 = vor.u32 %v5884_v11, %v5882_v10  ;;  %v7301_v10 = vor.u32 %v5906_v22, %v5896_v17 }
  0x34   :  { %3887 = vmatpush.bf16.msrb.mxu1 %v4732_v51  ;;  %v5910_v24 = vld [vmem:[#allocation5 + $0x2a4] sm:$0xf0]  ;;  %v5920_v29 = vld [vmem:[#allocation5 + $0x320] sm:$0xf]  ;;  %vm1599_vm0 = vcmask 1041409   ;;  %vm1601_vm1 = vcmask 1042434  }
  0x35   :  { %3900 = vmatpush.bf16.msrb.mxu2 %v4796_v52  ;;  %v5922_v30 = vld [vmem:[#allocation5 + $0x324] sm:$0xf0]  ;;  %v5924_v31 = vld [vmem:[#allocation5 + $0x3a0] sm:$0xf]  ;;  %vm1603_vm2 = vcmask 1043459   ;;  %vm1605_vm3 = vcmask 1044484  }
  0x36   :  { %3913 = vmatpush.bf16.msrb.mxu3 %v4860_v61  ;;  %v5934_v36 = vld [vmem:[#allocation5 + $0x3a4] sm:$0xf0]  ;;  %vm1607_vm4 = vcmask 1045509   ;;  %vm1609_vm5 = vcmask 1046534   ;;  %vm1611_vm6 = vcmask 1047559   ;;  %s5786_s0 = smov [#allocation9]  }
  0x37   :  { %3875 = vmatpush.bf16.msrb.mxu0 %v4660_v7  ;;  %v5936_v37 = vld [vmem:[#allocation2 + $0x8] sm:$0xff]  ;;  %v7304_v17 = vor.u32 %v5934_v36, %v5924_v31  ;;  %s4335_s2 = sshll.u32 %s5786_s0, 4  ;;  %s4337_s9 = sshll.u32 %s7249_s4, 4  ;;  %s4336_s2 = int_to_ptr.vmem [resolvable:$true] %s4335_s2  ;;  %s4338_s9 = int_to_ptr.hbm [resolvable:$true] %s4337_s9 }
  0x38   :  { %v5938_v38 = vld [vmem:[#allocation2 + $0x48] sm:$0xff]  ;;  %3888 = vmatpush.bf16.msrb.mxu1 %v4724_v8  ;;  %v193_v44 = vunpack.c.l.bf16 %v5936_v37  ;;  %s5787_s4 = smov [#allocation8]   ;;  %s4326_s13 = sshll.u32 %s7248_s3, 4  ;;  %s4327_s13 = int_to_ptr.hbm [resolvable:$true] %s4326_s13 }
  0x39   :  { %3901 = vmatpush.bf16.msrb.mxu2 %v4788_v12  ;;  %v5944_v41 = vld [vmem:[#allocation2 + $0x88] sm:$0xff]  ;;  %v209_v45 = vunpack.c.l.bf16 %v5938_v38  ;;  %s4324_s10 = sshll.u32 %s5787_s4, 4  ;;  %s4325_s10 = int_to_ptr.vmem [resolvable:$true] %s4324_s10 }
  0x3a   :  { %v5946_v42 = vld [vmem:[#allocation2 + $0xc8] sm:$0xff]  ;;  %3914 = vmatpush.bf16.msrb.mxu3 %v4852_v13  ;;  %v225_v50 = vunpack.c.l.bf16 %v5944_v41 }
  0x3b   :  { %v5948_v43 = vld [vmem:[#allocation2 + $0x108] sm:$0xff]  ;;  %v241_v51 = vunpack.c.l.bf16 %v5946_v42  ;;  %v461_v61 = vadd.f32 %v209_v45, %v193_v44  ;;  %3876 = vmatpush.bf16.msrb.mxu0 %v4652_v14 }
  0x3c   :  { %v5954_v47 = vld [vmem:[#allocation2 + $0x148] sm:$0xff]  ;;  %v257_v52 = vunpack.c.l.bf16 %v5948_v43  ;;  %3889 = vmatpush.bf16.msrb.mxu1 %v4716_v18 }
  0x3d   :  { %v5956_v48 = vld [vmem:[#allocation2 + $0x188] sm:$0xff]  ;;  %v273_v56 = vunpack.c.l.bf16 %v5954_v47  ;;  %v573_v39 = vadd.f32 %v241_v51, %v225_v50  ;;  %3902 = vmatpush.bf16.msrb.mxu2 %v4780_v19  ;;  %v462_v33 = vrot.slane %v461_v61, 4 }
  0x3e   :  { %v5958_v49 = vld [vmem:[#allocation2 + $0x1c8] sm:$0xff]  ;;  %v289_v57 = vunpack.c.l.bf16 %v5956_v48  ;;  %3915 = vmatpush.bf16.msrb.mxu3 %v4844_v20  ;;  %v7294_v20 = vor.u32 %v5860_v63, %v5858_v62 }
  0x3f   :  { %v5963_v53 = vld [vmem:[#allocation2 + $0x208] sm:$0xff]  ;;  %v305_v58 = vunpack.c.l.bf16 %v5958_v49  ;;  %v574_v27 = vrot.slane %v573_v39, 4  ;;  %v685_v50 = vadd.f32 %v273_v56, %v257_v52  ;;  %v463_v18 = vadd.f32 %v462_v33, %v461_v61  ;;  %3877 = vmatpush.bf16.msrb.mxu0 %v4644_v21 }
  0x40   :  { %v5965_v54 = vld [vmem:[#allocation2 + $0x248] sm:$0xff]  ;;  %v321_v13 = vunpack.c.l.bf16 %v5963_v53  ;;  %3890 = vmatpush.bf16.msrb.mxu1 %v7294_v20 }
  0x41   :  { %v5967_v55 = vld [vmem:[#allocation2 + $0x288] sm:$0xff]  ;;  %v337_v46 = vunpack.c.l.bf16 %v5965_v54  ;;  %v797_v19 = vadd.f32 %v305_v58, %v289_v57  ;;  %v575_v25 = vadd.f32 %v574_v27, %v573_v39  ;;  %v464_v33 = vrot.slane %v463_v18, 2 }
  0x42   :  { %v5972_v7 = vld [vmem:[#allocation2 + $0x2c8] sm:$0xff]  ;;  %v353_v40 = vunpack.c.l.bf16 %v5967_v55  ;;  %3916 = vmatpush.bf16.msrb.mxu3 %v7296_v59 }
  0x43   :  { %7290 = vst [vmem:[#allocation15_spill] sm:$0xff] %v5972_v7  ;;  %v5974_v8 = vld [vmem:[#allocation2 + $0x308] sm:$0xff]  ;;  %v369_v14 = vunpack.c.l.bf16 %v5972_v7  ;;  %v909_v51 = vadd.f32 %v337_v46, %v321_v13  ;;  %v798_v52 = vrot.slane %v797_v19, 4  ;;  %v576_v60 = vrot.slane %v575_v25, 2 }
  0x44   :  { %7291 = vst [vmem:[#allocation16_spill] sm:$0xff] %v5974_v8  ;;  %v5976_v12 = vld [vmem:[#allocation2 + $0x348] sm:$0xff]  ;;  %v385_v44 = vunpack.c.l.bf16 %v5974_v8  ;;  %v686_v8 = vrot.slane %v685_v50, 4  ;;  %3891 = vmatpush.bf16.msrb.mxu1 %v7298_v2 }
  0x45   :  { %7292 = vst [vmem:[#allocation17_spill] sm:$0xff] %v5976_v12  ;;  %v5981_v35 = vld [vmem:[#allocation2 + $0x388] sm:$0xff]  ;;  %v401_v45 = vunpack.c.l.bf16 %v5976_v12  ;;  %v1021_v26 = vadd.f32 %v369_v14, %v353_v40  ;;  %v910_v46 = vrot.slane %v909_v51, 4  ;;  %v799_v39 = vadd.f32 %v798_v52, %v797_v19 }
  0x46   :  { %v5983_v34 = vld [vmem:[#allocation2 + $0x3c8] sm:$0xff]  ;;  %v417_v32 = vunpack.c.l.bf16 %v5981_v35  ;;  %v687_v21 = vadd.f32 %v686_v8, %v685_v50 }
  0x47   :  { %7293 = vst [vmem:[#allocation18_spill] sm:$0xff] %v5983_v34  ;;  %v433_v28 = vunpack.c.l.bf16 %v5983_v34  ;;  %v1133_v7 = vadd.f32 %v401_v45, %v385_v44  ;;  %v7295_v34 = vor.u32 %v5864_v1, %v5862_v0  ;;  %v1022_v40 = vrot.slane %v1021_v26, 4 }
  0x48   :  { %v911_v62 = vadd.f32 %v910_v46, %v909_v51  ;;  %v7297_v0 = vor.u32 %v5872_v5, %v5870_v4  ;;  %v577_v1 = vadd.f32 %v576_v60, %v575_v25  ;;  %v800_v61 = vrot.slane %v799_v39, 2 }
  0x49   :  { %v1245_v12 = vadd.f32 %v433_v28, %v417_v32  ;;  %3903 = vmatpush.bf16.msrb.mxu2 %v7295_v34  ;;  %v1134_v27 = vrot.slane %v1133_v7, 4  ;;  %v465_v32 = vadd.f32 %v464_v33, %v463_v18  ;;  %v1023_v63 = vadd.f32 %v1022_v40, %v1021_v26 }
  0x4a   :  { %3878 = vmatpush.bf16.msrb.mxu0 %v7297_v0  ;;  %v688_v34 = vrot.slane %v687_v21, 2  ;;  %v912_v8 = vrot.slane %v911_v62, 2  ;;  %v7300_v4 = vor.u32 %v5894_v16, %v5892_v15  ;;  %v578_v5 = vrot.slane %v577_v1, 1 }
  0x4b   :  { %v1246_v28 = vrot.slane %v1245_v12, 4  ;;  %v1135_v56 = vadd.f32 %v1134_v27, %v1133_v7  ;;  %v466_v58 = vrot.slane %v465_v32, 1  ;;  %v1024_v26 = vrot.slane %v1023_v63, 2 }
  0x4c   :  { %3917 = vmatpush.bf16.msrb.mxu3 %v7300_v4  ;;  %v689_v25 = vadd.f32 %v688_v34, %v687_v21  ;;  %v801_v9 = vadd.f32 %v800_v61, %v799_v39  ;;  %v913_v13 = vadd.f32 %v912_v8, %v911_v62  ;;  %v579_v11 = vadd.f32 %v578_v5, %v577_v1  ;;  %v6030_v8 = vld [vmem:[#allocation2] sm:$0xff] }
  0x4d   :  { %v1247_v57 = vadd.f32 %v1246_v28, %v1245_v12  ;;  %3904 = vmatpush.bf16.msrb.mxu2 %v7299_v3  ;;  %v1136_v7 = vrot.slane %v1135_v56, 2  ;;  %v467_v6 = vadd.f32 %v466_v58, %v465_v32  ;;  %v1025_v14 = vadd.f32 %v1024_v26, %v1023_v63  ;;  %v6032_v26 = vld [vmem:[#allocation2 + $0x40] sm:$0xff] }
  0x4e   :  { %3879 = vmatpush.bf16.msrb.mxu0 %v7301_v10  ;;  %v690_v44 = vrot.slane %v689_v25, 1  ;;  %v7302_v15 = vor.u32 %v5910_v24, %v5908_v23  ;;  %v7303_v16 = vor.u32 %v5922_v30, %v5920_v29  ;;  %v802_v18 = vrot.slane %v801_v9, 1 }
  0x4f   :  { %v1248_v12 = vrot.slane %v1247_v57, 2  ;;  %v1137_v45 = vadd.f32 %v1136_v7, %v1135_v56  ;;  %v914_v19 = vrot.slane %v913_v13, 1  ;;  %v1026_v51 = vrot.slane %v1025_v14, 1 }
  0x50   :  { %3892 = vmatpush.bf16.msrb.mxu1 %v7302_v15  ;;  %v1345_v20 = vmul.f32 0.0625, %v467_v6  ;;  %3918 = vmatpush.bf16.msrb.mxu3 %v7304_v17  ;;  %v691_v22 = vadd.f32 %v690_v44, %v689_v25  ;;  %v1361_v46 = vmul.f32 0.0625, %v579_v11  ;;  %v803_v40 = vadd.f32 %v802_v18, %v801_v9  ;;  %v6037_v6 = vld [vmem:[#allocation2 + $0xc0] sm:$0xff] }
  0x51   :  { %v1249_v50 = vadd.f32 %v1248_v12, %v1247_v57  ;;  %3905 = vmatpush.bf16.msrb.mxu2 %v7303_v16  ;;  %v1138_v33 = vrot.slane %v1137_v45, 1  ;;  %v915_v59 = vadd.f32 %v914_v19, %v913_v13  ;;  %v1027_v23 = vadd.f32 %v1026_v51, %v1025_v14  ;;  %v6035_v12 = vld [vmem:[#allocation2 + $0x80] sm:$0xff] }
  0x52   :  { %v1377_v29 = vmul.f32 0.0625, %v691_v22  ;;  %v1393_v30 = vmul.f32 0.0625, %v803_v40  ;;  %v1620_v31 = vsel %vm1599_vm0, %v1361_v46, %v1345_v20  ;;  %v1753_v36 = vpack.c.bf16 %v1345_v20, %v1345_v20  ;;  %v6039_v9 = vld [vmem:[#allocation2 + $0x100] sm:$0xff] }
  0x53   :  { %v1250_v52 = vrot.slane %v1249_v50, 1  ;;  %v1139_v24 = vadd.f32 %v1138_v33, %v1137_v45  ;;  %v1409_v21 = vmul.f32 0.0625, %v915_v59  ;;  %v1425_v27 = vmul.f32 0.0625, %v1027_v23  ;;  %v6042_v44 = vld [vmem:[#allocation2 + $0x140] sm:$0xff] }
  0x54   :  { %v1621_v39 = vsel %vm1601_vm1, %v1377_v29, %v1620_v31  ;;  %v1769_v62 = vpack.c.bf16 %v1361_v46, %v1361_v46  ;;  %v1785_v63 = vpack.c.bf16 %v1377_v29, %v1377_v29  ;;  %v1801_v0 = vpack.c.bf16 %v1393_v30, %v1393_v30  ;;  %v6044_v45 = vld [vmem:[#allocation2 + $0x180] sm:$0xff] }
  0x55   :  { %v1251_v60 = vadd.f32 %v1250_v52, %v1249_v50  ;;  %v1441_v28 = vmul.f32 0.0625, %v1139_v24  ;;  %v1622_v1 = vsel %vm1603_vm2, %v1393_v30, %v1621_v39  ;;  %v1817_v34 = vpack.c.bf16 %v1409_v21, %v1409_v21  ;;  %v6046_v50 = vld [vmem:[#allocation2 + $0x1c0] sm:$0xff] }
  0x56   :  { %v1833_v56 = vpack.c.bf16 %v1425_v27, %v1425_v27  ;;  %v1623_v2 = vsel %vm1605_vm3, %v1409_v21, %v1622_v1  ;;  %v2272_v58 = vunpack.c.l.b16 %v1753_v36  ;;  %v2288_v61 = vunpack.c.l.b16 %v1769_v62  ;;  %v6050_v18 = vld [vmem:[#allocation2 + $0x200] sm:$0xff] }
  0x57   :  { %v1457_v32 = vmul.f32 0.0625, %v1251_v60  ;;  %v1849_v57 = vpack.c.bf16 %v1441_v28, %v1441_v28  ;;  %v1624_v4 = vsel %vm1607_vm4, %v1425_v27, %v1623_v2  ;;  %v2304_v5 = vunpack.c.l.b16 %v1785_v63  ;;  %v6052_v19 = vld [vmem:[#allocation2 + $0x240] sm:$0xff] }
  0x58   :  { %v2320_v25 = vunpack.c.l.b16 %v1801_v0  ;;  %v2336_v7 = vunpack.c.l.b16 %v1817_v34  ;;  %v1625_v13 = vsel %vm1609_vm5, %v1441_v28, %v1624_v4  ;;  %v2352_v14 = vunpack.c.l.b16 %v1833_v56  ;;  %v6054_v51 = vld [vmem:[#allocation2 + $0x280] sm:$0xff] }
  0x59   :  { %v1865_v3 = vpack.c.bf16 %v1457_v32, %v1457_v32  ;;  %v2368_v10 = vunpack.c.l.b16 %v1849_v57  ;;  %v1626_v15 = vsel %vm1611_vm6, %v1457_v32, %v1625_v13  ;;  %v2412_v16 = vsel %vm1599_vm0, %v2288_v61, %v2272_v58  ;;  %v6059_v33 = vld [vmem:[#allocation2 + $0x2c0] sm:$0xff] }
  0x5a   :  { %v191_v20 = vunpack.c.l.bf16 %v6030_v8  ;;  %v207_v17 = vunpack.c.l.bf16 %v6032_v26  ;;  %1736 = vst [vmem:[#allocation9 + $0x10] sm:$0xff] %v1626_v15  ;;  %v2413_v22 = vsel %vm1601_vm1, %v2304_v5, %v2412_v16  ;;  %v6061_v52 = vld [vmem:[#allocation2 + $0x300] sm:$0xff]  ;;  %v223_v40 = vunpack.c.l.bf16 %v6035_v12 }
  0x5b   :  { %v2384_v11 = vunpack.c.l.b16 %v1865_v3  ;;  %v6063_v46 = vld [vmem:[#allocation2 + $0x340] sm:$0xff]  ;;  %v239_v59 = vunpack.c.l.bf16 %v6037_v6  ;;  %v255_v23 = vunpack.c.l.bf16 %v6039_v9  ;;  %v2414_v24 = vsel %vm1603_vm2, %v2320_v25, %v2413_v22 }
  0x5c   :  { %v6069_v60 = vld [vmem:[#allocation2 + $0x380] sm:$0xff]  ;;  %v271_v30 = vunpack.c.l.bf16 %v6042_v44  ;;  %v287_v21 = vunpack.c.l.bf16 %v6044_v45  ;;  %v303_v27 = vunpack.c.l.bf16 %v6046_v50  ;;  %v2415_v28 = vsel %vm1605_vm3, %v2336_v7, %v2414_v24 }
  0x5d   :  { %v6071_v29 = vld [vmem:[#allocation2 + $0x3c0] sm:$0xff]  ;;  %v319_v32 = vunpack.c.l.bf16 %v6050_v18  ;;  %v335_v31 = vunpack.c.l.bf16 %v6052_v19  ;;  %v351_v36 = vunpack.c.l.bf16 %v6054_v51  ;;  %v2416_v39 = vsel %vm1607_vm4, %v2352_v14, %v2415_v28 }
  0x5e   :  { %v367_v62 = vunpack.c.l.bf16 %v6059_v33  ;;  %v383_v63 = vunpack.c.l.bf16 %v6061_v52  ;;  %v399_v0 = vunpack.c.l.bf16 %v6063_v46  ;;  %v2417_v1 = vsel %vm1609_vm5, %v2368_v10, %v2416_v39 }
  0x5f   :  { %v415_v34 = vunpack.c.l.bf16 %v6069_v60  ;;  %v431_v56 = vunpack.c.l.bf16 %v6071_v29  ;;  %v447_v57 = vadd.f32 %v207_v17, %v191_v20  ;;  %v2418_v2 = vsel %vm1611_vm6, %v2384_v11, %v2417_v1 }
  0x60   :  { %v559_v3 = vadd.f32 %v239_v59, %v223_v40  ;;  %v671_v58 = vadd.f32 %v271_v30, %v255_v23  ;;  %v783_v61 = vadd.f32 %v303_v27, %v287_v21  ;;  %v6088_v4 = vpack.c.b16 %v2418_v2, %v2418_v2 }
  0x61   :  { %v448_v5 = vrot.slane %v447_v57, 4  ;;  %v895_v25 = vadd.f32 %v335_v31, %v319_v32  ;;  %v1007_v7 = vadd.f32 %v367_v62, %v351_v36  ;;  %v1119_v16 = vadd.f32 %v399_v0, %v383_v63 }
  0x62   :  { %7305 = vst [vmem:[#allocation19_spill] sm:$0xff] %v6088_v4  ;;  %v560_v13 = vrot.slane %v559_v3, 4  ;;  %v672_v14 = vrot.slane %v671_v58, 4  ;;  %v784_v15 = vrot.slane %v783_v61, 4  ;;  %3856 = vmatmul.bf16.vlgmr.msra.gmra.mxu2 %v6088_v4  ;;  %v1231_v20 = vadd.f32 %v431_v56, %v415_v34 }
  0x63   :  { %v449_v10 = vadd.f32 %v448_v5, %v447_v57  ;;  %v896_v22 = vrot.slane %v895_v25, 4  ;;  %v1008_v24 = vrot.slane %v1007_v7, 4  ;;  %v1120_v59 = vrot.slane %v1119_v16, 4 }
  0x64   :  { %v561_v17 = vadd.f32 %v560_v13, %v559_v3  ;;  %v673_v11 = vadd.f32 %v672_v14, %v671_v58  ;;  %v785_v40 = vadd.f32 %v784_v15, %v783_v61  ;;  %v1232_v27 = vrot.slane %v1231_v20, 4 }
  0x65   :  { %v450_v23 = vrot.slane %v449_v10, 2  ;;  %v897_v30 = vadd.f32 %v896_v22, %v895_v25  ;;  %v1009_v21 = vadd.f32 %v1008_v24, %v1007_v7  ;;  %v1121_v36 = vadd.f32 %v1120_v59, %v1119_v16 }
  0x66   :  { %v562_v28 = vrot.slane %v561_v17, 2  ;;  %v674_v32 = vrot.slane %v673_v11, 2  ;;  %v786_v31 = vrot.slane %v785_v40, 2  ;;  %v1233_v0 = vadd.f32 %v1232_v27, %v1231_v20 }
  0x67   :  { %v451_v39 = vadd.f32 %v450_v23, %v449_v10  ;;  %v898_v62 = vrot.slane %v897_v30, 2  ;;  %v1010_v63 = vrot.slane %v1009_v21, 2  ;;  %v1122_v34 = vrot.slane %v1121_v36, 2 }
  0x68   :  { %v563_v1 = vadd.f32 %v562_v28, %v561_v17  ;;  %v675_v57 = vadd.f32 %v674_v32, %v673_v11  ;;  %v787_v2 = vadd.f32 %v786_v31, %v785_v40  ;;  %v1234_v61 = vrot.slane %v1233_v0, 2 }
  0x69   :  { %v452_v56 = vrot.slane %v451_v39, 1  ;;  %v899_v3 = vadd.f32 %v898_v62, %v897_v30  ;;  %v1011_v58 = vadd.f32 %v1010_v63, %v1009_v21  ;;  %v1123_v13 = vadd.f32 %v1122_v34, %v1121_v36 }
  0x6a   :  { %v564_v5 = vrot.slane %v563_v1, 1  ;;  %v676_v25 = vrot.slane %v675_v57, 1  ;;  %v788_v7 = vrot.slane %v787_v2, 1  ;;  %v1235_v16 = vadd.f32 %v1234_v61, %v1233_v0 }
  0x6b   :  { %v453_v14 = vadd.f32 %v452_v56, %v451_v39  ;;  %v900_v15 = vrot.slane %v899_v3, 1  ;;  %v1012_v22 = vrot.slane %v1011_v58, 1  ;;  %v1124_v20 = vrot.slane %v1123_v13, 1 }
  0x6c   :  { %v565_v10 = vadd.f32 %v564_v5, %v563_v1  ;;  %v677_v24 = vadd.f32 %v676_v25, %v675_v57  ;;  %v789_v59 = vadd.f32 %v788_v7, %v787_v2  ;;  %v1236_v40 = vrot.slane %v1235_v16, 1 }
  0x6d   :  { %v901_v17 = vadd.f32 %v900_v15, %v899_v3  ;;  %v1013_v11 = vadd.f32 %v1012_v22, %v1011_v58  ;;  %v1343_v23 = vmul.f32 0.0625, %v453_v14  ;;  %v1125_v27 = vadd.f32 %v1124_v20, %v1123_v13 }
  0x6e   :  { %v1359_v30 = vmul.f32 0.0625, %v565_v10  ;;  %v1375_v21 = vmul.f32 0.0625, %v677_v24  ;;  %v1391_v28 = vmul.f32 0.0625, %v789_v59  ;;  %v1237_v32 = vadd.f32 %v1236_v40, %v1235_v16 }
  0x6f   :  { %v1407_v31 = vmul.f32 0.0625, %v901_v17  ;;  %v1423_v62 = vmul.f32 0.0625, %v1013_v11  ;;  %v1751_v36 = vpack.c.bf16 %v1343_v23, %v1343_v23  ;;  %v1439_v39 = vmul.f32 0.0625, %v1125_v27 }
  0x70   :  { %v1600_v63 = vsel %vm1599_vm0, %v1359_v30, %v1343_v23  ;;  %v1767_v0 = vpack.c.bf16 %v1359_v30, %v1359_v30  ;;  %v1783_v1 = vpack.c.bf16 %v1375_v21, %v1375_v21  ;;  %v1455_v57 = vmul.f32 0.0625, %v1237_v32 }
  0x71   :  { %v1602_v2 = vsel %vm1601_vm1, %v1375_v21, %v1600_v63  ;;  %v1799_v34 = vpack.c.bf16 %v1391_v28, %v1391_v28  ;;  %v1815_v56 = vpack.c.bf16 %v1407_v31, %v1407_v31  ;;  %v1831_v58 = vpack.c.bf16 %v1423_v62, %v1423_v62 }
  0x72   :  { %v1604_v3 = vsel %vm1603_vm2, %v1391_v28, %v1602_v2  ;;  %v1847_v61 = vpack.c.bf16 %v1439_v39, %v1439_v39  ;;  %v2270_v5 = vunpack.c.l.b16 %v1751_v36  ;;  %v1863_v7 = vpack.c.bf16 %v1455_v57, %v1455_v57  ;;  %v7308_v2 = vld [vmem:[#allocation17_spill] sm:$0xff] }
  0x73   :  { %v1606_v25 = vsel %vm1605_vm3, %v1407_v31, %v1604_v3  ;;  %v2286_v13 = vunpack.c.l.b16 %v1767_v0  ;;  %v2302_v14 = vunpack.c.l.b16 %v1783_v1  ;;  %v2318_v22 = vunpack.c.l.b16 %v1799_v34  ;;  %v7306_v0 = vld [vmem:[#allocation15_spill] sm:$0xff]  ;;  %v7307_v1 = vld [vmem:[#allocation16_spill] sm:$0xff]  ;;  %v7309_v34 = vld [vmem:[#allocation18_spill] sm:$0xff] }
  0x74   :  { %v1608_v15 = vsel %vm1607_vm4, %v1423_v62, %v1606_v25  ;;  %v2334_v16 = vunpack.c.l.b16 %v1815_v56  ;;  %v2350_v10 = vunpack.c.l.b16 %v1831_v58  ;;  %v2366_v59 = vunpack.c.l.b16 %v1847_v61 }
  0x75   :  { %v1610_v24 = vsel %vm1609_vm5, %v1439_v39, %v1608_v15  ;;  %v2382_v20 = vunpack.c.l.b16 %v1863_v7  ;;  %v2398_v17 = vsel %vm1599_vm0, %v2286_v13, %v2270_v5  ;;  %v194_v23 = vunpack.c.h.bf16 %v5936_v37 }
  0x76   :  { %v1612_v11 = vsel %vm1611_vm6, %v1455_v57, %v1610_v24  ;;  %v2399_v40 = vsel %vm1601_vm1, %v2302_v14, %v2398_v17  ;;  %v210_v27 = vunpack.c.h.bf16 %v5938_v38  ;;  %v226_v21 = vunpack.c.h.bf16 %v5944_v41 }
  0x77   :  { %1734 = vst [vmem:[#allocation9] sm:$0xff] %v1612_v11  ;;  %v2400_v30 = vsel %vm1603_vm2, %v2318_v22, %v2399_v40  ;;  %v242_v28 = vunpack.c.h.bf16 %v5946_v42  ;;  %v258_v32 = vunpack.c.h.bf16 %v5948_v43  ;;  %v274_v62 = vunpack.c.h.bf16 %v5954_v47 }
  0x78   :  { %v2401_v31 = vsel %vm1605_vm3, %v2334_v16, %v2400_v30  ;;  %v290_v36 = vunpack.c.h.bf16 %v5956_v48  ;;  %v306_v39 = vunpack.c.h.bf16 %v5958_v49  ;;  %v322_v38 = vunpack.c.h.bf16 %v5963_v53 }
  0x79   :  { %v2402_v37 = vsel %vm1607_vm4, %v2350_v10, %v2401_v31  ;;  %v338_v63 = vunpack.c.h.bf16 %v5965_v54  ;;  %v354_v41 = vunpack.c.h.bf16 %v5967_v55  ;;  %v370_v43 = vunpack.c.h.bf16 %v7306_v0 }
  0x7a   :  { %v2403_v42 = vsel %vm1609_vm5, %v2366_v59, %v2402_v37  ;;  %v386_v57 = vunpack.c.h.bf16 %v7307_v1  ;;  %v402_v47 = vunpack.c.h.bf16 %v7308_v2  ;;  %v418_v49 = vunpack.c.h.bf16 %v5981_v35 }
  0x7b   :  { %v2404_v48 = vsel %vm1611_vm6, %v2382_v20, %v2403_v42  ;;  %v434_v56 = vunpack.c.h.bf16 %v7309_v34  ;;  %v468_v3 = vadd.f32 %v210_v27, %v194_v23  ;;  %v580_v54 = vadd.f32 %v242_v28, %v226_v21 }
  0x7c   :  { %v6121_v53 = vpack.c.b16 %v2404_v48, %v2404_v48  ;;  %v692_v58 = vadd.f32 %v274_v62, %v258_v32  ;;  %v804_v55 = vadd.f32 %v306_v39, %v290_v36  ;;  %v916_v5 = vadd.f32 %v338_v63, %v322_v38 }
  0x7d   :  { %v469_v61 = vrot.slane %v468_v3, 4  ;;  %v1028_v25 = vadd.f32 %v370_v43, %v354_v41  ;;  %v1140_v7 = vadd.f32 %v402_v47, %v386_v57  ;;  %v581_v13 = vrot.slane %v580_v54, 4 }
  0x7e   :  { %7310 = vst [vmem:[#allocation15_spill] sm:$0xff] %v6121_v53  ;;  %3830 = vmatmul.bf16.vlgmr.msra.gmra.mxu0 %v6121_v53  ;;  %v693_v14 = vrot.slane %v692_v58, 4  ;;  %v805_v15 = vrot.slane %v804_v55, 4  ;;  %v1252_v22 = vadd.f32 %v434_v56, %v418_v49  ;;  %v917_v35 = vrot.slane %v916_v5, 4 }
  0x7f   :  { %v470_v16 = vadd.f32 %v469_v61, %v468_v3  ;;  %v1029_v10 = vrot.slane %v1028_v25, 4  ;;  %v1141_v24 = vrot.slane %v1140_v7, 4  ;;  %v582_v59 = vadd.f32 %v581_v13, %v580_v54 }
  0x80   :  { %v694_v20 = vadd.f32 %v693_v14, %v692_v58  ;;  %v806_v17 = vadd.f32 %v805_v15, %v804_v55  ;;  %v1253_v11 = vrot.slane %v1252_v22, 4  ;;  %v918_v23 = vadd.f32 %v917_v35, %v916_v5 }
  0x81   :  { %v471_v40 = vrot.slane %v470_v16, 2  ;;  %v1030_v27 = vadd.f32 %v1029_v10, %v1028_v25  ;;  %v1142_v30 = vadd.f32 %v1141_v24, %v1140_v7  ;;  %v583_v21 = vrot.slane %v582_v59, 2 }
  0x82   :  { %v695_v28 = vrot.slane %v694_v20, 2  ;;  %v807_v32 = vrot.slane %v806_v17, 2  ;;  %v1254_v31 = vadd.f32 %v1253_v11, %v1252_v22  ;;  %v919_v36 = vrot.slane %v918_v23, 2 }
  0x83   :  { %v472_v62 = vadd.f32 %v471_v40, %v470_v16  ;;  %v1031_v39 = vrot.slane %v1030_v27, 2  ;;  %v1143_v37 = vrot.slane %v1142_v30, 2  ;;  %v584_v38 = vadd.f32 %v583_v21, %v582_v59 }
  0x84   :  { %v696_v63 = vadd.f32 %v695_v28, %v694_v20  ;;  %v808_v41 = vadd.f32 %v807_v32, %v806_v17  ;;  %v1255_v42 = vrot.slane %v1254_v31, 2  ;;  %v920_v43 = vadd.f32 %v919_v36, %v918_v23 }
  0x85   :  { %v473_v0 = vrot.slane %v472_v62, 1  ;;  %v1032_v1 = vadd.f32 %v1031_v39, %v1030_v27  ;;  %v1144_v57 = vadd.f32 %v1143_v37, %v1142_v30  ;;  %v585_v2 = vrot.slane %v584_v38, 1  ;;  %v4619_v39 = vld [vmem:[#allocation5 + $0x210] sm:$0xf]  ;;  %v5444_v37 = vld [vmem:[#allocation5 + $0x214] sm:$0xf0] }
  0x86   :  { %v697_v47 = vrot.slane %v696_v63, 1  ;;  %v809_v48 = vrot.slane %v808_v41, 1  ;;  %v1256_v49 = vadd.f32 %v1255_v42, %v1254_v31  ;;  %v921_v56 = vrot.slane %v920_v43, 1 }
  0x87   :  { %v474_v34 = vadd.f32 %v473_v0, %v472_v62  ;;  %v1033_v3 = vrot.slane %v1032_v1, 1  ;;  %v1145_v54 = vrot.slane %v1144_v57, 1  ;;  %v586_v58 = vadd.f32 %v585_v2, %v584_v38  ;;  %v4683_v38 = vld [vmem:[#allocation5 + $0x290] sm:$0xf] }
  0x88   :  { %v698_v55 = vadd.f32 %v697_v47, %v696_v63  ;;  %v810_v61 = vadd.f32 %v809_v48, %v808_v41  ;;  %v1257_v5 = vrot.slane %v1256_v49, 1  ;;  %v922_v25 = vadd.f32 %v921_v56, %v920_v43  ;;  %v5460_v43 = vld [vmem:[#allocation5 + $0x294] sm:$0xf0] }
  0x89   :  { %v1034_v7 = vadd.f32 %v1033_v3, %v1032_v1  ;;  %v1146_v13 = vadd.f32 %v1145_v54, %v1144_v57  ;;  %v1346_v14 = vmul.f32 0.0625, %v474_v34  ;;  %v1362_v22 = vmul.f32 0.0625, %v586_v58  ;;  %v4747_v1 = vld [vmem:[#allocation5 + $0x310] sm:$0xf]  ;;  %v5476_v57 = vld [vmem:[#allocation5 + $0x314] sm:$0xf0] }
  0x8a   :  { %v1258_v15 = vadd.f32 %v1257_v5, %v1256_v49  ;;  %v1378_v16 = vmul.f32 0.0625, %v698_v55  ;;  %v1394_v35 = vmul.f32 0.0625, %v810_v61  ;;  %v1410_v10 = vmul.f32 0.0625, %v922_v25  ;;  %v4811_v34 = vld [vmem:[#allocation5 + $0x390] sm:$0xf] }
  0x8b   :  { %v1426_v24 = vmul.f32 0.0625, %v1034_v7  ;;  %v1442_v59 = vmul.f32 0.0625, %v1146_v13  ;;  %v1754_v20 = vpack.c.bf16 %v1346_v14, %v1346_v14  ;;  %v1627_v11 = vsel %vm1599_vm0, %v1362_v22, %v1346_v14  ;;  %v5492_v56 = vld [vmem:[#allocation5 + $0x394] sm:$0xf0] }
  0x8c   :  { %v1458_v17 = vmul.f32 0.0625, %v1258_v15  ;;  %v1770_v40 = vpack.c.bf16 %v1362_v22, %v1362_v22  ;;  %v1786_v23 = vpack.c.bf16 %v1378_v16, %v1378_v16  ;;  %v1628_v27 = vsel %vm1601_vm1, %v1378_v16, %v1627_v11 }
  0x8d   :  { %v1802_v30 = vpack.c.bf16 %v1394_v35, %v1394_v35  ;;  %v1818_v21 = vpack.c.bf16 %v1410_v10, %v1410_v10  ;;  %v1834_v28 = vpack.c.bf16 %v1426_v24, %v1426_v24  ;;  %v1629_v32 = vsel %vm1603_vm2, %v1394_v35, %v1628_v27 }
  0x8e   :  { %v1850_v31 = vpack.c.bf16 %v1442_v59, %v1442_v59  ;;  %v1866_v62 = vpack.c.bf16 %v1458_v17, %v1458_v17  ;;  %v2273_v36 = vunpack.c.l.b16 %v1754_v20  ;;  %v1630_v63 = vsel %vm1605_vm3, %v1410_v10, %v1629_v32 }
  0x8f   :  { %v2289_v41 = vunpack.c.l.b16 %v1770_v40  ;;  %v2305_v42 = vunpack.c.l.b16 %v1786_v23  ;;  %v2321_v0 = vunpack.c.l.b16 %v1802_v30  ;;  %v1631_v2 = vsel %vm1607_vm4, %v1426_v24, %v1630_v63 }
  0x90   :  { %v2337_v47 = vunpack.c.l.b16 %v1818_v21  ;;  %v2353_v48 = vunpack.c.l.b16 %v1834_v28  ;;  %v2369_v49 = vunpack.c.l.b16 %v1850_v31  ;;  %v1632_v3 = vsel %vm1609_vm5, %v1442_v59, %v1631_v2 }
  0x91   :  { %v2385_v54 = vunpack.c.l.b16 %v1866_v62  ;;  %v2419_v58 = vsel %vm1599_vm0, %v2289_v41, %v2273_v36  ;;  %v4620_v55 = vor.u32 %v5444_v37, %v4619_v39  ;;  %v1633_v61 = vsel %vm1611_vm6, %v1458_v17, %v1632_v3 }
  0x92   :  { %v2420_v5 = vsel %vm1601_vm1, %v2305_v42, %v2419_v58  ;;  %v4684_v25 = vor.u32 %v5460_v43, %v4683_v38  ;;  %v4748_v7 = vor.u32 %v5476_v57, %v4747_v1  ;;  %1737 = vst [vmem:[#allocation9 + $0x18] sm:$0xff] %v1633_v61  ;;  %v4812_v14 = vor.u32 %v5492_v56, %v4811_v34 }
  0x93   :  { %v2421_v13 = vsel %vm1603_vm2, %v2321_v0, %v2420_v5  ;;  %3880 = vmatpush.bf16.msrb.mxu0 %v4620_v55  ;;  %v192_v15 = vunpack.c.h.bf16 %v6030_v8  ;;  %v208_v22 = vunpack.c.h.bf16 %v6032_v26  ;;  %v224_v35 = vunpack.c.h.bf16 %v6035_v12 }
  0x94   :  { %v2422_v16 = vsel %vm1605_vm3, %v2337_v47, %v2421_v13  ;;  %3893 = vmatpush.bf16.msrb.mxu1 %v4684_v25  ;;  %3906 = vmatpush.bf16.msrb.mxu2 %v4748_v7  ;;  %v240_v10 = vunpack.c.h.bf16 %v6037_v6  ;;  %v256_v24 = vunpack.c.h.bf16 %v6039_v9  ;;  %v272_v20 = vunpack.c.h.bf16 %v6042_v44 }
  0x95   :  { %v2423_v59 = vsel %vm1607_vm4, %v2353_v48, %v2422_v16  ;;  %3919 = vmatpush.bf16.msrb.mxu3 %v4812_v14  ;;  %v288_v17 = vunpack.c.h.bf16 %v6044_v45  ;;  %v304_v8 = vunpack.c.h.bf16 %v6046_v50  ;;  %v320_v11 = vunpack.c.h.bf16 %v6050_v18 }
  0x96   :  { %v2424_v26 = vsel %vm1609_vm5, %v2369_v49, %v2423_v59  ;;  %v336_v40 = vunpack.c.h.bf16 %v6052_v19  ;;  %v352_v12 = vunpack.c.h.bf16 %v6054_v51  ;;  %v368_v9 = vunpack.c.h.bf16 %v6059_v33 }
  0x97   :  { %v2425_v6 = vsel %vm1611_vm6, %v2385_v54, %v2424_v26  ;;  %v384_v23 = vunpack.c.h.bf16 %v6061_v52  ;;  %v400_v44 = vunpack.c.h.bf16 %v6063_v46  ;;  %v416_v45 = vunpack.c.h.bf16 %v6069_v60 }
  0x98   :  { %v6152_v27 = vpack.c.b16 %v2425_v6, %v2425_v6  ;;  %v432_v50 = vunpack.c.h.bf16 %v6071_v29  ;;  %v454_v30 = vadd.f32 %v208_v22, %v192_v15  ;;  %v566_v18 = vadd.f32 %v240_v10, %v224_v35 }
  0x99   :  { %v678_v21 = vadd.f32 %v272_v20, %v256_v24  ;;  %v790_v19 = vadd.f32 %v304_v8, %v288_v17  ;;  %v902_v28 = vadd.f32 %v336_v40, %v320_v11  ;;  %v1014_v32 = vadd.f32 %v368_v9, %v352_v12 }
  0x9a   :  { %7311 = vst [vmem:[#allocation16_spill] sm:$0xff] %v6152_v27  ;;  %3869 = vmatmul.bf16.vlgmr.msra.gmra.mxu3 %v6152_v27  ;;  %v455_v51 = vrot.slane %v454_v30, 4  ;;  %v1126_v33 = vadd.f32 %v400_v44, %v384_v23  ;;  %v1238_v31 = vadd.f32 %v432_v50, %v416_v45  ;;  %v567_v52 = vrot.slane %v566_v18, 4 }
  0x9b   :  { %v679_v62 = vrot.slane %v678_v21, 4  ;;  %v791_v46 = vrot.slane %v790_v19, 4  ;;  %v903_v36 = vrot.slane %v902_v28, 4  ;;  %v1015_v37 = vrot.slane %v1014_v32, 4 }
  0x9c   :  { %v456_v39 = vadd.f32 %v455_v51, %v454_v30  ;;  %v1127_v60 = vrot.slane %v1126_v33, 4  ;;  %v1239_v38 = vrot.slane %v1238_v31, 4  ;;  %v568_v29 = vadd.f32 %v567_v52, %v566_v18  ;;  %v5442_v52 = vld [vmem:[#allocation5 + $0x204] sm:$0xf0] }
  0x9d   :  { %v680_v63 = vadd.f32 %v679_v62, %v678_v21  ;;  %v792_v41 = vadd.f32 %v791_v46, %v790_v19  ;;  %v904_v42 = vadd.f32 %v903_v36, %v902_v28  ;;  %v1016_v43 = vadd.f32 %v1015_v37, %v1014_v32  ;;  %v4675_v62 = vld [vmem:[#allocation5 + $0x280] sm:$0xf]  ;;  %v5458_v46 = vld [vmem:[#allocation5 + $0x284] sm:$0xf0] }
  0x9e   :  { %v457_v0 = vrot.slane %v456_v39, 2  ;;  %v1128_v1 = vadd.f32 %v1127_v60, %v1126_v33  ;;  %v1240_v57 = vadd.f32 %v1239_v38, %v1238_v31  ;;  %v569_v2 = vrot.slane %v568_v29, 2  ;;  %v4611_v31 = vld [vmem:[#allocation5 + $0x200] sm:$0xf] }
  0x9f   :  { %v681_v47 = vrot.slane %v680_v63, 2  ;;  %v793_v48 = vrot.slane %v792_v41, 2  ;;  %v905_v49 = vrot.slane %v904_v42, 2  ;;  %v1017_v56 = vrot.slane %v1016_v43, 2  ;;  %v4739_v38 = vld [vmem:[#allocation5 + $0x300] sm:$0xf] }
  0xa0   :  { %v458_v34 = vadd.f32 %v457_v0, %v456_v39  ;;  %v1129_v3 = vrot.slane %v1128_v1, 2  ;;  %v1241_v54 = vrot.slane %v1240_v57, 2  ;;  %v570_v58 = vadd.f32 %v569_v2, %v568_v29  ;;  %v5474_v29 = vld [vmem:[#allocation5 + $0x304] sm:$0xf0]  ;;  %v5520_v2 = vld [vmem:[#allocation5 + $0x474] sm:$0xf0] }
  0xa1   :  { %v682_v55 = vadd.f32 %v681_v47, %v680_v63  ;;  %v794_v61 = vadd.f32 %v793_v48, %v792_v41  ;;  %v906_v5 = vadd.f32 %v905_v49, %v904_v42  ;;  %v1018_v7 = vadd.f32 %v1017_v56, %v1016_v43  ;;  %v4803_v63 = vld [vmem:[#allocation5 + $0x380] sm:$0xf]  ;;  %v6161_v56 = vld [vmem:[#allocation5 + $0x4f0] sm:$0xf] }
  0xa2   :  { %v459_v25 = vrot.slane %v458_v34, 1  ;;  %v1130_v13 = vadd.f32 %v1129_v3, %v1128_v1  ;;  %v1242_v14 = vadd.f32 %v1241_v54, %v1240_v57  ;;  %v571_v15 = vrot.slane %v570_v58, 1  ;;  %v5490_v1 = vld [vmem:[#allocation5 + $0x384] sm:$0xf0]  ;;  %v4923_v57 = vld [vmem:[#allocation5 + $0x470] sm:$0xf] }
  0xa3   :  { %v683_v22 = vrot.slane %v682_v55, 1  ;;  %v795_v16 = vrot.slane %v794_v61, 1  ;;  %v907_v35 = vrot.slane %v906_v5, 1  ;;  %v1019_v24 = vrot.slane %v1018_v7, 1  ;;  %v6163_v3 = vld [vmem:[#allocation5 + $0x4f4] sm:$0xf0] }
  0xa4   :  { %v460_v10 = vadd.f32 %v459_v25, %v458_v34  ;;  %v1131_v59 = vrot.slane %v1130_v13, 1  ;;  %v1243_v20 = vrot.slane %v1242_v14, 1  ;;  %v572_v17 = vadd.f32 %v571_v15, %v570_v58  ;;  %v5051_v54 = vld [vmem:[#allocation5 + $0x570] sm:$0xf]  ;;  %v6165_v58 = vld [vmem:[#allocation2 + $0x18] sm:$0xff] }
  0xa5   :  { %v684_v8 = vadd.f32 %v683_v22, %v682_v55  ;;  %v796_v26 = vadd.f32 %v795_v16, %v794_v61  ;;  %v908_v11 = vadd.f32 %v907_v35, %v906_v5  ;;  %v1020_v40 = vadd.f32 %v1019_v24, %v1018_v7  ;;  %v5552_v7 = vld [vmem:[#allocation5 + $0x574] sm:$0xf0]  ;;  %v5518_v24 = vld [vmem:[#allocation5 + $0x464] sm:$0xf0] }
  0xa6   :  { %v1132_v12 = vadd.f32 %v1131_v59, %v1130_v13  ;;  %v1244_v6 = vadd.f32 %v1243_v20, %v1242_v14  ;;  %v1344_v9 = vmul.f32 0.0625, %v460_v10  ;;  %v1360_v23 = vmul.f32 0.0625, %v572_v17  ;;  %v5115_v13 = vld [vmem:[#allocation5 + $0x5f0] sm:$0xf]  ;;  %v5568_v14 = vld [vmem:[#allocation5 + $0x5f4] sm:$0xf0] }
  0xa7   :  { %v1376_v44 = vmul.f32 0.0625, %v684_v8  ;;  %v1392_v45 = vmul.f32 0.0625, %v796_v26  ;;  %v1408_v50 = vmul.f32 0.0625, %v908_v11  ;;  %v1424_v30 = vmul.f32 0.0625, %v1020_v40  ;;  %v4915_v10 = vld [vmem:[#allocation5 + $0x460] sm:$0xf] }
  0xa8   :  { %v1440_v18 = vmul.f32 0.0625, %v1132_v12  ;;  %v1456_v21 = vmul.f32 0.0625, %v1244_v6  ;;  %v1752_v19 = vpack.c.bf16 %v1344_v9, %v1344_v9  ;;  %v1613_v28 = vsel %vm1599_vm0, %v1360_v23, %v1344_v9  ;;  %v6170_v59 = vld [vmem:[#allocation5 + $0x4e0] sm:$0xf]  ;;  %v6172_v20 = vld [vmem:[#allocation2 + $0x58] sm:$0xff] }
  0xa9   :  { %v1768_v51 = vpack.c.bf16 %v1360_v23, %v1360_v23  ;;  %v1784_v32 = vpack.c.bf16 %v1376_v44, %v1376_v44  ;;  %v1800_v33 = vpack.c.bf16 %v1392_v45, %v1392_v45  ;;  %v1614_v36 = vsel %vm1601_vm1, %v1376_v44, %v1613_v28  ;;  %v6174_v17 = vld [vmem:[#allocation2 + $0x98] sm:$0xff]  ;;  %v6178_v12 = vld [vmem:[#allocation5 + $0x4e4] sm:$0xf0]  ;;  %v5043_v6 = vld [vmem:[#allocation5 + $0x560] sm:$0xf] }
  0xaa   :  { %v1816_v39 = vpack.c.bf16 %v1408_v50, %v1408_v50  ;;  %v1832_v37 = vpack.c.bf16 %v1424_v30, %v1424_v30  ;;  %v1848_v60 = vpack.c.bf16 %v1440_v18, %v1440_v18  ;;  %v1615_v41 = vsel %vm1603_vm2, %v1392_v45, %v1614_v36  ;;  %v5550_v9 = vld [vmem:[#allocation5 + $0x564] sm:$0xf0] }
  0xab   :  { %v1864_v42 = vpack.c.bf16 %v1456_v21, %v1456_v21  ;;  %v2271_v0 = vunpack.c.l.b16 %v1752_v19  ;;  %v2287_v43 = vunpack.c.l.b16 %v1768_v51  ;;  %v1616_v47 = vsel %vm1605_vm3, %v1408_v50, %v1615_v41  ;;  %v5107_v50 = vld [vmem:[#allocation5 + $0x5e0] sm:$0xf]  ;;  %v6186_v51 = vld [vmem:[#allocation2 + $0x118] sm:$0xff] }
  0xac   :  { %v2303_v48 = vunpack.c.l.b16 %v1784_v32  ;;  %v2319_v49 = vunpack.c.l.b16 %v1800_v33  ;;  %v2335_v34 = vunpack.c.l.b16 %v1816_v39  ;;  %v1617_v55 = vsel %vm1607_vm4, %v1424_v30, %v1616_v47  ;;  %v5566_v30 = vld [vmem:[#allocation5 + $0x5e4] sm:$0xf0]  ;;  %v6188_v32 = vld [vmem:[#allocation2 + $0x158] sm:$0xff] }
  0xad   :  { %v2351_v61 = vunpack.c.l.b16 %v1832_v37  ;;  %v2367_v5 = vunpack.c.l.b16 %v1848_v60  ;;  %v2383_v25 = vunpack.c.l.b16 %v1864_v42  ;;  %v1618_v15 = vsel %vm1609_vm5, %v1440_v18, %v1617_v55  ;;  %v6183_v18 = vld [vmem:[#allocation2 + $0xd8] sm:$0xff] }
  0xae   :  { %v2405_v22 = vsel %vm1599_vm0, %v2287_v43, %v2271_v0  ;;  %v4612_v16 = vor.u32 %v5442_v52, %v4611_v31  ;;  %v4676_v35 = vor.u32 %v5458_v46, %v4675_v62  ;;  %v1619_v8 = vsel %vm1611_vm6, %v1456_v21, %v1618_v15  ;;  %v6190_v33 = vld [vmem:[#allocation2 + $0x198] sm:$0xff] }
  0xaf   :  { %v2406_v26 = vsel %vm1601_vm1, %v2303_v48, %v2405_v22  ;;  %v4740_v11 = vor.u32 %v5474_v29, %v4739_v38  ;;  %v4804_v40 = vor.u32 %v5490_v1, %v4803_v63  ;;  %1735 = vst [vmem:[#allocation9 + $0x8] sm:$0xff] %v1619_v8  ;;  %v4924_v44 = vor.u32 %v5520_v2, %v4923_v57  ;;  %v6196_v39 = vld [vmem:[#allocation2 + $0x1d8] sm:$0xff] }
  0xb0   :  { %v2407_v23 = vsel %vm1603_vm2, %v2319_v49, %v2406_v26  ;;  %3881 = vmatpush.bf16.msrb.mxu0 %v4612_v16  ;;  %3894 = vmatpush.bf16.msrb.mxu1 %v4676_v35  ;;  %v4988_v45 = vor.u32 %v6163_v3, %v6161_v56  ;;  %v5052_v19 = vor.u32 %v5552_v7, %v5051_v54  ;;  %v197_v31 = vunpack.c.l.bf16 %v6165_v58  ;;  %v6198_v37 = vld [vmem:[#allocation2 + $0x218] sm:$0xff] }
  0xb1   :  { %v2408_v21 = vsel %vm1605_vm3, %v2335_v34, %v2407_v23  ;;  %3907 = vmatpush.bf16.msrb.mxu2 %v4740_v11  ;;  %3920 = vmatpush.bf16.msrb.mxu3 %v4804_v40  ;;  %v5116_v28 = vor.u32 %v5568_v14, %v5115_v13  ;;  %v4916_v62 = vor.u32 %v5518_v24, %v4915_v10  ;;  %v6200_v60 = vld [vmem:[#allocation2 + $0x258] sm:$0xff]  ;;  %v213_v0 = vunpack.c.l.bf16 %v6172_v20 }
  0xb2   :  { %v2409_v52 = vsel %vm1607_vm4, %v2351_v61, %v2408_v21  ;;  %v4980_v46 = vor.u32 %v6178_v12, %v6170_v59  ;;  %v5044_v36 = vor.u32 %v5550_v9, %v5043_v6  ;;  %v5108_v29 = vor.u32 %v5566_v30, %v5107_v50  ;;  %v6203_v63 = vld [vmem:[#allocation2 + $0x298] sm:$0xff]  ;;  %v6226_v61 = vld [vmem:[#allocation2 + $0x10] sm:$0xff] }
  0xb3   :  { %v2410_v38 = vsel %vm1609_vm5, %v2367_v5, %v2409_v52  ;;  %v6205_v41 = vld [vmem:[#allocation2 + $0x2d8] sm:$0xff]  ;;  %v229_v43 = vunpack.c.l.bf16 %v6174_v17  ;;  %v245_v48 = vunpack.c.l.bf16 %v6183_v18  ;;  %v261_v49 = vunpack.c.l.bf16 %v6186_v51 }
  0xb4   :  { %3926 = vmatpush.bf16.msra.mxu0 %v4924_v44  ;;  %v6207_v42 = vld [vmem:[#allocation2 + $0x318] sm:$0xff]  ;;  %v2411_v1 = vsel %vm1611_vm6, %v2383_v25, %v2410_v38  ;;  %v277_v34 = vunpack.c.l.bf16 %v6188_v32  ;;  %v293_v3 = vunpack.c.l.bf16 %v6190_v33  ;;  %v309_v54 = vunpack.c.l.bf16 %v6196_v39 }
  0xb5   :  { %3952 = vmatpush.bf16.msra.mxu2 %v5052_v19  ;;  %3965 = vmatpush.bf16.msra.mxu3 %v5116_v28  ;;  %v6212_v57 = vld [vmem:[#allocation2 + $0x358] sm:$0xff]  ;;  %v6221_v56 = vpack.c.b16 %v2411_v1, %v2411_v1  ;;  %v325_v55 = vunpack.c.l.bf16 %v6198_v37  ;;  %v341_v5 = vunpack.c.l.bf16 %v6200_v60  ;;  %v357_v25 = vunpack.c.l.bf16 %v6203_v63 }
  0xb6   :  { %v6214_v2 = vld [vmem:[#allocation2 + $0x398] sm:$0xff]  ;;  %v373_v7 = vunpack.c.l.bf16 %v6205_v41  ;;  %v389_v13 = vunpack.c.l.bf16 %v6207_v42  ;;  %v405_v14 = vunpack.c.l.bf16 %v6212_v57  ;;  %v489_v16 = vadd.f32 %v213_v0, %v197_v31 }
  0xb7   :  { %v6216_v47 = vld [vmem:[#allocation2 + $0x3d8] sm:$0xff]  ;;  %7312 = vst [vmem:[#allocation17_spill] sm:$0xff] %v6221_v56  ;;  %3843 = vmatmul.bf16.vlgmr.msra.gmra.mxu1 %v6221_v56  ;;  %v421_v15 = vunpack.c.l.bf16 %v6214_v2  ;;  %v601_v35 = vadd.f32 %v245_v48, %v229_v43  ;;  %v713_v10 = vadd.f32 %v277_v34, %v261_v49  ;;  %v825_v24 = vadd.f32 %v309_v54, %v293_v3 }
  0xb8   :  { %3927 = vmatpush.bf16.msra.mxu0 %v4916_v62  ;;  %v437_v22 = vunpack.c.l.bf16 %v6216_v47  ;;  %3939 = vmatpush.bf16.msra.mxu1 %v4988_v45  ;;  %v195_v59 = vunpack.c.l.bf16 %v6226_v61  ;;  %v490_v8 = vrot.slane %v489_v16, 4  ;;  %v937_v26 = vadd.f32 %v341_v5, %v325_v55 }
  0xb9   :  { %3953 = vmatpush.bf16.msra.mxu2 %v5044_v36  ;;  %3966 = vmatpush.bf16.msra.mxu3 %v5108_v29  ;;  %v1049_v11 = vadd.f32 %v373_v7, %v357_v25  ;;  %v1161_v40 = vadd.f32 %v405_v14, %v389_v13  ;;  %v602_v12 = vrot.slane %v601_v35, 4  ;;  %v714_v6 = vrot.slane %v713_v10, 4 }
  0xba   :  { %v826_v9 = vrot.slane %v825_v24, 4  ;;  %v1273_v23 = vadd.f32 %v437_v22, %v421_v15  ;;  %v491_v44 = vadd.f32 %v490_v8, %v489_v16  ;;  %v938_v50 = vrot.slane %v937_v26, 4 }
  0xbb   :  { %v1050_v30 = vrot.slane %v1049_v11, 4  ;;  %v1162_v21 = vrot.slane %v1161_v40, 4  ;;  %v603_v45 = vadd.f32 %v602_v12, %v601_v35  ;;  %v715_v19 = vadd.f32 %v714_v6, %v713_v10 }
  0xbc   :  { %3940 = vmatpush.bf16.msra.mxu1 %v4980_v46  ;;  %v827_v28 = vadd.f32 %v826_v9, %v825_v24  ;;  %v1274_v31 = vrot.slane %v1273_v23, 4  ;;  %v492_v52 = vrot.slane %v491_v44, 2  ;;  %v939_v62 = vadd.f32 %v938_v50, %v937_v26 }
  0xbd   :  { %v1051_v36 = vadd.f32 %v1050_v30, %v1049_v11  ;;  %v1163_v38 = vadd.f32 %v1162_v21, %v1161_v40  ;;  %v604_v29 = vrot.slane %v603_v45, 2  ;;  %v716_v0 = vrot.slane %v715_v19, 2 }
  0xbe   :  { %v828_v43 = vrot.slane %v827_v28, 2  ;;  %v1275_v1 = vadd.f32 %v1274_v31, %v1273_v23  ;;  %v493_v48 = vadd.f32 %v492_v52, %v491_v44  ;;  %v940_v49 = vrot.slane %v939_v62, 2 }
  0xbf   :  { %v1052_v34 = vrot.slane %v1051_v36, 2  ;;  %v1164_v3 = vrot.slane %v1163_v38, 2  ;;  %v605_v54 = vadd.f32 %v604_v29, %v603_v45  ;;  %v717_v55 = vadd.f32 %v716_v0, %v715_v19 }
  0xc0   :  { %v829_v5 = vadd.f32 %v828_v43, %v827_v28  ;;  %v1276_v46 = vrot.slane %v1275_v1, 2  ;;  %v494_v25 = vrot.slane %v493_v48, 1  ;;  %v941_v7 = vadd.f32 %v940_v49, %v939_v62 }
  0xc1   :  { %v1053_v13 = vadd.f32 %v1052_v34, %v1051_v36  ;;  %v1165_v14 = vadd.f32 %v1164_v3, %v1163_v38  ;;  %v606_v15 = vrot.slane %v605_v54, 1  ;;  %v718_v22 = vrot.slane %v717_v55, 1 }
  0xc2   :  { %v830_v16 = vrot.slane %v829_v5, 1  ;;  %v1277_v35 = vadd.f32 %v1276_v46, %v1275_v1  ;;  %v495_v10 = vadd.f32 %v494_v25, %v493_v48  ;;  %v942_v24 = vrot.slane %v941_v7, 1  ;;  %v5516_v46 = vld [vmem:[#allocation5 + $0x454] sm:$0xf0]  ;;  %v4971_v25 = vld [vmem:[#allocation5 + $0x4d0] sm:$0xf] }
  0xc3   :  { %v1054_v8 = vrot.slane %v1053_v13, 1  ;;  %v1166_v26 = vrot.slane %v1165_v14, 1  ;;  %v607_v11 = vadd.f32 %v606_v15, %v605_v54  ;;  %v719_v40 = vadd.f32 %v718_v22, %v717_v55 }
  0xc4   :  { %v831_v12 = vadd.f32 %v830_v16, %v829_v5  ;;  %v1278_v6 = vrot.slane %v1277_v35, 1  ;;  %v943_v9 = vadd.f32 %v942_v24, %v941_v7  ;;  %v1349_v50 = vmul.f32 0.0625, %v495_v10  ;;  %v4907_v5 = vld [vmem:[#allocation5 + $0x450] sm:$0xf]  ;;  %v5532_v16 = vld [vmem:[#allocation5 + $0x4d4] sm:$0xf0] }
  0xc5   :  { %v1055_v23 = vadd.f32 %v1054_v8, %v1053_v13  ;;  %v1167_v44 = vadd.f32 %v1166_v26, %v1165_v14  ;;  %v1365_v21 = vmul.f32 0.0625, %v607_v11  ;;  %v1381_v45 = vmul.f32 0.0625, %v719_v40  ;;  %v6240_v7 = vld [vmem:[#allocation2 + $0x50] sm:$0xff]  ;;  %v5548_v10 = vld [vmem:[#allocation5 + $0x554] sm:$0xf0] }
  0xc6   :  { %v1279_v30 = vadd.f32 %v1278_v6, %v1277_v35  ;;  %v1397_v19 = vmul.f32 0.0625, %v831_v12  ;;  %v1413_v28 = vmul.f32 0.0625, %v943_v9  ;;  %v1757_v62 = vpack.c.bf16 %v1349_v50, %v1349_v50  ;;  %v5035_v35 = vld [vmem:[#allocation5 + $0x550] sm:$0xf]  ;;  %v5564_v12 = vld [vmem:[#allocation5 + $0x5d4] sm:$0xf0] }
  0xc7   :  { %v1429_v31 = vmul.f32 0.0625, %v1055_v23  ;;  %v1445_v52 = vmul.f32 0.0625, %v1167_v44  ;;  %v1648_v38 = vsel %vm1599_vm0, %v1365_v21, %v1349_v50  ;;  %v1773_v29 = vpack.c.bf16 %v1365_v21, %v1365_v21  ;;  %v5099_v40 = vld [vmem:[#allocation5 + $0x5d0] sm:$0xf] }
  0xc8   :  { %v1461_v36 = vmul.f32 0.0625, %v1279_v30  ;;  %v1789_v0 = vpack.c.bf16 %v1381_v45, %v1381_v45  ;;  %v1649_v43 = vsel %vm1601_vm1, %v1381_v45, %v1648_v38  ;;  %v1805_v1 = vpack.c.bf16 %v1397_v19, %v1397_v19  ;;  %v6244_v6 = vld [vmem:[#allocation2 + $0x90] sm:$0xff] }
  0xc9   :  { %v1821_v48 = vpack.c.bf16 %v1413_v28, %v1413_v28  ;;  %v1837_v49 = vpack.c.bf16 %v1429_v31, %v1429_v31  ;;  %v1650_v34 = vsel %vm1603_vm2, %v1397_v19, %v1649_v43  ;;  %v1853_v3 = vpack.c.bf16 %v1445_v52, %v1445_v52  ;;  %v6248_v30 = vld [vmem:[#allocation2 + $0xd0] sm:$0xff] }
  0xca   :  { %v1869_v54 = vpack.c.bf16 %v1461_v36, %v1461_v36  ;;  %v2276_v55 = vunpack.c.l.b16 %v1757_v62  ;;  %v1651_v13 = vsel %vm1605_vm3, %v1413_v28, %v1650_v34  ;;  %v2292_v14 = vunpack.c.l.b16 %v1773_v29  ;;  %v6250_v21 = vld [vmem:[#allocation2 + $0x110] sm:$0xff] }
  0xcb   :  { %v2308_v15 = vunpack.c.l.b16 %v1789_v0  ;;  %v2324_v22 = vunpack.c.l.b16 %v1805_v1  ;;  %v1652_v24 = vsel %vm1607_vm4, %v1429_v31, %v1651_v13  ;;  %v2340_v8 = vunpack.c.l.b16 %v1821_v48  ;;  %v6252_v45 = vld [vmem:[#allocation2 + $0x150] sm:$0xff] }
  0xcc   :  { %v2356_v26 = vunpack.c.l.b16 %v1837_v49  ;;  %v2372_v11 = vunpack.c.l.b16 %v1853_v3  ;;  %v1653_v9 = vsel %vm1609_vm5, %v1445_v52, %v1652_v24  ;;  %v2388_v23 = vunpack.c.l.b16 %v1869_v54  ;;  %v6256_v38 = vld [vmem:[#allocation2 + $0x190] sm:$0xff] }
  0xcd   :  { %v2440_v44 = vsel %vm1599_vm0, %v2292_v14, %v2276_v55  ;;  %v4908_v50 = vor.u32 %v5516_v46, %v4907_v5  ;;  %v1654_v19 = vsel %vm1611_vm6, %v1461_v36, %v1653_v9  ;;  %v4972_v31 = vor.u32 %v5532_v16, %v4971_v25  ;;  %v6258_v29 = vld [vmem:[#allocation2 + $0x1d0] sm:$0xff] }
  0xce   :  { %v2441_v28 = vsel %vm1601_vm1, %v2308_v15, %v2440_v44  ;;  %v5036_v62 = vor.u32 %v5548_v10, %v5035_v35  ;;  %v6260_v52 = vld [vmem:[#allocation2 + $0x210] sm:$0xff]  ;;  %1740 = vst [vmem:[#allocation9 + $0x30] sm:$0xff] %v1654_v19  ;;  %v5100_v43 = vor.u32 %v5564_v12, %v5099_v40  ;;  %v211_v49 = vunpack.c.l.bf16 %v6240_v7 }
  0xcf   :  { %v2442_v0 = vsel %vm1603_vm2, %v2324_v22, %v2441_v28  ;;  %3928 = vmatpush.bf16.msra.mxu0 %v4908_v50  ;;  %v6263_v1 = vld [vmem:[#allocation2 + $0x250] sm:$0xff]  ;;  %v227_v34 = vunpack.c.l.bf16 %v6244_v6  ;;  %3941 = vmatpush.bf16.msra.mxu1 %v4972_v31  ;;  %v243_v46 = vunpack.c.l.bf16 %v6248_v30  ;;  %v259_v25 = vunpack.c.l.bf16 %v6250_v21 }
  0xd0   :  { %v6265_v48 = vld [vmem:[#allocation2 + $0x290] sm:$0xff]  ;;  %v2443_v3 = vsel %vm1605_vm3, %v2340_v8, %v2442_v0  ;;  %3954 = vmatpush.bf16.msra.mxu2 %v5036_v62  ;;  %v275_v13 = vunpack.c.l.bf16 %v6252_v45  ;;  %3967 = vmatpush.bf16.msra.mxu3 %v5100_v43  ;;  %v291_v22 = vunpack.c.l.bf16 %v6256_v38  ;;  %v307_v16 = vunpack.c.l.bf16 %v6258_v29 }
  0xd1   :  { %v6267_v36 = vld [vmem:[#allocation2 + $0x2d0] sm:$0xff]  ;;  %v2444_v14 = vsel %vm1607_vm4, %v2356_v26, %v2443_v3  ;;  %v323_v35 = vunpack.c.l.bf16 %v6260_v52  ;;  %v339_v24 = vunpack.c.l.bf16 %v6263_v1  ;;  %v355_v8 = vunpack.c.l.bf16 %v6265_v48 }
  0xd2   :  { %v6272_v54 = vld [vmem:[#allocation2 + $0x310] sm:$0xff]  ;;  %v2445_v10 = vsel %vm1609_vm5, %v2372_v11, %v2444_v14  ;;  %v371_v40 = vunpack.c.l.bf16 %v6267_v36  ;;  %v475_v11 = vadd.f32 %v211_v49, %v195_v59  ;;  %v587_v28 = vadd.f32 %v243_v46, %v227_v34 }
  0xd3   :  { %v6274_v55 = vld [vmem:[#allocation2 + $0x350] sm:$0xff]  ;;  %v2446_v12 = vsel %vm1611_vm6, %v2388_v23, %v2445_v10  ;;  %v387_v26 = vunpack.c.l.bf16 %v6272_v54  ;;  %v699_v31 = vadd.f32 %v275_v13, %v259_v25  ;;  %v811_v62 = vadd.f32 %v307_v16, %v291_v22 }
  0xd4   :  { %7313 = vst [vmem:[#allocation18_spill] sm:$0xff] %v6274_v55  ;;  %v6276_v5 = vld [vmem:[#allocation2 + $0x390] sm:$0xff]  ;;  %v403_v9 = vunpack.c.l.bf16 %v6274_v55  ;;  %v6295_v50 = vpack.c.b16 %v2446_v12, %v2446_v12  ;;  %v923_v0 = vadd.f32 %v339_v24, %v323_v35  ;;  %v1035_v43 = vadd.f32 %v371_v40, %v355_v8 }
  0xd5   :  { %7314 = vst [vmem:[#allocation20_spill] sm:$0xff] %v6276_v5  ;;  %v6282_v15 = vld [vmem:[#allocation2 + $0x3d0] sm:$0xff]  ;;  %v419_v44 = vunpack.c.l.bf16 %v6276_v5  ;;  %v476_v23 = vrot.slane %v475_v11, 4  ;;  %v588_v3 = vrot.slane %v587_v28, 4  ;;  %v700_v56 = vrot.slane %v699_v31, 4 }
  0xd6   :  { %7315 = vst [vmem:[#allocation21_spill] sm:$0xff] %v6282_v15  ;;  %v435_v19 = vunpack.c.l.bf16 %v6282_v15  ;;  %3908 = vmatmul.bf16.vlgmr.msrb.gmra.mxu2 %v6295_v50  ;;  %v1147_v14 = vadd.f32 %v403_v9, %v387_v26  ;;  %v812_v27 = vrot.slane %v811_v62, 4  ;;  %v924_v12 = vrot.slane %v923_v0, 4 }
  0xd7   :  { %7316 = vst [vmem:[#allocation22_spill] sm:$0xff] %v6295_v50  ;;  %v1036_v53 = vrot.slane %v1035_v43, 4  ;;  %v477_v4 = vadd.f32 %v476_v23, %v475_v11  ;;  %v589_v15 = vadd.f32 %v588_v3, %v587_v28  ;;  %v701_v59 = vadd.f32 %v700_v56, %v699_v31 }
  0xd8   :  { %v1259_v10 = vadd.f32 %v435_v19, %v419_v44  ;;  %v1148_v5 = vrot.slane %v1147_v14, 4  ;;  %v813_v49 = vadd.f32 %v812_v27, %v811_v62  ;;  %v925_v34 = vadd.f32 %v924_v12, %v923_v0 }
  0xd9   :  { %v1037_v46 = vadd.f32 %v1036_v53, %v1035_v43  ;;  %v478_v25 = vrot.slane %v477_v4, 2  ;;  %v590_v13 = vrot.slane %v589_v15, 2  ;;  %v702_v35 = vrot.slane %v701_v59, 2 }
  0xda   :  { %v1260_v55 = vrot.slane %v1259_v10, 4  ;;  %v1149_v22 = vadd.f32 %v1148_v5, %v1147_v14  ;;  %v814_v24 = vrot.slane %v813_v49, 2  ;;  %v926_v8 = vrot.slane %v925_v34, 2 }
  0xdb   :  { %v1038_v40 = vrot.slane %v1037_v46, 2  ;;  %v479_v26 = vadd.f32 %v478_v25, %v477_v4  ;;  %v591_v9 = vadd.f32 %v590_v13, %v589_v15  ;;  %v703_v11 = vadd.f32 %v702_v35, %v701_v59 }
  0xdc   :  { %v1261_v16 = vadd.f32 %v1260_v55, %v1259_v10  ;;  %v1150_v44 = vrot.slane %v1149_v22, 2  ;;  %v815_v28 = vadd.f32 %v814_v24, %v813_v49  ;;  %v927_v23 = vadd.f32 %v926_v8, %v925_v34 }
  0xdd   :  { %v1039_v3 = vadd.f32 %v1038_v40, %v1037_v46  ;;  %v480_v56 = vrot.slane %v479_v26, 1  ;;  %v592_v27 = vrot.slane %v591_v9, 1  ;;  %v704_v62 = vrot.slane %v703_v11, 1 }
  0xde   :  { %v1262_v19 = vrot.slane %v1261_v16, 2  ;;  %v1151_v31 = vadd.f32 %v1150_v44, %v1149_v22  ;;  %v816_v0 = vrot.slane %v815_v28, 1  ;;  %v928_v5 = vrot.slane %v927_v23, 1 }
  0xdf   :  { %v1040_v55 = vrot.slane %v1039_v3, 1  ;;  %v481_v43 = vadd.f32 %v480_v56, %v479_v26  ;;  %v593_v14 = vadd.f32 %v592_v27, %v591_v9  ;;  %v705_v4 = vadd.f32 %v704_v62, %v703_v11 }
  0xe0   :  { %v1263_v53 = vadd.f32 %v1262_v19, %v1261_v16  ;;  %v1152_v10 = vrot.slane %v1151_v31, 1  ;;  %v817_v15 = vadd.f32 %v816_v0, %v815_v28  ;;  %v929_v25 = vadd.f32 %v928_v5, %v927_v23 }
  0xe1   :  { %v1041_v13 = vadd.f32 %v1040_v55, %v1039_v3  ;;  %v1347_v34 = vmul.f32 0.0625, %v481_v43  ;;  %v1363_v46 = vmul.f32 0.0625, %v593_v14  ;;  %v1379_v35 = vmul.f32 0.0625, %v705_v4 }
  0xe2   :  { %v1264_v12 = vrot.slane %v1263_v53, 1  ;;  %v1153_v59 = vadd.f32 %v1152_v10, %v1151_v31  ;;  %v1395_v24 = vmul.f32 0.0625, %v817_v15  ;;  %v1411_v22 = vmul.f32 0.0625, %v929_v25 }
  0xe3   :  { %v1427_v16 = vmul.f32 0.0625, %v1041_v13  ;;  %v1634_v44 = vsel %vm1599_vm0, %v1363_v46, %v1347_v34  ;;  %v1755_v26 = vpack.c.bf16 %v1347_v34, %v1347_v34  ;;  %v1771_v19 = vpack.c.bf16 %v1363_v46, %v1363_v46 }
  0xe4   :  { %v1265_v49 = vadd.f32 %v1264_v12, %v1263_v53  ;;  %v1443_v8 = vmul.f32 0.0625, %v1153_v59  ;;  %v1635_v9 = vsel %vm1601_vm1, %v1379_v35, %v1634_v44  ;;  %v1787_v11 = vpack.c.bf16 %v1379_v35, %v1379_v35 }
  0xe5   :  { %v1803_v28 = vpack.c.bf16 %v1395_v24, %v1395_v24  ;;  %v1636_v23 = vsel %vm1603_vm2, %v1395_v24, %v1635_v9  ;;  %v1819_v3 = vpack.c.bf16 %v1411_v22, %v1411_v22  ;;  %v1835_v56 = vpack.c.bf16 %v1427_v16, %v1427_v16 }
  0xe6   :  { %v1459_v40 = vmul.f32 0.0625, %v1265_v49  ;;  %v1851_v27 = vpack.c.bf16 %v1443_v8, %v1443_v8  ;;  %v1637_v31 = vsel %vm1605_vm3, %v1411_v22, %v1636_v23  ;;  %v2274_v62 = vunpack.c.l.b16 %v1755_v26 }
  0xe7   :  { %v2290_v0 = vunpack.c.l.b16 %v1771_v19  ;;  %v1638_v5 = vsel %vm1607_vm4, %v1427_v16, %v1637_v31  ;;  %v2306_v55 = vunpack.c.l.b16 %v1787_v11  ;;  %v2322_v43 = vunpack.c.l.b16 %v1803_v28 }
  0xe8   :  { %v1867_v53 = vpack.c.bf16 %v1459_v40, %v1459_v40  ;;  %v2338_v14 = vunpack.c.l.b16 %v1819_v3  ;;  %v1639_v10 = vsel %vm1609_vm5, %v1443_v8, %v1638_v5  ;;  %v2354_v12 = vunpack.c.l.b16 %v1835_v56 }
  0xe9   :  { %v2370_v4 = vunpack.c.l.b16 %v1851_v27  ;;  %v1640_v25 = vsel %vm1611_vm6, %v1459_v40, %v1639_v10  ;;  %v2426_v13 = vsel %vm1599_vm0, %v2290_v0, %v2274_v62  ;;  %v198_v59 = vunpack.c.h.bf16 %v6165_v58 }
  0xea   :  { %v2386_v15 = vunpack.c.l.b16 %v1867_v53  ;;  %v214_v49 = vunpack.c.h.bf16 %v6172_v20  ;;  %1738 = vst [vmem:[#allocation9 + $0x20] sm:$0xff] %v1640_v25  ;;  %v2427_v34 = vsel %vm1601_vm1, %v2306_v55, %v2426_v13  ;;  %v230_v46 = vunpack.c.h.bf16 %v6174_v17 }
  0xeb   :  { %v246_v35 = vunpack.c.h.bf16 %v6183_v18  ;;  %v262_v24 = vunpack.c.h.bf16 %v6186_v51  ;;  %v2428_v22 = vsel %vm1603_vm2, %v2322_v43, %v2427_v34  ;;  %v278_v16 = vunpack.c.h.bf16 %v6188_v32 }
  0xec   :  { %v294_v8 = vunpack.c.h.bf16 %v6190_v33  ;;  %v310_v40 = vunpack.c.h.bf16 %v6196_v39  ;;  %v2429_v58 = vsel %vm1605_vm3, %v2338_v14, %v2428_v22  ;;  %v326_v20 = vunpack.c.h.bf16 %v6198_v37 }
  0xed   :  { %v342_v44 = vunpack.c.h.bf16 %v6200_v60  ;;  %v358_v17 = vunpack.c.h.bf16 %v6203_v63  ;;  %v2430_v18 = vsel %vm1607_vm4, %v2354_v12, %v2429_v58  ;;  %v374_v51 = vunpack.c.h.bf16 %v6205_v41 }
  0xee   :  { %v390_v26 = vunpack.c.h.bf16 %v6207_v42  ;;  %v406_v32 = vunpack.c.h.bf16 %v6212_v57  ;;  %v2431_v33 = vsel %vm1609_vm5, %v2370_v4, %v2430_v18  ;;  %v422_v39 = vunpack.c.h.bf16 %v6214_v2 }
  0xef   :  { %v438_v9 = vunpack.c.h.bf16 %v6216_v47  ;;  %v496_v19 = vadd.f32 %v214_v49, %v198_v59  ;;  %v2432_v37 = vsel %vm1611_vm6, %v2386_v15, %v2431_v33  ;;  %v608_v60 = vadd.f32 %v246_v35, %v230_v46 }
  0xf0   :  { %v720_v11 = vadd.f32 %v278_v16, %v262_v24  ;;  %v832_v63 = vadd.f32 %v310_v40, %v294_v8  ;;  %v6331_v28 = vpack.c.b16 %v2432_v37, %v2432_v37  ;;  %v944_v41 = vadd.f32 %v342_v44, %v326_v20 }
  0xf1   :  { %v497_v23 = vrot.slane %v496_v19, 4  ;;  %v1056_v3 = vadd.f32 %v374_v51, %v358_v17  ;;  %v609_v42 = vrot.slane %v608_v60, 4  ;;  %v1168_v27 = vadd.f32 %v406_v32, %v390_v26 }
  0xf2   :  { %7317 = vst [vmem:[#allocation23_spill] sm:$0xff] %v6331_v28  ;;  %v721_v56 = vrot.slane %v720_v11, 4  ;;  %v833_v57 = vrot.slane %v832_v63, 4  ;;  %3882 = vmatmul.bf16.vlgmr.msrb.gmra.mxu0 %v6331_v28  ;;  %v945_v31 = vrot.slane %v944_v41, 4  ;;  %v1280_v53 = vadd.f32 %v438_v9, %v422_v39 }
  0xf3   :  { %v498_v2 = vadd.f32 %v497_v23, %v496_v19  ;;  %v1057_v47 = vrot.slane %v1056_v3, 4  ;;  %v610_v62 = vadd.f32 %v609_v42, %v608_v60  ;;  %v1169_v55 = vrot.slane %v1168_v27, 4 }
  0xf4   :  { %v722_v0 = vadd.f32 %v721_v56, %v720_v11  ;;  %v834_v5 = vadd.f32 %v833_v57, %v832_v63  ;;  %v946_v14 = vadd.f32 %v945_v31, %v944_v41  ;;  %v1281_v12 = vrot.slane %v1280_v53, 4 }
  0xf5   :  { %v499_v43 = vrot.slane %v498_v2, 2  ;;  %v1058_v10 = vadd.f32 %v1057_v47, %v1056_v3  ;;  %v611_v4 = vrot.slane %v610_v62, 2  ;;  %v1170_v13 = vadd.f32 %v1169_v55, %v1168_v27 }
  0xf6   :  { %v723_v15 = vrot.slane %v722_v0, 2  ;;  %v835_v25 = vrot.slane %v834_v5, 2  ;;  %v947_v49 = vrot.slane %v946_v14, 2  ;;  %v1282_v46 = vadd.f32 %v1281_v12, %v1280_v53 }
  0xf7   :  { %v500_v59 = vadd.f32 %v499_v43, %v498_v2  ;;  %v1059_v34 = vrot.slane %v1058_v10, 2  ;;  %v612_v35 = vadd.f32 %v611_v4, %v610_v62  ;;  %v1171_v16 = vrot.slane %v1170_v13, 2 }
  0xf8   :  { %v724_v24 = vadd.f32 %v723_v15, %v722_v0  ;;  %v836_v22 = vadd.f32 %v835_v25, %v834_v5  ;;  %v948_v40 = vadd.f32 %v947_v49, %v946_v14  ;;  %v1283_v20 = vrot.slane %v1282_v46, 2 }
  0xf9   :  { %v501_v8 = vrot.slane %v500_v59, 1  ;;  %v1060_v58 = vadd.f32 %v1059_v34, %v1058_v10  ;;  %v613_v44 = vrot.slane %v612_v35, 1  ;;  %v1172_v51 = vadd.f32 %v1171_v16, %v1170_v13 }
  0xfa   :  { %v725_v17 = vrot.slane %v724_v24, 1  ;;  %v837_v18 = vrot.slane %v836_v22, 1  ;;  %v949_v32 = vrot.slane %v948_v40, 1  ;;  %v1284_v39 = vadd.f32 %v1283_v20, %v1282_v46 }
  0xfb   :  { %v502_v26 = vadd.f32 %v501_v8, %v500_v59  ;;  %v1061_v33 = vrot.slane %v1060_v58, 1  ;;  %v614_v9 = vadd.f32 %v613_v44, %v612_v35  ;;  %v1173_v60 = vrot.slane %v1172_v51, 1 }
  0xfc   :  { %v726_v19 = vadd.f32 %v725_v17, %v724_v24  ;;  %v838_v37 = vadd.f32 %v837_v18, %v836_v22  ;;  %v950_v11 = vadd.f32 %v949_v32, %v948_v40  ;;  %v1285_v23 = vrot.slane %v1284_v39, 1 }
  0xfd   :  { %v1062_v63 = vadd.f32 %v1061_v33, %v1060_v58  ;;  %v1350_v41 = vmul.f32 0.0625, %v502_v26  ;;  %v1174_v3 = vadd.f32 %v1173_v60, %v1172_v51  ;;  %v1366_v42 = vmul.f32 0.0625, %v614_v9 }
  0xfe   :  { %v1382_v56 = vmul.f32 0.0625, %v726_v19  ;;  %v1398_v57 = vmul.f32 0.0625, %v838_v37  ;;  %v1286_v27 = vadd.f32 %v1285_v23, %v1284_v39  ;;  %v1414_v2 = vmul.f32 0.0625, %v950_v11  ;;  %v7319_v23 = vld [vmem:[#allocation20_spill] sm:$0xff] }
  0xff   :  { %v1430_v31 = vmul.f32 0.0625, %v1062_v63  ;;  %v1758_v47 = vpack.c.bf16 %v1350_v41, %v1350_v41  ;;  %v1446_v53 = vmul.f32 0.0625, %v1174_v3  ;;  %v1655_v62 = vsel %vm1599_vm0, %v1366_v42, %v1350_v41  ;;  %v7318_v63 = vld [vmem:[#allocation18_spill] sm:$0xff]  ;;  %v7320_v41 = vld [vmem:[#allocation21_spill] sm:$0xff] }
 0x100   :  { %v1774_v0 = vpack.c.bf16 %v1366_v42, %v1366_v42  ;;  %v1790_v5 = vpack.c.bf16 %v1382_v56, %v1382_v56  ;;  %v1462_v55 = vmul.f32 0.0625, %v1286_v27  ;;  %v1656_v43 = vsel %vm1601_vm1, %v1382_v56, %v1655_v62 }
 0x101   :  { %v1806_v14 = vpack.c.bf16 %v1398_v57, %v1398_v57  ;;  %v1822_v10 = vpack.c.bf16 %v1414_v2, %v1414_v2  ;;  %v1657_v12 = vsel %vm1603_vm2, %v1398_v57, %v1656_v43  ;;  %v1838_v4 = vpack.c.bf16 %v1430_v31, %v1430_v31 }
 0x102   :  { %v1854_v15 = vpack.c.bf16 %v1446_v53, %v1446_v53  ;;  %v2277_v25 = vunpack.c.l.b16 %v1758_v47  ;;  %v1658_v13 = vsel %vm1605_vm3, %v1414_v2, %v1657_v12  ;;  %v1870_v59 = vpack.c.bf16 %v1462_v55, %v1462_v55 }
 0x103   :  { %v2293_v49 = vunpack.c.l.b16 %v1774_v0  ;;  %v2309_v34 = vunpack.c.l.b16 %v1790_v5  ;;  %v1659_v46 = vsel %vm1607_vm4, %v1430_v31, %v1658_v13  ;;  %v2325_v35 = vunpack.c.l.b16 %v1806_v14 }
 0x104   :  { %v2341_v24 = vunpack.c.l.b16 %v1822_v10  ;;  %v2357_v22 = vunpack.c.l.b16 %v1838_v4  ;;  %v1660_v16 = vsel %vm1609_vm5, %v1446_v53, %v1659_v46  ;;  %v2373_v8 = vunpack.c.l.b16 %v1854_v15 }
 0x105   :  { %v2389_v40 = vunpack.c.l.b16 %v1870_v59  ;;  %v2447_v58 = vsel %vm1599_vm0, %v2293_v49, %v2277_v25  ;;  %v1661_v20 = vsel %vm1611_vm6, %v1462_v55, %v1660_v16  ;;  %v196_v17 = vunpack.c.h.bf16 %v6226_v61 }
 0x106   :  { %v2448_v44 = vsel %vm1601_vm1, %v2309_v34, %v2447_v58  ;;  %v212_v18 = vunpack.c.h.bf16 %v6240_v7  ;;  %1741 = vst [vmem:[#allocation9 + $0x38] sm:$0xff] %v1661_v20  ;;  %v228_v26 = vunpack.c.h.bf16 %v6244_v6  ;;  %v244_v32 = vunpack.c.h.bf16 %v6248_v30 }
 0x107   :  { %v2449_v51 = vsel %vm1603_vm2, %v2325_v35, %v2448_v44  ;;  %v260_v33 = vunpack.c.h.bf16 %v6250_v21  ;;  %v276_v9 = vunpack.c.h.bf16 %v6252_v45  ;;  %v292_v19 = vunpack.c.h.bf16 %v6256_v38 }
 0x108   :  { %v2450_v39 = vsel %vm1605_vm3, %v2341_v24, %v2449_v51  ;;  %v308_v37 = vunpack.c.h.bf16 %v6258_v29  ;;  %v324_v7 = vunpack.c.h.bf16 %v6260_v52  ;;  %v340_v60 = vunpack.c.h.bf16 %v6263_v1 }
 0x109   :  { %v2451_v61 = vsel %vm1607_vm4, %v2357_v22, %v2450_v39  ;;  %v356_v6 = vunpack.c.h.bf16 %v6265_v48  ;;  %v372_v21 = vunpack.c.h.bf16 %v6267_v36  ;;  %v388_v11 = vunpack.c.h.bf16 %v6272_v54 }
 0x10a   :  { %v2452_v30 = vsel %vm1609_vm5, %v2373_v8, %v2451_v61  ;;  %v404_v45 = vunpack.c.h.bf16 %v7318_v63  ;;  %v420_v29 = vunpack.c.h.bf16 %v7319_v23  ;;  %v436_v3 = vunpack.c.h.bf16 %v7320_v41 }
 0x10b   :  { %v2453_v38 = vsel %vm1611_vm6, %v2389_v40, %v2452_v30  ;;  %v482_v42 = vadd.f32 %v212_v18, %v196_v17  ;;  %v594_v1 = vadd.f32 %v244_v32, %v228_v26  ;;  %v706_v56 = vadd.f32 %v276_v9, %v260_v33 }
 0x10c   :  { %v6364_v52 = vpack.c.b16 %v2453_v38, %v2453_v38  ;;  %v818_v48 = vadd.f32 %v308_v37, %v292_v19  ;;  %v930_v27 = vadd.f32 %v340_v60, %v324_v7  ;;  %v1042_v2 = vadd.f32 %v372_v21, %v356_v6 }
 0x10d   :  { %v483_v57 = vrot.slane %v482_v42, 4  ;;  %v1154_v36 = vadd.f32 %v404_v45, %v388_v11  ;;  %v595_v54 = vrot.slane %v594_v1, 4  ;;  %v707_v31 = vrot.slane %v706_v56, 4 }
 0x10e   :  { %7321 = vst [vmem:[#allocation18_spill] sm:$0xff] %v6364_v52  ;;  %3921 = vmatmul.bf16.vlgmr.msrb.gmra.mxu3 %v6364_v52  ;;  %v819_v47 = vrot.slane %v818_v48, 4  ;;  %v1266_v53 = vadd.f32 %v436_v3, %v420_v29  ;;  %v931_v0 = vrot.slane %v930_v27, 4  ;;  %v1043_v5 = vrot.slane %v1042_v2, 4 }
 0x10f   :  { %v484_v62 = vadd.f32 %v483_v57, %v482_v42  ;;  %v1155_v55 = vrot.slane %v1154_v36, 4  ;;  %v596_v43 = vadd.f32 %v595_v54, %v594_v1  ;;  %v708_v14 = vadd.f32 %v707_v31, %v706_v56  ;;  %v5514_v54 = vld [vmem:[#allocation5 + $0x444] sm:$0xf0] }
 0x110   :  { %v820_v10 = vadd.f32 %v819_v47, %v818_v48  ;;  %v1267_v12 = vrot.slane %v1266_v53, 4  ;;  %v932_v15 = vadd.f32 %v931_v0, %v930_v27  ;;  %v1044_v25 = vadd.f32 %v1043_v5, %v1042_v2  ;;  %v6369_v0 = vld [vmem:[#allocation5 + $0x4c0] sm:$0xf]  ;;  %v6371_v5 = vld [vmem:[#allocation5 + $0x4c4] sm:$0xf0] }
 0x111   :  { %v485_v4 = vrot.slane %v484_v62, 2  ;;  %v1156_v13 = vadd.f32 %v1155_v55, %v1154_v36  ;;  %v597_v59 = vrot.slane %v596_v43, 2  ;;  %v709_v49 = vrot.slane %v708_v14, 2  ;;  %v4899_v36 = vld [vmem:[#allocation5 + $0x440] sm:$0xf] }
 0x112   :  { %v821_v34 = vrot.slane %v820_v10, 2  ;;  %v1268_v46 = vadd.f32 %v1267_v12, %v1266_v53  ;;  %v933_v24 = vrot.slane %v932_v15, 2  ;;  %v1045_v22 = vrot.slane %v1044_v25, 2  ;;  %v6373_v55 = vld [vmem:[#allocation5 + $0x540] sm:$0xf] }
 0x113   :  { %v486_v35 = vadd.f32 %v485_v4, %v484_v62  ;;  %v1157_v16 = vrot.slane %v1156_v13, 2  ;;  %v598_v8 = vadd.f32 %v597_v59, %v596_v43  ;;  %v710_v40 = vadd.f32 %v709_v49, %v708_v14  ;;  %v5546_v43 = vld [vmem:[#allocation5 + $0x544] sm:$0xf0]  ;;  %v6382_v59 = vld [vmem:[#allocation5 + $0x434] sm:$0xf0]  ;;  %v6384_v49 = vld [vmem:[#allocation2 + $0x20] sm:$0xff] }
 0x114   :  { %v822_v58 = vadd.f32 %v821_v34, %v820_v10  ;;  %v1269_v20 = vrot.slane %v1268_v46, 2  ;;  %v934_v17 = vadd.f32 %v933_v24, %v932_v15  ;;  %v1046_v18 = vadd.f32 %v1045_v22, %v1044_v25  ;;  %v6376_v15 = vld [vmem:[#allocation5 + $0x5c0] sm:$0xf]  ;;  %v6378_v25 = vld [vmem:[#allocation5 + $0x5c4] sm:$0xf0] }
 0x115   :  { %v487_v44 = vrot.slane %v486_v35, 1  ;;  %v1158_v51 = vadd.f32 %v1157_v16, %v1156_v13  ;;  %v599_v26 = vrot.slane %v598_v8, 1  ;;  %v711_v32 = vrot.slane %v710_v40, 1  ;;  %v6380_v13 = vld [vmem:[#allocation5 + $0x430] sm:$0xf] }
 0x116   :  { %v823_v33 = vrot.slane %v822_v58, 1  ;;  %v1270_v39 = vadd.f32 %v1269_v20, %v1268_v46  ;;  %v935_v19 = vrot.slane %v934_v17, 1  ;;  %v1047_v37 = vrot.slane %v1046_v18, 1  ;;  %v6387_v22 = vld [vmem:[#allocation5 + $0x4b0] sm:$0xf] }
 0x117   :  { %v488_v9 = vadd.f32 %v487_v44, %v486_v35  ;;  %v1159_v61 = vrot.slane %v1158_v51, 1  ;;  %v600_v7 = vadd.f32 %v599_v26, %v598_v8  ;;  %v712_v60 = vadd.f32 %v711_v32, %v710_v40  ;;  %v6389_v16 = vld [vmem:[#allocation5 + $0x4b4] sm:$0xf0]  ;;  %v6391_v8 = vld [vmem:[#allocation5 + $0x530] sm:$0xf] }
 0x118   :  { %v824_v6 = vadd.f32 %v823_v33, %v822_v58  ;;  %v1271_v30 = vrot.slane %v1270_v39, 1  ;;  %v936_v21 = vadd.f32 %v935_v19, %v934_v17  ;;  %v1048_v11 = vadd.f32 %v1047_v37, %v1046_v18  ;;  %v6393_v40 = vld [vmem:[#allocation5 + $0x534] sm:$0xf0]  ;;  %v6395_v58 = vld [vmem:[#allocation2 + $0x60] sm:$0xff]  ;;  %v6404_v33 = vld [vmem:[#allocation5 + $0x424] sm:$0xf0] }
 0x119   :  { %v1160_v63 = vadd.f32 %v1159_v61, %v1158_v51  ;;  %v1348_v45 = vmul.f32 0.0625, %v488_v9  ;;  %v1364_v23 = vmul.f32 0.0625, %v600_v7  ;;  %v1380_v29 = vmul.f32 0.0625, %v712_v60  ;;  %v6398_v51 = vld [vmem:[#allocation5 + $0x5b0] sm:$0xf] }
 0x11a   :  { %v1272_v38 = vadd.f32 %v1271_v30, %v1270_v39  ;;  %v1396_v41 = vmul.f32 0.0625, %v824_v6  ;;  %v1412_v3 = vmul.f32 0.0625, %v936_v21  ;;  %v1428_v42 = vmul.f32 0.0625, %v1048_v11  ;;  %v6400_v26 = vld [vmem:[#allocation5 + $0x5b4] sm:$0xf0] }
 0x11b   :  { %v1444_v1 = vmul.f32 0.0625, %v1160_v63  ;;  %v1756_v56 = vpack.c.bf16 %v1348_v45, %v1348_v45  ;;  %v1641_v57 = vsel %vm1599_vm0, %v1364_v23, %v1348_v45  ;;  %v1772_v27 = vpack.c.bf16 %v1364_v23, %v1364_v23  ;;  %v6402_v32 = vld [vmem:[#allocation5 + $0x420] sm:$0xf]  ;;  %v6408_v9 = vld [vmem:[#allocation5 + $0x4a4] sm:$0xf0] }
 0x11c   :  { %v1460_v48 = vmul.f32 0.0625, %v1272_v38  ;;  %v1788_v2 = vpack.c.bf16 %v1380_v29, %v1380_v29  ;;  %v1642_v31 = vsel %vm1601_vm1, %v1380_v29, %v1641_v57  ;;  %v1804_v47 = vpack.c.bf16 %v1396_v41, %v1396_v41  ;;  %v6406_v39 = vld [vmem:[#allocation5 + $0x4a0] sm:$0xf]  ;;  %v6414_v6 = vld [vmem:[#allocation5 + $0x524] sm:$0xf0] }
 0x11d   :  { %v1820_v53 = vpack.c.bf16 %v1412_v3, %v1412_v3  ;;  %v1836_v62 = vpack.c.bf16 %v1428_v42, %v1428_v42  ;;  %v1643_v14 = vsel %vm1603_vm2, %v1396_v41, %v1642_v31  ;;  %v1852_v10 = vpack.c.bf16 %v1444_v1, %v1444_v1  ;;  %v6412_v60 = vld [vmem:[#allocation5 + $0x520] sm:$0xf]  ;;  %v6418_v21 = vld [vmem:[#allocation5 + $0x5a4] sm:$0xf0]  ;;  %v6420_v11 = vld [vmem:[#allocation5 + $0x410] sm:$0xf] }
 0x11e   :  { %v1868_v12 = vpack.c.bf16 %v1460_v48, %v1460_v48  ;;  %v2275_v4 = vunpack.c.l.b16 %v1756_v56  ;;  %v1644_v34 = vsel %vm1605_vm3, %v1412_v3, %v1643_v14  ;;  %v2291_v46 = vunpack.c.l.b16 %v1772_v27  ;;  %v6416_v30 = vld [vmem:[#allocation5 + $0x5a0] sm:$0xf]  ;;  %v6422_v63 = vld [vmem:[#allocation5 + $0x414] sm:$0xf0]  ;;  %v6429_v41 = vld [vmem:[#allocation5 + $0x490] sm:$0xf] }
 0x11f   :  { %v2307_v35 = vunpack.c.l.b16 %v1788_v2  ;;  %v2323_v24 = vunpack.c.l.b16 %v1804_v47  ;;  %v1645_v20 = vsel %vm1607_vm4, %v1428_v42, %v1644_v34  ;;  %v2339_v44 = vunpack.c.l.b16 %v1820_v53  ;;  %v6431_v3 = vld [vmem:[#allocation5 + $0x494] sm:$0xf0]  ;;  %v6433_v42 = vld [vmem:[#allocation5 + $0x510] sm:$0xf]  ;;  %v6450_v31 = vld [vmem:[#allocation5 + $0x480] sm:$0xf] }
 0x120   :  { %v2355_v17 = vunpack.c.l.b16 %v1836_v62  ;;  %v2371_v18 = vunpack.c.l.b16 %v1852_v10  ;;  %v1646_v19 = vsel %vm1609_vm5, %v1444_v1, %v1645_v20  ;;  %v2387_v37 = vunpack.c.l.b16 %v1868_v12  ;;  %v6435_v1 = vld [vmem:[#allocation5 + $0x514] sm:$0xf0]  ;;  %v6437_v56 = vld [vmem:[#allocation5 + $0x590] sm:$0xf]  ;;  %v6452_v47 = vld [vmem:[#allocation5 + $0x484] sm:$0xf0] }
 0x121   :  { %v2433_v61 = vsel %vm1599_vm0, %v2291_v46, %v2275_v4  ;;  %v4900_v7 = vor.u32 %v5514_v54, %v4899_v36  ;;  %v1647_v45 = vsel %vm1611_vm6, %v1460_v48, %v1646_v19  ;;  %v4964_v23 = vor.u32 %v6371_v5, %v6369_v0  ;;  %v6439_v57 = vld [vmem:[#allocation5 + $0x594] sm:$0xf0]  ;;  %v6446_v36 = vld [vmem:[#allocation5 + $0x400] sm:$0xf]  ;;  %v6448_v54 = vld [vmem:[#allocation5 + $0x404] sm:$0xf0] }
 0x122   :  { %v2434_v38 = vsel %vm1601_vm1, %v2307_v35, %v2433_v61  ;;  %v5028_v29 = vor.u32 %v5546_v43, %v6373_v55  ;;  %1739 = vst [vmem:[#allocation9 + $0x28] sm:$0xff] %v1647_v45  ;;  %v5092_v27 = vor.u32 %v6378_v25, %v6376_v15  ;;  %v4892_v2 = vor.u32 %v6382_v59, %v6380_v13  ;;  %v6454_v53 = vld [vmem:[#allocation2 + $0xa0] sm:$0xff]  ;;  %v6464_v14 = vld [vmem:[#allocation5 + $0x504] sm:$0xf0]  ;;  %v6478_v34 = vld [vmem:[#allocation5 + $0x670] sm:$0xf] }
 0x123   :  { %v2435_v48 = vsel %vm1603_vm2, %v2323_v24, %v2434_v38  ;;  %3929 = vmatpush.bf16.msra.mxu0 %v4900_v7  ;;  %v199_v62 = vunpack.c.l.bf16 %v6384_v49  ;;  %3942 = vmatpush.bf16.msra.mxu1 %v4964_v23  ;;  %v4956_v5 = vor.u32 %v6389_v16, %v6387_v22  ;;  %v5020_v55 = vor.u32 %v6393_v40, %v6391_v8  ;;  %v6462_v43 = vld [vmem:[#allocation5 + $0x500] sm:$0xf]  ;;  %v6476_v59 = vld [vmem:[#allocation5 + $0x584] sm:$0xf0]  ;;  %v6480_v46 = vld [vmem:[#allocation5 + $0x674] sm:$0xf0] }
 0x124   :  { %v2436_v0 = vsel %vm1605_vm3, %v2339_v44, %v2435_v48  ;;  %3955 = vmatpush.bf16.msra.mxu2 %v5028_v29  ;;  %v6466_v10 = vld [vmem:[#allocation5 + $0x580] sm:$0xf]  ;;  %v215_v12 = vunpack.c.l.bf16 %v6395_v58  ;;  %3968 = vmatpush.bf16.msra.mxu3 %v5092_v27  ;;  %v5084_v15 = vor.u32 %v6400_v26, %v6398_v51  ;;  %v4884_v25 = vor.u32 %v6404_v33, %v6402_v32  ;;  %v6493_v20 = vld [vmem:[#allocation5 + $0x6f0] sm:$0xf]  ;;  %v6495_v44 = vld [vmem:[#allocation5 + $0x6f4] sm:$0xf0] }
 0x125   :  { %v2437_v4 = vsel %vm1607_vm4, %v2355_v17, %v2436_v0  ;;  %v4948_v13 = vor.u32 %v6408_v9, %v6406_v39  ;;  %v6482_v35 = vld [vmem:[#allocation2 + $0xe0] sm:$0xff]  ;;  %v5012_v16 = vor.u32 %v6414_v6, %v6412_v60  ;;  %v5076_v8 = vor.u32 %v6418_v21, %v6416_v30  ;;  %v6497_v17 = vld [vmem:[#allocation5 + $0x770] sm:$0xf]  ;;  %v6510_v9 = vld [vmem:[#allocation5 + $0x774] sm:$0xf0] }
 0x126   :  { %v6484_v24 = vld [vmem:[#allocation2 + $0x120] sm:$0xff]  ;;  %v2438_v22 = vsel %vm1609_vm5, %v2371_v18, %v2437_v4  ;;  %v4876_v40 = vor.u32 %v6422_v63, %v6420_v11  ;;  %v4940_v32 = vor.u32 %v6431_v3, %v6429_v41  ;;  %v5004_v33 = vor.u32 %v6435_v1, %v6433_v42  ;;  %v6512_v19 = vld [vmem:[#allocation5 + $0x7f0] sm:$0xf]  ;;  %v6514_v61 = vld [vmem:[#allocation5 + $0x7f4] sm:$0xf0] }
 0x127   :  { %v6499_v51 = vld [vmem:[#allocation2 + $0x160] sm:$0xff]  ;;  %v2439_v18 = vsel %vm1611_vm6, %v2387_v37, %v2438_v22  ;;  %3930 = vmatpush.bf16.msra.mxu0 %v4892_v2  ;;  %v5068_v39 = vor.u32 %v6439_v57, %v6437_v56  ;;  %3943 = vmatpush.bf16.msra.mxu1 %v4956_v5  ;;  %v4868_v37 = vor.u32 %v6448_v54, %v6446_v36  ;;  %v231_v11 = vunpack.c.l.bf16 %v6454_v53 }
 0x128   :  { %v6501_v26 = vld [vmem:[#allocation2 + $0x1a0] sm:$0xff]  ;;  %v6516_v7 = vpack.c.b16 %v2439_v18, %v2439_v18  ;;  %3956 = vmatpush.bf16.msra.mxu2 %v5020_v55  ;;  %3969 = vmatpush.bf16.msra.mxu3 %v5084_v15  ;;  %v4996_v63 = vor.u32 %v6464_v14, %v6462_v43  ;;  %v247_v27 = vunpack.c.l.bf16 %v6482_v35  ;;  %v263_v2 = vunpack.c.l.bf16 %v6484_v24 }
 0x129   :  { %v6522_v6 = vld [vmem:[#allocation2 + $0x1e0] sm:$0xff]  ;;  %v279_v36 = vunpack.c.l.bf16 %v6499_v51  ;;  %v295_v54 = vunpack.c.l.bf16 %v6501_v26 }
 0x12a   :  { %7322 = vst [vmem:[#allocation20_spill] sm:$0xff] %v6516_v7  ;;  %v6524_v30 = vld [vmem:[#allocation2 + $0x220] sm:$0xff]  ;;  %3895 = vmatmul.bf16.vlgmr.msrb.gmra.mxu1 %v6516_v7  ;;  %v311_v0 = vunpack.c.l.bf16 %v6522_v6 }
 0x12b   :  { %v6526_v21 = vld [vmem:[#allocation2 + $0x260] sm:$0xff]  ;;  %3931 = vmatpush.bf16.msra.mxu0 %v4884_v25  ;;  %v327_v5 = vunpack.c.l.bf16 %v6524_v30  ;;  %3944 = vmatpush.bf16.msra.mxu1 %v4948_v13  ;;  %v503_v13 = vadd.f32 %v215_v12, %v199_v62  ;;  %v727_v18 = vadd.f32 %v279_v36, %v263_v2 }
 0x12c   :  { %v6537_v29 = vld [vmem:[#allocation2 + $0x2a0] sm:$0xff]  ;;  %3957 = vmatpush.bf16.msra.mxu2 %v5012_v16  ;;  %v343_v55 = vunpack.c.l.bf16 %v6526_v21  ;;  %3970 = vmatpush.bf16.msra.mxu3 %v5076_v8  ;;  %v615_v16 = vadd.f32 %v247_v27, %v231_v11  ;;  %v839_v1 = vadd.f32 %v311_v0, %v295_v54 }
 0x12d   :  { %v6539_v41 = vld [vmem:[#allocation2 + $0x2e0] sm:$0xff]  ;;  %v359_v43 = vunpack.c.l.bf16 %v6537_v29  ;;  %v504_v23 = vrot.slane %v503_v13, 4  ;;  %v728_v7 = vrot.slane %v727_v18, 4 }
 0x12e   :  { %v6541_v3 = vld [vmem:[#allocation2 + $0x320] sm:$0xff]  ;;  %v375_v14 = vunpack.c.l.bf16 %v6539_v41  ;;  %v951_v42 = vadd.f32 %v343_v55, %v327_v5  ;;  %v616_v60 = vrot.slane %v615_v16, 4  ;;  %v840_v52 = vrot.slane %v839_v1, 4 }
 0x12f   :  { %v6548_v56 = vld [vmem:[#allocation2 + $0x360] sm:$0xff]  ;;  %v391_v4 = vunpack.c.l.bf16 %v6541_v3  ;;  %3932 = vmatpush.bf16.msra.mxu0 %v4876_v40  ;;  %3945 = vmatpush.bf16.msra.mxu1 %v4940_v32  ;;  %v505_v50 = vadd.f32 %v504_v23, %v503_v13  ;;  %v729_v11 = vadd.f32 %v728_v7, %v727_v18  ;;  %v6571_v32 = vld [vmem:[#allocation2 + $0x28] sm:$0xff] }
 0x130   :  { %v6550_v57 = vld [vmem:[#allocation2 + $0x3a0] sm:$0xff]  ;;  %v407_v15 = vunpack.c.l.bf16 %v6548_v56  ;;  %v1063_v38 = vadd.f32 %v375_v14, %v359_v43  ;;  %3958 = vmatpush.bf16.msra.mxu2 %v5004_v33  ;;  %v952_v28 = vrot.slane %v951_v42, 4  ;;  %3971 = vmatpush.bf16.msra.mxu3 %v5068_v39  ;;  %v617_v12 = vadd.f32 %v616_v60, %v615_v16 }
 0x131   :  { %7323 = vst [vmem:[#allocation21_spill] sm:$0xff] %v6550_v57  ;;  %v6552_v48 = vld [vmem:[#allocation2 + $0x3e0] sm:$0xff]  ;;  %v423_v25 = vunpack.c.l.bf16 %v6550_v57  ;;  %v841_v27 = vadd.f32 %v840_v52, %v839_v1  ;;  %v506_v40 = vrot.slane %v505_v50, 2  ;;  %v7325_v33 = vor.u32 %v6452_v47, %v6450_v31 }
 0x132   :  { %7324 = vst [vmem:[#allocation24_spill] sm:$0xff] %v6552_v48  ;;  %v439_v22 = vunpack.c.l.bf16 %v6552_v48  ;;  %v1175_v45 = vadd.f32 %v407_v15, %v391_v4  ;;  %v1064_v48 = vrot.slane %v1063_v38, 4  ;;  %v953_v2 = vadd.f32 %v952_v28, %v951_v42 }
 0x133   :  { %3933 = vmatpush.bf16.msra.mxu0 %v4868_v37  ;;  %3946 = vmatpush.bf16.msra.mxu1 %v7325_v33  ;;  %v618_v39 = vrot.slane %v617_v12, 2  ;;  %v730_v23 = vrot.slane %v729_v11, 2  ;;  %v842_v5 = vrot.slane %v841_v27, 2  ;;  %v7326_v52 = vor.u32 %v6476_v59, %v6466_v10 }
 0x134   :  { %v1287_v8 = vadd.f32 %v439_v22, %v423_v25  ;;  %v1176_v57 = vrot.slane %v1175_v45, 4  ;;  %v1065_v36 = vadd.f32 %v1064_v48, %v1063_v38  ;;  %3959 = vmatpush.bf16.msra.mxu2 %v4996_v63  ;;  %v954_v55 = vrot.slane %v953_v2, 2 }
 0x135   :  { %3972 = vmatpush.bf16.msra.mxu3 %v7326_v52  ;;  %v7327_v28 = vor.u32 %v6480_v46, %v6478_v34  ;;  %v507_v7 = vadd.f32 %v506_v40, %v505_v50  ;;  %v7328_v31 = vor.u32 %v6495_v44, %v6493_v20  ;;  %v7329_v47 = vor.u32 %v6510_v9, %v6497_v17 }
 0x136   :  { %v1288_v62 = vrot.slane %v1287_v8, 4  ;;  %v1177_v54 = vadd.f32 %v1176_v57, %v1175_v45  ;;  %v1066_v37 = vrot.slane %v1065_v36, 2  ;;  %v619_v63 = vadd.f32 %v618_v39, %v617_v12 }
 0x137   :  { %3978 = vmatpush.bf16.msrb.mxu0 %v7327_v28  ;;  %3991 = vmatpush.bf16.msrb.mxu1 %v7328_v31  ;;  %v731_v38 = vadd.f32 %v730_v23, %v729_v11  ;;  %v843_v10 = vadd.f32 %v842_v5, %v841_v27  ;;  %v201_v59 = vunpack.c.l.bf16 %v6571_v32  ;;  %v7330_v34 = vor.u32 %v6514_v61, %v6512_v19 }
 0x138   :  { %v1289_v0 = vadd.f32 %v1288_v62, %v1287_v8  ;;  %v1178_v60 = vrot.slane %v1177_v54, 2  ;;  %4004 = vmatpush.bf16.msrb.mxu2 %v7329_v47  ;;  %v508_v50 = vrot.slane %v507_v7, 1  ;;  %v955_v46 = vadd.f32 %v954_v55, %v953_v2 }
 0x139   :  { %4017 = vmatpush.bf16.msrb.mxu3 %v7330_v34  ;;  %v1067_v42 = vadd.f32 %v1066_v37, %v1065_v36  ;;  %v620_v57 = vrot.slane %v619_v63, 1  ;;  %v732_v20 = vrot.slane %v731_v38, 1  ;;  %v844_v44 = vrot.slane %v843_v10, 1 }
 0x13a   :  { %v1290_v45 = vrot.slane %v1289_v0, 2  ;;  %v1179_v1 = vadd.f32 %v1178_v60, %v1177_v54  ;;  %v509_v43 = vadd.f32 %v508_v50, %v507_v7  ;;  %v956_v17 = vrot.slane %v955_v46, 1  ;;  %v6595_v60 = vld [vmem:[#allocation2 + $0x68] sm:$0xff] }
 0x13b   :  { %v1068_v9 = vrot.slane %v1067_v42, 1  ;;  %v621_v4 = vadd.f32 %v620_v57, %v619_v63  ;;  %v733_v15 = vadd.f32 %v732_v20, %v731_v38  ;;  %v845_v25 = vadd.f32 %v844_v44, %v843_v10  ;;  %v6598_v38 = vld [vmem:[#allocation2 + $0xa8] sm:$0xff] }
 0x13c   :  { %v1291_v48 = vadd.f32 %v1290_v45, %v1289_v0  ;;  %v1180_v14 = vrot.slane %v1179_v1, 1  ;;  %v957_v13 = vadd.f32 %v956_v17, %v955_v46  ;;  %v1351_v61 = vmul.f32 0.0625, %v509_v43  ;;  %v6600_v10 = vld [vmem:[#allocation2 + $0xe8] sm:$0xff] }
 0x13d   :  { %v1069_v16 = vadd.f32 %v1068_v9, %v1067_v42  ;;  %v1367_v8 = vmul.f32 0.0625, %v621_v4  ;;  %v1383_v62 = vmul.f32 0.0625, %v733_v15  ;;  %v1399_v12 = vmul.f32 0.0625, %v845_v25  ;;  %v6605_v57 = vld [vmem:[#allocation2 + $0x168] sm:$0xff] }
 0x13e   :  { %v1292_v22 = vrot.slane %v1291_v48, 1  ;;  %v1181_v19 = vadd.f32 %v1180_v14, %v1179_v1  ;;  %v1415_v11 = vmul.f32 0.0625, %v957_v13  ;;  %v1759_v40 = vpack.c.bf16 %v1351_v61, %v1351_v61  ;;  %v6603_v1 = vld [vmem:[#allocation2 + $0x128] sm:$0xff] }
 0x13f   :  { %v1431_v27 = vmul.f32 0.0625, %v1069_v16  ;;  %v1662_v54 = vsel %vm1599_vm0, %v1367_v8, %v1351_v61  ;;  %v1775_v0 = vpack.c.bf16 %v1367_v8, %v1367_v8  ;;  %v1791_v33 = vpack.c.bf16 %v1383_v62, %v1383_v62  ;;  %v6607_v20 = vld [vmem:[#allocation2 + $0x1a8] sm:$0xff] }
 0x140   :  { %v1293_v18 = vadd.f32 %v1292_v22, %v1291_v48  ;;  %v1447_v2 = vmul.f32 0.0625, %v1181_v19  ;;  %v1663_v39 = vsel %vm1601_vm1, %v1383_v62, %v1662_v54  ;;  %v1807_v23 = vpack.c.bf16 %v1399_v12, %v1399_v12  ;;  %v6611_v17 = vld [vmem:[#allocation2 + $0x1e8] sm:$0xff] }
 0x141   :  { %v1823_v5 = vpack.c.bf16 %v1415_v11, %v1415_v11  ;;  %v1839_v55 = vpack.c.bf16 %v1431_v27, %v1431_v27  ;;  %v1664_v52 = vsel %vm1603_vm2, %v1399_v12, %v1663_v39  ;;  %v2278_v37 = vunpack.c.l.b16 %v1759_v40  ;;  %v6613_v9 = vld [vmem:[#allocation2 + $0x228] sm:$0xff] }
 0x142   :  { %v1463_v36 = vmul.f32 0.0625, %v1293_v18  ;;  %v1855_v28 = vpack.c.bf16 %v1447_v2, %v1447_v2  ;;  %v1665_v45 = vsel %vm1605_vm3, %v1415_v11, %v1664_v52  ;;  %v2294_v31 = vunpack.c.l.b16 %v1775_v0  ;;  %v6615_v14 = vld [vmem:[#allocation2 + $0x268] sm:$0xff] }
 0x143   :  { %v2310_v47 = vunpack.c.l.b16 %v1791_v33  ;;  %v2326_v63 = vunpack.c.l.b16 %v1807_v23  ;;  %v1666_v34 = vsel %vm1607_vm4, %v1431_v27, %v1665_v45  ;;  %v2342_v50 = vunpack.c.l.b16 %v1823_v5  ;;  %v6620_v22 = vld [vmem:[#allocation2 + $0x2a8] sm:$0xff] }
 0x144   :  { %v1871_v7 = vpack.c.bf16 %v1463_v36, %v1463_v36  ;;  %v2358_v46 = vunpack.c.l.b16 %v1839_v55  ;;  %v2374_v42 = vunpack.c.l.b16 %v1855_v28  ;;  %v1667_v44 = vsel %vm1609_vm5, %v1447_v2, %v1666_v34  ;;  %v6622_v13 = vld [vmem:[#allocation2 + $0x2e8] sm:$0xff] }
 0x145   :  { %v2454_v43 = vsel %vm1599_vm0, %v2294_v31, %v2278_v37  ;;  %v217_v4 = vunpack.c.l.bf16 %v6595_v60  ;;  %v1668_v15 = vsel %vm1611_vm6, %v1463_v36, %v1667_v44  ;;  %v6624_v16 = vld [vmem:[#allocation2 + $0x328] sm:$0xff]  ;;  %v233_v19 = vunpack.c.l.bf16 %v6598_v38 }
 0x146   :  { %v2390_v48 = vunpack.c.l.b16 %v1871_v7  ;;  %v2455_v25 = vsel %vm1601_vm1, %v2310_v47, %v2454_v43  ;;  %v249_v61 = vunpack.c.l.bf16 %v6600_v10  ;;  %1742 = vst [vmem:[#allocation9 + $0x40] sm:$0xff] %v1668_v15  ;;  %v6629_v8 = vld [vmem:[#allocation2 + $0x368] sm:$0xff]  ;;  %v265_v11 = vunpack.c.l.bf16 %v6603_v1 }
 0x147   :  { %v2456_v18 = vsel %vm1603_vm2, %v2326_v63, %v2455_v25  ;;  %v6631_v62 = vld [vmem:[#allocation2 + $0x3a8] sm:$0xff]  ;;  %v281_v27 = vunpack.c.l.bf16 %v6605_v57  ;;  %v297_v2 = vunpack.c.l.bf16 %v6607_v20  ;;  %v313_v36 = vunpack.c.l.bf16 %v6611_v17 }
 0x148   :  { %v6633_v12 = vld [vmem:[#allocation2 + $0x3e8] sm:$0xff]  ;;  %v2457_v40 = vsel %vm1605_vm3, %v2342_v50, %v2456_v18  ;;  %v329_v54 = vunpack.c.l.bf16 %v6613_v9  ;;  %v345_v0 = vunpack.c.l.bf16 %v6615_v14  ;;  %v361_v39 = vunpack.c.l.bf16 %v6620_v22 }
 0x149   :  { %7331 = vst [vmem:[#allocation25_spill] sm:$0xff] %v6633_v12  ;;  %v2458_v33 = vsel %vm1607_vm4, %v2358_v46, %v2457_v40  ;;  %v377_v23 = vunpack.c.l.bf16 %v6622_v13  ;;  %v393_v5 = vunpack.c.l.bf16 %v6624_v16  ;;  %v409_v52 = vunpack.c.l.bf16 %v6629_v8 }
 0x14a   :  { %v2459_v55 = vsel %vm1609_vm5, %v2374_v42, %v2458_v33  ;;  %v425_v28 = vunpack.c.l.bf16 %v6631_v62  ;;  %v441_v7 = vunpack.c.l.bf16 %v6633_v12  ;;  %v517_v45 = vadd.f32 %v217_v4, %v201_v59 }
 0x14b   :  { %v2460_v37 = vsel %vm1611_vm6, %v2390_v48, %v2459_v55  ;;  %v629_v31 = vadd.f32 %v249_v61, %v233_v19  ;;  %v741_v47 = vadd.f32 %v281_v27, %v265_v11  ;;  %v853_v34 = vadd.f32 %v313_v36, %v297_v2 }
 0x14c   :  { %v6653_v63 = vpack.c.b16 %v2460_v37, %v2460_v37  ;;  %v965_v50 = vadd.f32 %v345_v0, %v329_v54  ;;  %v1077_v46 = vadd.f32 %v377_v23, %v361_v39  ;;  %v518_v44 = vrot.slane %v517_v45, 4 }
 0x14d   :  { %v630_v42 = vrot.slane %v629_v31, 4  ;;  %v742_v43 = vrot.slane %v741_v47, 4  ;;  %v1189_v15 = vadd.f32 %v409_v52, %v393_v5  ;;  %v854_v25 = vrot.slane %v853_v34, 4 }
 0x14e   :  { %7332 = vst [vmem:[#allocation26_spill] sm:$0xff] %v6653_v63  ;;  %3934 = vmatmul.bf16.vlgmr.msra.gmra.mxu0 %v6653_v63  ;;  %v966_v18 = vrot.slane %v965_v50, 4  ;;  %v1078_v40 = vrot.slane %v1077_v46, 4  ;;  %v1301_v48 = vadd.f32 %v441_v7, %v425_v28  ;;  %v519_v33 = vadd.f32 %v518_v44, %v517_v45 }
 0x14f   :  { %v631_v55 = vadd.f32 %v630_v42, %v629_v31  ;;  %v743_v59 = vadd.f32 %v742_v43, %v741_v47  ;;  %v1190_v4 = vrot.slane %v1189_v15, 4  ;;  %v855_v19 = vadd.f32 %v854_v25, %v853_v34 }
 0x150   :  { %v967_v61 = vadd.f32 %v966_v18, %v965_v50  ;;  %v1079_v11 = vadd.f32 %v1078_v40, %v1077_v46  ;;  %v1302_v27 = vrot.slane %v1301_v48, 4  ;;  %v520_v2 = vrot.slane %v519_v33, 2 }
 0x151   :  { %v632_v36 = vrot.slane %v631_v55, 2  ;;  %v744_v54 = vrot.slane %v743_v59, 2  ;;  %v1191_v0 = vadd.f32 %v1190_v4, %v1189_v15  ;;  %v856_v39 = vrot.slane %v855_v19, 2 }
 0x152   :  { %v968_v23 = vrot.slane %v967_v61, 2  ;;  %v1080_v5 = vrot.slane %v1079_v11, 2  ;;  %v1303_v52 = vadd.f32 %v1302_v27, %v1301_v48  ;;  %v521_v37 = vadd.f32 %v520_v2, %v519_v33 }
 0x153   :  { %v633_v63 = vadd.f32 %v632_v36, %v631_v55  ;;  %v745_v12 = vadd.f32 %v744_v54, %v743_v59  ;;  %v1192_v28 = vrot.slane %v1191_v0, 2  ;;  %v857_v7 = vadd.f32 %v856_v39, %v855_v19 }
 0x154   :  { %v969_v45 = vadd.f32 %v968_v23, %v967_v61  ;;  %v1081_v31 = vadd.f32 %v1080_v5, %v1079_v11  ;;  %v1304_v47 = vrot.slane %v1303_v52, 2  ;;  %v522_v34 = vrot.slane %v521_v37, 1 }
 0x155   :  { %v634_v50 = vrot.slane %v633_v63, 1  ;;  %v746_v46 = vrot.slane %v745_v12, 1  ;;  %v1193_v44 = vadd.f32 %v1192_v28, %v1191_v0  ;;  %v858_v42 = vrot.slane %v857_v7, 1 }
 0x156   :  { %v970_v43 = vrot.slane %v969_v45, 1  ;;  %v1082_v25 = vrot.slane %v1081_v31, 1  ;;  %v1305_v15 = vadd.f32 %v1304_v47, %v1303_v52  ;;  %v523_v18 = vadd.f32 %v522_v34, %v521_v37 }
 0x157   :  { %v635_v40 = vadd.f32 %v634_v50, %v633_v63  ;;  %v747_v4 = vadd.f32 %v746_v46, %v745_v12  ;;  %v1194_v48 = vrot.slane %v1193_v44, 1  ;;  %v859_v33 = vadd.f32 %v858_v42, %v857_v7 }
 0x158   :  { %v971_v55 = vadd.f32 %v970_v43, %v969_v45  ;;  %v1083_v59 = vadd.f32 %v1082_v25, %v1081_v31  ;;  %v1306_v27 = vrot.slane %v1305_v15, 1  ;;  %v1353_v61 = vmul.f32 0.0625, %v523_v18 }
 0x159   :  { %v1195_v19 = vadd.f32 %v1194_v48, %v1193_v44  ;;  %v1369_v11 = vmul.f32 0.0625, %v635_v40  ;;  %v1385_v2 = vmul.f32 0.0625, %v747_v4  ;;  %v1401_v54 = vmul.f32 0.0625, %v859_v33 }
 0x15a   :  { %v1307_v36 = vadd.f32 %v1306_v27, %v1305_v15  ;;  %v1417_v39 = vmul.f32 0.0625, %v971_v55  ;;  %v1433_v0 = vmul.f32 0.0625, %v1083_v59  ;;  %v1761_v52 = vpack.c.bf16 %v1353_v61, %v1353_v61 }
 0x15b   :  { %v1449_v23 = vmul.f32 0.0625, %v1195_v19  ;;  %v1676_v5 = vsel %vm1599_vm0, %v1369_v11, %v1353_v61  ;;  %v1777_v37 = vpack.c.bf16 %v1369_v11, %v1369_v11  ;;  %v1793_v28 = vpack.c.bf16 %v1385_v2, %v1385_v2 }
 0x15c   :  { %v1465_v63 = vmul.f32 0.0625, %v1307_v36  ;;  %v1677_v12 = vsel %vm1601_vm1, %v1385_v2, %v1676_v5  ;;  %v1809_v7 = vpack.c.bf16 %v1401_v54, %v1401_v54  ;;  %v1825_v31 = vpack.c.bf16 %v1417_v39, %v1417_v39 }
 0x15d   :  { %v1678_v45 = vsel %vm1603_vm2, %v1401_v54, %v1677_v12  ;;  %v1841_v47 = vpack.c.bf16 %v1433_v0, %v1433_v0  ;;  %v1857_v34 = vpack.c.bf16 %v1449_v23, %v1449_v23  ;;  %v2280_v44 = vunpack.c.l.b16 %v1761_v52 }
 0x15e   :  { %v1679_v50 = vsel %vm1605_vm3, %v1417_v39, %v1678_v45  ;;  %v1873_v46 = vpack.c.bf16 %v1465_v63, %v1465_v63  ;;  %v2296_v42 = vunpack.c.l.b16 %v1777_v37  ;;  %v2312_v25 = vunpack.c.l.b16 %v1793_v28  ;;  %v7333_v37 = vld [vmem:[#allocation21_spill] sm:$0xff] }
 0x15f   :  { %v1680_v43 = vsel %vm1607_vm4, %v1433_v0, %v1679_v50  ;;  %v2328_v15 = vunpack.c.l.b16 %v1809_v7  ;;  %v2344_v18 = vunpack.c.l.b16 %v1825_v31  ;;  %v2360_v4 = vunpack.c.l.b16 %v1841_v47 }
 0x160   :  { %v1681_v40 = vsel %vm1609_vm5, %v1449_v23, %v1680_v43  ;;  %v2376_v48 = vunpack.c.l.b16 %v1857_v34  ;;  %v2392_v33 = vunpack.c.l.b16 %v1873_v46  ;;  %v2468_v59 = vsel %vm1599_vm0, %v2296_v42, %v2280_v44 }
 0x161   :  { %v1682_v55 = vsel %vm1611_vm6, %v1465_v63, %v1681_v40  ;;  %v200_v27 = vunpack.c.h.bf16 %v6384_v49  ;;  %v216_v19 = vunpack.c.h.bf16 %v6395_v58  ;;  %v2469_v61 = vsel %vm1601_vm1, %v2312_v25, %v2468_v59  ;;  %v7334_v63 = vld [vmem:[#allocation24_spill] sm:$0xff] }
 0x162   :  { %1744 = vst [vmem:[#allocation9 + $0x50] sm:$0xff] %v1682_v55  ;;  %v232_v11 = vunpack.c.h.bf16 %v6454_v53  ;;  %v248_v2 = vunpack.c.h.bf16 %v6482_v35  ;;  %v264_v36 = vunpack.c.h.bf16 %v6484_v24  ;;  %v2470_v54 = vsel %vm1603_vm2, %v2328_v15, %v2469_v61 }
 0x163   :  { %v280_v39 = vunpack.c.h.bf16 %v6499_v51  ;;  %v296_v0 = vunpack.c.h.bf16 %v6501_v26  ;;  %v312_v23 = vunpack.c.h.bf16 %v6522_v6  ;;  %v2471_v49 = vsel %vm1605_vm3, %v2344_v18, %v2470_v54 }
 0x164   :  { %v328_v58 = vunpack.c.h.bf16 %v6524_v30  ;;  %v344_v5 = vunpack.c.h.bf16 %v6526_v21  ;;  %v360_v53 = vunpack.c.h.bf16 %v6537_v29  ;;  %v2472_v35 = vsel %vm1607_vm4, %v2360_v4, %v2471_v49 }
 0x165   :  { %v376_v24 = vunpack.c.h.bf16 %v6539_v41  ;;  %v392_v52 = vunpack.c.h.bf16 %v6541_v3  ;;  %v408_v51 = vunpack.c.h.bf16 %v6548_v56  ;;  %v2473_v26 = vsel %vm1609_vm5, %v2376_v48, %v2472_v35 }
 0x166   :  { %v424_v6 = vunpack.c.h.bf16 %v7333_v37  ;;  %v440_v12 = vunpack.c.h.bf16 %v7334_v63  ;;  %v510_v28 = vadd.f32 %v216_v19, %v200_v27  ;;  %v2474_v30 = vsel %vm1611_vm6, %v2392_v33, %v2473_v26 }
 0x167   :  { %v622_v21 = vadd.f32 %v248_v2, %v232_v11  ;;  %v734_v7 = vadd.f32 %v280_v39, %v264_v36  ;;  %v846_v29 = vadd.f32 %v312_v23, %v296_v0  ;;  %v6686_v45 = vpack.c.b16 %v2474_v30, %v2474_v30 }
 0x168   :  { %v511_v31 = vrot.slane %v510_v28, 4  ;;  %v958_v41 = vadd.f32 %v344_v5, %v328_v58  ;;  %v1070_v47 = vadd.f32 %v376_v24, %v360_v53  ;;  %v1182_v50 = vadd.f32 %v408_v51, %v392_v52 }
 0x169   :  { %7335 = vst [vmem:[#allocation21_spill] sm:$0xff] %v6686_v45  ;;  %v623_v3 = vrot.slane %v622_v21, 4  ;;  %v735_v34 = vrot.slane %v734_v7, 4  ;;  %v847_v56 = vrot.slane %v846_v29, 4  ;;  %3960 = vmatmul.bf16.vlgmr.msra.gmra.mxu2 %v6686_v45  ;;  %v1294_v43 = vadd.f32 %v440_v12, %v424_v6 }
 0x16a   :  { %v512_v46 = vadd.f32 %v511_v31, %v510_v28  ;;  %v959_v44 = vrot.slane %v958_v41, 4  ;;  %v1071_v42 = vrot.slane %v1070_v47, 4  ;;  %v1183_v40 = vrot.slane %v1182_v50, 4 }
 0x16b   :  { %v624_v25 = vadd.f32 %v623_v3, %v622_v21  ;;  %v736_v15 = vadd.f32 %v735_v34, %v734_v7  ;;  %v848_v18 = vadd.f32 %v847_v56, %v846_v29  ;;  %v1295_v55 = vrot.slane %v1294_v43, 4 }
 0x16c   :  { %v513_v4 = vrot.slane %v512_v46, 2  ;;  %v960_v48 = vadd.f32 %v959_v44, %v958_v41  ;;  %v1072_v33 = vadd.f32 %v1071_v42, %v1070_v47  ;;  %v1184_v61 = vadd.f32 %v1183_v40, %v1182_v50 }
 0x16d   :  { %v625_v59 = vrot.slane %v624_v25, 2  ;;  %v737_v27 = vrot.slane %v736_v15, 2  ;;  %v849_v19 = vrot.slane %v848_v18, 2  ;;  %v1296_v54 = vadd.f32 %v1295_v55, %v1294_v43 }
 0x16e   :  { %v514_v11 = vadd.f32 %v513_v4, %v512_v46  ;;  %v961_v2 = vrot.slane %v960_v48, 2  ;;  %v1073_v36 = vrot.slane %v1072_v33, 2  ;;  %v1185_v49 = vrot.slane %v1184_v61, 2 }
 0x16f   :  { %v626_v39 = vadd.f32 %v625_v59, %v624_v25  ;;  %v738_v0 = vadd.f32 %v737_v27, %v736_v15  ;;  %v850_v23 = vadd.f32 %v849_v19, %v848_v18  ;;  %v1297_v35 = vrot.slane %v1296_v54, 2 }
 0x170   :  { %v515_v58 = vrot.slane %v514_v11, 1  ;;  %v962_v5 = vadd.f32 %v961_v2, %v960_v48  ;;  %v1074_v53 = vadd.f32 %v1073_v36, %v1072_v33  ;;  %v1186_v26 = vadd.f32 %v1185_v49, %v1184_v61 }
 0x171   :  { %v627_v24 = vrot.slane %v626_v39, 1  ;;  %v739_v52 = vrot.slane %v738_v0, 1  ;;  %v851_v51 = vrot.slane %v850_v23, 1  ;;  %v1298_v12 = vadd.f32 %v1297_v35, %v1296_v54 }
 0x172   :  { %v516_v37 = vadd.f32 %v515_v58, %v514_v11  ;;  %v963_v6 = vrot.slane %v962_v5, 1  ;;  %v1075_v63 = vrot.slane %v1074_v53, 1  ;;  %v1187_v7 = vrot.slane %v1186_v26, 1 }
 0x173   :  { %v628_v28 = vadd.f32 %v627_v24, %v626_v39  ;;  %v740_v30 = vadd.f32 %v739_v52, %v738_v0  ;;  %v852_v21 = vadd.f32 %v851_v51, %v850_v23  ;;  %v1299_v41 = vrot.slane %v1298_v12, 1 }
 0x174   :  { %v964_v29 = vadd.f32 %v963_v6, %v962_v5  ;;  %v1076_v31 = vadd.f32 %v1075_v63, %v1074_v53  ;;  %v1352_v47 = vmul.f32 0.0625, %v516_v37  ;;  %v1188_v3 = vadd.f32 %v1187_v7, %v1186_v26 }
 0x175   :  { %v1368_v34 = vmul.f32 0.0625, %v628_v28  ;;  %v1384_v56 = vmul.f32 0.0625, %v740_v30  ;;  %v1400_v50 = vmul.f32 0.0625, %v852_v21  ;;  %v1300_v46 = vadd.f32 %v1299_v41, %v1298_v12  ;;  %v7336_v41 = vld [vmem:[#allocation25_spill] sm:$0xff] }
 0x176   :  { %v1416_v44 = vmul.f32 0.0625, %v964_v29  ;;  %v1432_v42 = vmul.f32 0.0625, %v1076_v31  ;;  %v1760_v43 = vpack.c.bf16 %v1352_v47, %v1352_v47  ;;  %v1448_v25 = vmul.f32 0.0625, %v1188_v3 }
 0x177   :  { %v1669_v15 = vsel %vm1599_vm0, %v1368_v34, %v1352_v47  ;;  %v1776_v18 = vpack.c.bf16 %v1368_v34, %v1368_v34  ;;  %v1792_v40 = vpack.c.bf16 %v1384_v56, %v1384_v56  ;;  %v1464_v4 = vmul.f32 0.0625, %v1300_v46 }
 0x178   :  { %v1670_v48 = vsel %vm1601_vm1, %v1384_v56, %v1669_v15  ;;  %v1808_v33 = vpack.c.bf16 %v1400_v50, %v1400_v50  ;;  %v1824_v55 = vpack.c.bf16 %v1416_v44, %v1416_v44  ;;  %v1840_v27 = vpack.c.bf16 %v1432_v42, %v1432_v42 }
 0x179   :  { %v1671_v59 = vsel %vm1603_vm2, %v1400_v50, %v1670_v48  ;;  %v1856_v19 = vpack.c.bf16 %v1448_v25, %v1448_v25  ;;  %v2279_v61 = vunpack.c.l.b16 %v1760_v43  ;;  %v1872_v2 = vpack.c.bf16 %v1464_v4, %v1464_v4 }
 0x17a   :  { %v1672_v11 = vsel %vm1605_vm3, %v1416_v44, %v1671_v59  ;;  %v2295_v36 = vunpack.c.l.b16 %v1776_v18  ;;  %v2311_v54 = vunpack.c.l.b16 %v1792_v40  ;;  %v2327_v0 = vunpack.c.l.b16 %v1808_v33 }
 0x17b   :  { %v1673_v39 = vsel %vm1607_vm4, %v1432_v42, %v1672_v11  ;;  %v2343_v23 = vunpack.c.l.b16 %v1824_v55  ;;  %v2359_v49 = vunpack.c.l.b16 %v1840_v27  ;;  %v2375_v5 = vunpack.c.l.b16 %v1856_v19 }
 0x17c   :  { %v1674_v58 = vsel %vm1609_vm5, %v1448_v25, %v1673_v39  ;;  %v2391_v53 = vunpack.c.l.b16 %v1872_v2  ;;  %v2461_v35 = vsel %vm1599_vm0, %v2295_v36, %v2279_v61  ;;  %v202_v51 = vunpack.c.h.bf16 %v6571_v32 }
 0x17d   :  { %v1675_v24 = vsel %vm1611_vm6, %v1464_v4, %v1674_v58  ;;  %v2462_v52 = vsel %vm1601_vm1, %v2311_v54, %v2461_v35  ;;  %v218_v26 = vunpack.c.h.bf16 %v6595_v60  ;;  %v234_v6 = vunpack.c.h.bf16 %v6598_v38 }
 0x17e   :  { %1743 = vst [vmem:[#allocation9 + $0x48] sm:$0xff] %v1675_v24  ;;  %v2463_v37 = vsel %vm1603_vm2, %v2327_v0, %v2462_v52  ;;  %v250_v63 = vunpack.c.h.bf16 %v6600_v10  ;;  %v266_v12 = vunpack.c.h.bf16 %v6603_v1  ;;  %v282_v30 = vunpack.c.h.bf16 %v6605_v57 }
 0x17f   :  { %v2464_v28 = vsel %vm1605_vm3, %v2343_v23, %v2463_v37  ;;  %v298_v21 = vunpack.c.h.bf16 %v6607_v20  ;;  %v314_v7 = vunpack.c.h.bf16 %v6611_v17  ;;  %v330_v60 = vunpack.c.h.bf16 %v6613_v9 }
 0x180   :  { %v2465_v32 = vsel %vm1607_vm4, %v2359_v49, %v2464_v28  ;;  %v346_v29 = vunpack.c.h.bf16 %v6615_v14  ;;  %v362_v38 = vunpack.c.h.bf16 %v6620_v22  ;;  %v378_v1 = vunpack.c.h.bf16 %v6622_v13 }
 0x181   :  { %v2466_v10 = vsel %vm1609_vm5, %v2375_v5, %v2465_v32  ;;  %v394_v31 = vunpack.c.h.bf16 %v6624_v16  ;;  %v410_v57 = vunpack.c.h.bf16 %v6629_v8  ;;  %v426_v17 = vunpack.c.h.bf16 %v6631_v62 }
 0x182   :  { %v2467_v20 = vsel %vm1611_vm6, %v2391_v53, %v2466_v10  ;;  %v442_v47 = vunpack.c.h.bf16 %v7336_v41  ;;  %v524_v3 = vadd.f32 %v218_v26, %v202_v51  ;;  %v636_v14 = vadd.f32 %v250_v63, %v234_v6 }
 0x183   :  { %v6719_v9 = vpack.c.b16 %v2467_v20, %v2467_v20  ;;  %v748_v34 = vadd.f32 %v282_v30, %v266_v12  ;;  %v860_v22 = vadd.f32 %v314_v7, %v298_v21  ;;  %v972_v50 = vadd.f32 %v346_v29, %v330_v60 }
 0x184   :  { %v525_v56 = vrot.slane %v524_v3, 4  ;;  %v1084_v46 = vadd.f32 %v378_v1, %v362_v38  ;;  %v1196_v13 = vadd.f32 %v410_v57, %v394_v31  ;;  %v637_v16 = vrot.slane %v636_v14, 4 }
 0x185   :  { %7337 = vst [vmem:[#allocation24_spill] sm:$0xff] %v6719_v9  ;;  %3947 = vmatmul.bf16.vlgmr.msra.gmra.mxu1 %v6719_v9  ;;  %v749_v8 = vrot.slane %v748_v34, 4  ;;  %v861_v44 = vrot.slane %v860_v22, 4  ;;  %v1308_v42 = vadd.f32 %v442_v47, %v426_v17  ;;  %v973_v62 = vrot.slane %v972_v50, 4  ;;  %v6961_v9 = vld [vmem:[#allocation2 + $0x3f0] sm:$0xff] }
 0x186   :  { %v526_v43 = vadd.f32 %v525_v56, %v524_v3  ;;  %v1085_v25 = vrot.slane %v1084_v46, 4  ;;  %v1197_v15 = vrot.slane %v1196_v13, 4  ;;  %v638_v18 = vadd.f32 %v637_v16, %v636_v14  ;;  %7356 = vst [vmem:[#allocation44_spill] sm:$0xff] %v6961_v9 }
 0x187   :  { %v750_v40 = vadd.f32 %v749_v8, %v748_v34  ;;  %v862_v4 = vadd.f32 %v861_v44, %v860_v22  ;;  %v1309_v48 = vrot.slane %v1308_v42, 4  ;;  %v974_v55 = vadd.f32 %v973_v62, %v972_v50  ;;  %v6726_v62 = vld [vmem:[#allocation5 + $0x6e4] sm:$0xf0] }
 0x188   :  { %v527_v33 = vrot.slane %v526_v43, 2  ;;  %v1086_v59 = vadd.f32 %v1085_v25, %v1084_v46  ;;  %v1198_v27 = vadd.f32 %v1197_v15, %v1196_v13  ;;  %v639_v19 = vrot.slane %v638_v18, 2  ;;  %v5171_v46 = vld [vmem:[#allocation5 + $0x660] sm:$0xf]  ;;  %v5582_v13 = vld [vmem:[#allocation5 + $0x664] sm:$0xf0] }
 0x189   :  { %v751_v61 = vrot.slane %v750_v40, 2  ;;  %v863_v11 = vrot.slane %v862_v4, 2  ;;  %v1310_v2 = vadd.f32 %v1309_v48, %v1308_v42  ;;  %v975_v54 = vrot.slane %v974_v55, 2  ;;  %v6728_v25 = vld [vmem:[#allocation5 + $0x760] sm:$0xf] }
 0x18a   :  { %v528_v36 = vadd.f32 %v527_v33, %v526_v43  ;;  %v1087_v39 = vrot.slane %v1086_v59, 2  ;;  %v1199_v0 = vrot.slane %v1198_v27, 2  ;;  %v640_v23 = vadd.f32 %v639_v19, %v638_v18  ;;  %v6724_v43 = vld [vmem:[#allocation5 + $0x6e0] sm:$0xf]  ;;  %v5614_v15 = vld [vmem:[#allocation5 + $0x764] sm:$0xf0] }
 0x18b   :  { %v752_v49 = vadd.f32 %v751_v61, %v750_v40  ;;  %v864_v58 = vadd.f32 %v863_v11, %v862_v4  ;;  %v1311_v5 = vrot.slane %v1310_v2, 2  ;;  %v976_v35 = vadd.f32 %v975_v54, %v974_v55  ;;  %v6731_v33 = vld [vmem:[#allocation5 + $0x7e0] sm:$0xf]  ;;  %v6733_v55 = vld [vmem:[#allocation5 + $0x7e4] sm:$0xf0]  ;;  %v6739_v19 = vld [vmem:[#allocation2 + $0x30] sm:$0xff] }
 0x18c   :  { %v529_v53 = vrot.slane %v528_v36, 1  ;;  %v1088_v24 = vadd.f32 %v1087_v39, %v1086_v59  ;;  %v1200_v52 = vadd.f32 %v1199_v0, %v1198_v27  ;;  %v641_v51 = vrot.slane %v640_v23, 1  ;;  %v6735_v59 = vld [vmem:[#allocation5 + $0x650] sm:$0xf]  ;;  %v6737_v27 = vld [vmem:[#allocation5 + $0x654] sm:$0xf0] }
 0x18d   :  { %v753_v26 = vrot.slane %v752_v49, 1  ;;  %v865_v37 = vrot.slane %v864_v58, 1  ;;  %v1312_v6 = vadd.f32 %v1311_v5, %v1310_v2  ;;  %v977_v12 = vrot.slane %v976_v35, 1  ;;  %v6742_v54 = vld [vmem:[#allocation5 + $0x6d0] sm:$0xf] }
 0x18e   :  { %v530_v63 = vadd.f32 %v529_v53, %v528_v36  ;;  %v1089_v28 = vrot.slane %v1088_v24, 1  ;;  %v1201_v30 = vrot.slane %v1200_v52, 1  ;;  %v642_v21 = vadd.f32 %v641_v51, %v640_v23  ;;  %v6744_v39 = vld [vmem:[#allocation5 + $0x6d4] sm:$0xf0]  ;;  %v6746_v0 = vld [vmem:[#allocation5 + $0x750] sm:$0xf] }
 0x18f   :  { %v754_v7 = vadd.f32 %v753_v26, %v752_v49  ;;  %v866_v32 = vadd.f32 %v865_v37, %v864_v58  ;;  %v1313_v60 = vrot.slane %v1312_v6, 1  ;;  %v978_v29 = vadd.f32 %v977_v12, %v976_v35  ;;  %v6748_v23 = vld [vmem:[#allocation5 + $0x754] sm:$0xf0]  ;;  %v6750_v49 = vld [vmem:[#allocation2 + $0x70] sm:$0xff]  ;;  %v6759_v51 = vld [vmem:[#allocation5 + $0x640] sm:$0xf] }
 0x190   :  { %v1090_v38 = vadd.f32 %v1089_v28, %v1088_v24  ;;  %v1202_v10 = vadd.f32 %v1201_v30, %v1200_v52  ;;  %v1354_v1 = vmul.f32 0.0625, %v530_v63  ;;  %v1370_v57 = vmul.f32 0.0625, %v642_v21  ;;  %7338 = vst [vmem:[#allocation25_spill] sm:$0xff] %v6750_v49  ;;  %v6755_v24 = vld [vmem:[#allocation5 + $0x7d0] sm:$0xf] }
 0x191   :  { %v1314_v31 = vadd.f32 %v1313_v60, %v1312_v6  ;;  %v1386_v20 = vmul.f32 0.0625, %v754_v7  ;;  %v1402_v17 = vmul.f32 0.0625, %v866_v32  ;;  %v1418_v41 = vmul.f32 0.0625, %v978_v29  ;;  %v6757_v52 = vld [vmem:[#allocation5 + $0x7d4] sm:$0xf0] }
 0x192   :  { %v1434_v47 = vmul.f32 0.0625, %v1090_v38  ;;  %v1450_v3 = vmul.f32 0.0625, %v1202_v10  ;;  %v1762_v14 = vpack.c.bf16 %v1354_v1, %v1354_v1  ;;  %v1683_v22 = vsel %vm1599_vm0, %v1370_v57, %v1354_v1  ;;  %v6761_v26 = vld [vmem:[#allocation5 + $0x644] sm:$0xf0]  ;;  %v6763_v37 = vld [vmem:[#allocation5 + $0x6c0] sm:$0xf] }
 0x193   :  { %v1466_v34 = vmul.f32 0.0625, %v1314_v31  ;;  %v1778_v56 = vpack.c.bf16 %v1370_v57, %v1370_v57  ;;  %v1794_v50 = vpack.c.bf16 %v1386_v20, %v1386_v20  ;;  %v1684_v16 = vsel %vm1601_vm1, %v1386_v20, %v1683_v22  ;;  %v6765_v6 = vld [vmem:[#allocation5 + $0x6c4] sm:$0xf0]  ;;  %v6771_v21 = vld [vmem:[#allocation5 + $0x740] sm:$0xf] }
 0x194   :  { %v1810_v8 = vpack.c.bf16 %v1402_v17, %v1402_v17  ;;  %v1826_v44 = vpack.c.bf16 %v1418_v41, %v1418_v41  ;;  %v1842_v42 = vpack.c.bf16 %v1434_v47, %v1434_v47  ;;  %v1685_v18 = vsel %vm1603_vm2, %v1402_v17, %v1684_v16  ;;  %v6773_v7 = vld [vmem:[#allocation5 + $0x744] sm:$0xf0]  ;;  %v6775_v32 = vld [vmem:[#allocation5 + $0x7c0] sm:$0xf]  ;;  %v6779_v29 = vld [vmem:[#allocation5 + $0x630] sm:$0xf] }
 0x195   :  { %v1858_v40 = vpack.c.bf16 %v1450_v3, %v1450_v3  ;;  %v1874_v4 = vpack.c.bf16 %v1466_v34, %v1466_v34  ;;  %v2281_v48 = vunpack.c.l.b16 %v1762_v14  ;;  %v1686_v61 = vsel %vm1605_vm3, %v1418_v41, %v1685_v18  ;;  %v6777_v60 = vld [vmem:[#allocation5 + $0x7c4] sm:$0xf0]  ;;  %v6781_v38 = vld [vmem:[#allocation5 + $0x634] sm:$0xf0]  ;;  %v6788_v20 = vld [vmem:[#allocation5 + $0x6b0] sm:$0xf] }
 0x196   :  { %v2297_v11 = vunpack.c.l.b16 %v1778_v56  ;;  %v2313_v2 = vunpack.c.l.b16 %v1794_v50  ;;  %v2329_v36 = vunpack.c.l.b16 %v1810_v8  ;;  %v1687_v58 = vsel %vm1607_vm4, %v1434_v47, %v1686_v61  ;;  %v6790_v17 = vld [vmem:[#allocation5 + $0x6b4] sm:$0xf0]  ;;  %v6792_v41 = vld [vmem:[#allocation5 + $0x730] sm:$0xf]  ;;  %v6805_v50 = vld [vmem:[#allocation5 + $0x620] sm:$0xf] }
 0x197   :  { %v2345_v5 = vunpack.c.l.b16 %v1826_v44  ;;  %v2361_v53 = vunpack.c.l.b16 %v1842_v42  ;;  %v6753_v35 = vunpack.c.l.b16 %v1858_v40  ;;  %v1688_v63 = vsel %vm1609_vm5, %v1450_v3, %v1687_v58  ;;  %v6794_v47 = vld [vmem:[#allocation5 + $0x734] sm:$0xf0]  ;;  %v6796_v3 = vld [vmem:[#allocation5 + $0x7b0] sm:$0xf]  ;;  %v6811_v16 = vld [vmem:[#allocation5 + $0x6a4] sm:$0xf0] }
 0x198   :  { %v6768_v12 = vunpack.c.l.b16 %v1874_v4  ;;  %v2475_v28 = vsel %vm1599_vm0, %v2297_v11, %v2281_v48  ;;  %v5172_v30 = vor.u32 %v5582_v13, %v5171_v46  ;;  %v1689_v10 = vsel %vm1611_vm6, %v1466_v34, %v1688_v63  ;;  %v6798_v14 = vld [vmem:[#allocation5 + $0x7b4] sm:$0xf0]  ;;  %v6807_v46 = vld [vmem:[#allocation5 + $0x624] sm:$0xf0]  ;;  %v6809_v13 = vld [vmem:[#allocation5 + $0x6a0] sm:$0xf] }
 0x199   :  { %v2476_v1 = vsel %vm1601_vm1, %v2313_v2, %v2475_v28  ;;  %v5236_v31 = vor.u32 %v6726_v62, %v6724_v43  ;;  %v5300_v57 = vor.u32 %v5614_v15, %v6728_v25  ;;  %1745 = vst [vmem:[#allocation9 + $0x58] sm:$0xff] %v1689_v10  ;;  %v5364_v22 = vor.u32 %v6733_v55, %v6731_v33  ;;  %v6813_v8 = vld [vmem:[#allocation2 + $0xb0] sm:$0xff]  ;;  %v6821_v25 = vld [vmem:[#allocation5 + $0x720] sm:$0xf]  ;;  %v6823_v15 = vld [vmem:[#allocation5 + $0x724] sm:$0xf0] }
 0x19a   :  { %v2477_v34 = vsel %vm1603_vm2, %v2329_v36, %v2476_v1  ;;  %3979 = vmatpush.bf16.msrb.mxu0 %v5172_v30  ;;  %v5164_v56 = vor.u32 %v6737_v27, %v6735_v59  ;;  %7339 = vst [vmem:[#allocation27_spill] sm:$0xff] %v6813_v8  ;;  %v5228_v43 = vor.u32 %v6744_v39, %v6742_v54  ;;  %v6825_v18 = vld [vmem:[#allocation5 + $0x7a0] sm:$0xf]  ;;  %v6827_v40 = vld [vmem:[#allocation5 + $0x7a4] sm:$0xf0]  ;;  %v6889_v10 = vld [vmem:[#allocation2 + $0xf0] sm:$0xff] }
 0x19b   :  { %v2478_v42 = vsel %vm1605_vm3, %v2345_v5, %v2477_v34  ;;  %3992 = vmatpush.bf16.msrb.mxu1 %v5236_v31  ;;  %4005 = vmatpush.bf16.msrb.mxu2 %v5300_v57  ;;  %v5292_v62 = vor.u32 %v6748_v23, %v6746_v0  ;;  %v6829_v4 = vld [vmem:[#allocation5 + $0x610] sm:$0xf]  ;;  %v6831_v48 = vld [vmem:[#allocation5 + $0x614] sm:$0xf0]  ;;  %v5356_v61 = vor.u32 %v6757_v52, %v6755_v24  ;;  %v6853_v23 = vld [vmem:[#allocation5 + $0x600] sm:$0xf] }
 0x19c   :  { %v6833_v33 = vld [vmem:[#allocation5 + $0x690] sm:$0xf]  ;;  %v6835_v55 = vld [vmem:[#allocation5 + $0x694] sm:$0xf0]  ;;  %v2479_v27 = vsel %vm1607_vm4, %v2361_v53, %v2478_v42  ;;  %4018 = vmatpush.bf16.msrb.mxu3 %v5364_v22  ;;  %v5156_v11 = vor.u32 %v6761_v26, %v6759_v51  ;;  %v5220_v2 = vor.u32 %v6765_v6, %v6763_v37  ;;  %v6855_v58 = vld [vmem:[#allocation5 + $0x604] sm:$0xf0]  ;;  %v5284_v52 = vor.u32 %v6773_v7, %v6771_v21 }
 0x19d   :  { %v6845_v36 = vld [vmem:[#allocation5 + $0x710] sm:$0xf]  ;;  %v6847_v54 = vld [vmem:[#allocation5 + $0x714] sm:$0xf0]  ;;  %v6857_v5 = vld [vmem:[#allocation5 + $0x680] sm:$0xf]  ;;  %v2480_v24 = vsel %vm1609_vm5, %v6753_v35, %v2479_v27  ;;  %v5348_v51 = vor.u32 %v6777_v60, %v6775_v32 }
 0x19e   :  { %v6849_v39 = vld [vmem:[#allocation5 + $0x790] sm:$0xf]  ;;  %v6851_v0 = vld [vmem:[#allocation5 + $0x794] sm:$0xf0]  ;;  %v6859_v53 = vld [vmem:[#allocation5 + $0x684] sm:$0xf0]  ;;  %v2481_v28 = vsel %vm1611_vm6, %v6768_v12, %v2480_v24  ;;  %3980 = vmatpush.bf16.msrb.mxu0 %v5164_v56  ;;  %v235_v24 = vunpack.c.l.bf16 %v6813_v8 }
 0x19f   :  { %v6869_v37 = vld [vmem:[#allocation5 + $0x700] sm:$0xf]  ;;  %v6871_v6 = vld [vmem:[#allocation5 + $0x704] sm:$0xf0]  ;;  %v6885_v32 = vld [vmem:[#allocation5 + $0x74] sm:$0xf]  ;;  %v6893_v12 = vpack.c.b16 %v2481_v28, %v2481_v28  ;;  %3993 = vmatpush.bf16.msrb.mxu1 %v5228_v43  ;;  %4006 = vmatpush.bf16.msrb.mxu2 %v5292_v62  ;;  %v251_v28 = vunpack.c.l.bf16 %v6889_v10 }
 0x1a0   :  { %v6873_v63 = vld [vmem:[#allocation5 + $0x780] sm:$0xf]  ;;  %v6883_v7 = vld [vmem:[#allocation5 + $0x784] sm:$0xf0]  ;;  %v6887_v60 = vld [vmem:[#allocation5 + $0x78] sm:$0xf0]  ;;  %4019 = vmatpush.bf16.msrb.mxu3 %v5356_v61 }
 0x1a1   :  { %7340 = vst [vmem:[#allocation28_spill] sm:$0xff] %v6889_v10  ;;  %v6891_v1 = vld [vmem:[#allocation2 + $0x130] sm:$0xff]  ;;  %v6901_v22 = vld [vmem:[#allocation5 + $0xf8] sm:$0xf0]  ;;  %3973 = vmatmul.bf16.vlgmr.msra.gmra.mxu3 %v6893_v12 }
 0x1a2   :  { %7341 = vst [vmem:[#allocation29_spill] sm:$0xff] %v6891_v1  ;;  %v6899_v34 = vld [vmem:[#allocation5 + $0xf4] sm:$0xf]  ;;  %v6918_v31 = vld [vmem:[#allocation5 + $0x178] sm:$0xf0]  ;;  %3981 = vmatpush.bf16.msrb.mxu0 %v5156_v11  ;;  %v267_v45 = vunpack.c.l.bf16 %v6891_v1 }
 0x1a3   :  { %7342 = vst [vmem:[#allocation30_spill] sm:$0xff] %v6893_v12  ;;  %v6903_v56 = vld [vmem:[#allocation5 + $0x174] sm:$0xf]  ;;  %v6922_v30 = vld [vmem:[#allocation5 + $0x1f8] sm:$0xf0]  ;;  %3994 = vmatpush.bf16.msrb.mxu1 %v5220_v2  ;;  %4007 = vmatpush.bf16.msrb.mxu2 %v5284_v52 }
 0x1a4   :  { %v6905_v42 = vld [vmem:[#allocation2 + $0x170] sm:$0xff]  ;;  %7345 = vst [vmem:[#allocation33_spill] sm:$0xff] %v6918_v31  ;;  %4020 = vmatpush.bf16.msrb.mxu3 %v5348_v51  ;;  %v6969_v61 = vld [vmem:[#allocation2 + $0x38] sm:$0xff]  ;;  %v7357_v51 = vor.u32 %v6781_v38, %v6779_v29  ;;  %v643_v29 = vadd.f32 %v251_v28, %v235_v24 }
 0x1a5   :  { %7343 = vst [vmem:[#allocation31_spill] sm:$0xff] %v6905_v42  ;;  %v6907_v27 = vld [vmem:[#allocation2 + $0x1b0] sm:$0xff]  ;;  %v283_v2 = vunpack.c.l.bf16 %v6905_v42  ;;  %v7358_v42 = vunpack.c.l.bf16 %v6739_v19 }
 0x1a6   :  { %7344 = vst [vmem:[#allocation32_spill] sm:$0xff] %v6907_v27  ;;  %v6920_v21 = vld [vmem:[#allocation5 + $0x1f4] sm:$0xf]  ;;  %v299_v52 = vunpack.c.l.bf16 %v6907_v27  ;;  %3982 = vmatpush.bf16.msrb.mxu0 %v7357_v51 }
 0x1a7   :  { %7346 = vst [vmem:[#allocation34_spill] sm:$0xff] %v6920_v21  ;;  %v6933_v43 = vld [vmem:[#allocation2 + $0x1f0] sm:$0xff]  ;;  %v755_v38 = vadd.f32 %v283_v2, %v267_v45 }
 0x1a8   :  { %7347 = vst [vmem:[#allocation35_spill] sm:$0xff] %v6922_v30  ;;  %v6935_v35 = vld [vmem:[#allocation2 + $0x230] sm:$0xff]  ;;  %v315_v11 = vunpack.c.l.bf16 %v6933_v43 }
 0x1a9   :  { %7348 = vst [vmem:[#allocation36_spill] sm:$0xff] %v6933_v43  ;;  %v6937_v59 = vld [vmem:[#allocation2 + $0x270] sm:$0xff]  ;;  %v331_v8 = vunpack.c.l.bf16 %v6935_v35 }
 0x1aa   :  { %7349 = vst [vmem:[#allocation37_spill] sm:$0xff] %v6935_v35  ;;  %v6947_v57 = vld [vmem:[#allocation2 + $0x2b0] sm:$0xff]  ;;  %v347_v30 = vunpack.c.l.bf16 %v6937_v59  ;;  %v443_v35 = vunpack.c.l.bf16 %v6961_v9  ;;  %v867_v51 = vadd.f32 %v315_v11, %v299_v52  ;;  %v7362_v9 = vor.u32 %v6798_v14, %v6796_v3 }
 0x1ab   :  { %7350 = vst [vmem:[#allocation38_spill] sm:$0xff] %v6937_v59  ;;  %v6949_v26 = vld [vmem:[#allocation2 + $0x2f0] sm:$0xff]  ;;  %v363_v21 = vunpack.c.l.bf16 %v6947_v57  ;;  %v7359_v59 = vunpack.c.l.bf16 %v6750_v49  ;;  %v644_v49 = vrot.slane %v643_v29, 4  ;;  %v7364_v3 = vor.u32 %v6811_v16, %v6809_v13 }
 0x1ac   :  { %7351 = vst [vmem:[#allocation39_spill] sm:$0xff] %v6947_v57  ;;  %v6951_v12 = vld [vmem:[#allocation2 + $0x330] sm:$0xff]  ;;  %v379_v31 = vunpack.c.l.bf16 %v6949_v26  ;;  %4021 = vmatpush.bf16.msrb.mxu3 %v7362_v9  ;;  %v979_v57 = vadd.f32 %v347_v30, %v331_v8  ;;  %v7365_v9 = vor.u32 %v6823_v15, %v6821_v25  ;;  %v7367_v25 = vor.u32 %v6831_v48, %v6829_v4 }
 0x1ad   :  { %7352 = vst [vmem:[#allocation40_spill] sm:$0xff] %v6949_v26  ;;  %v6957_v44 = vld [vmem:[#allocation2 + $0x370] sm:$0xff]  ;;  %v395_v10 = vunpack.c.l.bf16 %v6951_v12  ;;  %v531_v1 = vadd.f32 %v7359_v59, %v7358_v42  ;;  %v7360_v26 = vor.u32 %v6790_v17, %v6788_v20  ;;  %v756_v20 = vrot.slane %v755_v38, 4 }
 0x1ae   :  { %7353 = vst [vmem:[#allocation41_spill] sm:$0xff] %v6951_v12  ;;  %v6959_v62 = vld [vmem:[#allocation2 + $0x3b0] sm:$0xff]  ;;  %v411_v27 = vunpack.c.l.bf16 %v6957_v44  ;;  %v7361_v12 = vor.u32 %v6794_v47, %v6792_v41  ;;  %v1091_v59 = vadd.f32 %v379_v31, %v363_v21  ;;  %v868_v17 = vrot.slane %v867_v51, 4 }
 0x1af   :  { %7354 = vst [vmem:[#allocation42_spill] sm:$0xff] %v6957_v44  ;;  %v427_v43 = vunpack.c.l.bf16 %v6959_v62  ;;  %3995 = vmatpush.bf16.msrb.mxu1 %v7360_v26  ;;  %v532_v44 = vrot.slane %v531_v1, 4  ;;  %v7363_v41 = vor.u32 %v6807_v46, %v6805_v50  ;;  %v980_v47 = vrot.slane %v979_v57, 4 }
 0x1b0   :  { %7355 = vst [vmem:[#allocation43_spill] sm:$0xff] %v6959_v62  ;;  %4008 = vmatpush.bf16.msrb.mxu2 %v7361_v12  ;;  %v205_v62 = vunpack.c.l.bf16 %v6969_v61  ;;  %v1203_v42 = vadd.f32 %v411_v27, %v395_v10  ;;  %v1092_v12 = vrot.slane %v1091_v59, 4  ;;  %v645_v14 = vadd.f32 %v644_v49, %v643_v29 }
 0x1b1   :  { %v1315_v26 = vadd.f32 %v443_v35, %v427_v43  ;;  %3983 = vmatpush.bf16.msrb.mxu0 %v7363_v41  ;;  %v533_v45 = vadd.f32 %v532_v44, %v531_v1  ;;  %v757_v8 = vadd.f32 %v756_v20, %v755_v38  ;;  %v869_v30 = vadd.f32 %v868_v17, %v867_v51 }
 0x1b2   :  { %v1204_v24 = vrot.slane %v1203_v42, 4  ;;  %v7366_v50 = vor.u32 %v6827_v40, %v6825_v18  ;;  %v981_v44 = vadd.f32 %v980_v47, %v979_v57  ;;  %v1093_v21 = vadd.f32 %v1092_v12, %v1091_v59 }
 0x1b3   :  { %3996 = vmatpush.bf16.msrb.mxu1 %v7364_v3  ;;  %v1316_v35 = vrot.slane %v1315_v26, 4  ;;  %v534_v46 = vrot.slane %v533_v45, 2  ;;  %v646_v1 = vrot.slane %v645_v14, 2  ;;  %v758_v31 = vrot.slane %v757_v8, 2 }
 0x1b4   :  { %4009 = vmatpush.bf16.msrb.mxu2 %v7365_v9  ;;  %4022 = vmatpush.bf16.msrb.mxu3 %v7366_v50  ;;  %v1205_v10 = vadd.f32 %v1204_v24, %v1203_v42  ;;  %v870_v13 = vrot.slane %v869_v30, 2  ;;  %v982_v15 = vrot.slane %v981_v44, 2  ;;  %v1094_v27 = vrot.slane %v1093_v21, 2 }
 0x1b5   :  { %v1317_v16 = vadd.f32 %v1316_v35, %v1315_v26  ;;  %3984 = vmatpush.bf16.msrb.mxu0 %v7367_v25  ;;  %v535_v49 = vadd.f32 %v534_v46, %v533_v45  ;;  %v7368_v18 = vor.u32 %v6835_v55, %v6833_v33  ;;  %v7369_v40 = vor.u32 %v6847_v54, %v6845_v36 }
 0x1b6   :  { %v1206_v43 = vrot.slane %v1205_v10, 2  ;;  %v647_v57 = vadd.f32 %v646_v1, %v645_v14  ;;  %v759_v28 = vadd.f32 %v758_v31, %v757_v8  ;;  %v871_v11 = vadd.f32 %v870_v13, %v869_v30  ;;  %v7379_v8 = vld [vmem:[#allocation34_spill] sm:$0xff]  ;;  %v7380_v30 = vld [vmem:[#allocation35_spill] sm:$0xff] }
 0x1b7   :  { %3997 = vmatpush.bf16.msrb.mxu1 %v7368_v18  ;;  %v1318_v2 = vrot.slane %v1317_v16, 2  ;;  %v7370_v4 = vor.u32 %v6851_v0, %v6849_v39  ;;  %v536_v48 = vrot.slane %v535_v49, 1  ;;  %v983_v52 = vadd.f32 %v982_v15, %v981_v44  ;;  %v7046_v15 = vld [vmem:[#allocation2 + $0x78] sm:$0xff] }
 0x1b8   :  { %4010 = vmatpush.bf16.msrb.mxu2 %v7369_v40  ;;  %v1095_v29 = vadd.f32 %v1094_v27, %v1093_v21  ;;  %v1207_v38 = vadd.f32 %v1206_v43, %v1205_v10  ;;  %v648_v51 = vrot.slane %v647_v57, 1  ;;  %v760_v59 = vrot.slane %v759_v28, 1 }
 0x1b9   :  { %4023 = vmatpush.bf16.msrb.mxu3 %v7370_v4  ;;  %v872_v33 = vrot.slane %v871_v11, 1  ;;  %v1319_v55 = vadd.f32 %v1318_v2, %v1317_v16  ;;  %v7371_v36 = vor.u32 %v6855_v58, %v6853_v23  ;;  %v537_v54 = vadd.f32 %v536_v48, %v535_v49 }
 0x1ba   :  { %v984_v42 = vrot.slane %v983_v52, 1  ;;  %v1096_v20 = vrot.slane %v1095_v29, 1  ;;  %v1208_v17 = vrot.slane %v1207_v38, 1  ;;  %v7372_v39 = vor.u32 %v6859_v53, %v6857_v5 }
 0x1bb   :  { %3985 = vmatpush.bf16.msrb.mxu0 %v7371_v36  ;;  %v7373_v0 = vor.u32 %v6871_v6, %v6869_v37  ;;  %v649_v26 = vadd.f32 %v648_v51, %v647_v57  ;;  %v761_v41 = vadd.f32 %v760_v59, %v759_v28  ;;  %v873_v45 = vadd.f32 %v872_v33, %v871_v11  ;;  %v7377_v6 = vld [vmem:[#allocation33_spill] sm:$0xff]  ;;  %v7049_v57 = vld [vmem:[#allocation2 + $0xb8] sm:$0xff] }
 0x1bc   :  { %3998 = vmatpush.bf16.msrb.mxu1 %v7372_v39  ;;  %v1320_v47 = vrot.slane %v1319_v55, 1  ;;  %v7374_v23 = vor.u32 %v6883_v7, %v6873_v63  ;;  %v7375_v58 = vor.u32 %v6885_v32, %v6887_v60  ;;  %v985_v12 = vadd.f32 %v984_v42, %v983_v52  ;;  %v7051_v28 = vld [vmem:[#allocation2 + $0xf8] sm:$0xff] }
 0x1bd   :  { %4011 = vmatpush.bf16.msrb.mxu2 %v7373_v0  ;;  %v1097_v24 = vadd.f32 %v1096_v20, %v1095_v29  ;;  %v1209_v5 = vadd.f32 %v1208_v17, %v1207_v38  ;;  %v1355_v53 = vmul.f32 0.0625, %v537_v54  ;;  %v7376_v37 = vor.u32 %v6899_v34, %v6901_v22  ;;  %v7054_v52 = vld [vmem:[#allocation2 + $0x138] sm:$0xff] }
 0x1be   :  { %4024 = vmatpush.bf16.msrb.mxu3 %v7374_v23  ;;  %v7378_v3 = vor.u32 %v6903_v56, %v7377_v6  ;;  %v1321_v9 = vadd.f32 %v1320_v47, %v1319_v55  ;;  %v1371_v14 = vmul.f32 0.0625, %v649_v26  ;;  %v1387_v63 = vmul.f32 0.0625, %v761_v41  ;;  %v7056_v29 = vld [vmem:[#allocation2 + $0x178] sm:$0xff] }
 0x1bf   :  { %4030 = vmatpush.bf16.msra.mxu0 %v7375_v58  ;;  %v1403_v7 = vmul.f32 0.0625, %v873_v45  ;;  %v7381_v32 = vor.u32 %v7379_v8, %v7380_v30  ;;  %v1419_v60 = vmul.f32 0.0625, %v985_v12  ;;  %v1435_v35 = vmul.f32 0.0625, %v1097_v24  ;;  %v7058_v38 = vld [vmem:[#allocation2 + $0x1b8] sm:$0xff] }
 0x1c0   :  { %4043 = vmatpush.bf16.msra.mxu1 %v7376_v37  ;;  %v1451_v50 = vmul.f32 0.0625, %v1209_v5  ;;  %v1763_v46 = vpack.c.bf16 %v1355_v53, %v1355_v53  ;;  %v1467_v44 = vmul.f32 0.0625, %v1321_v9  ;;  %v1690_v34 = vsel %vm1599_vm0, %v1371_v14, %v1355_v53  ;;  %v7062_v55 = vld [vmem:[#allocation2 + $0x1f8] sm:$0xff] }
 0x1c1   :  { %4056 = vmatpush.bf16.msra.mxu2 %v7378_v3  ;;  %v1779_v22 = vpack.c.bf16 %v1371_v14, %v1371_v14  ;;  %v1795_v21 = vpack.c.bf16 %v1387_v63, %v1387_v63  ;;  %v1691_v56 = vsel %vm1601_vm1, %v1387_v63, %v1690_v34  ;;  %v1811_v10 = vpack.c.bf16 %v1403_v7, %v1403_v7  ;;  %v7064_v36 = vld [vmem:[#allocation2 + $0x238] sm:$0xff] }
 0x1c2   :  { %4069 = vmatpush.bf16.msra.mxu3 %v7381_v32  ;;  %v1827_v1 = vpack.c.bf16 %v1419_v60, %v1419_v60  ;;  %v1843_v31 = vpack.c.bf16 %v1435_v35, %v1435_v35  ;;  %v1692_v13 = vsel %vm1603_vm2, %v1403_v7, %v1691_v56  ;;  %v1859_v16 = vpack.c.bf16 %v1451_v50, %v1451_v50  ;;  %v7066_v54 = vld [vmem:[#allocation2 + $0x278] sm:$0xff] }
 0x1c3   :  { %v1875_v25 = vpack.c.bf16 %v1467_v44, %v1467_v44  ;;  %v2282_v49 = vunpack.c.l.b16 %v1763_v46  ;;  %v1693_v27 = vsel %vm1605_vm3, %v1419_v60, %v1692_v13  ;;  %v2298_v43 = vunpack.c.l.b16 %v1779_v22  ;;  %v7071_v39 = vld [vmem:[#allocation2 + $0x2b8] sm:$0xff] }
 0x1c4   :  { %v2314_v18 = vunpack.c.l.b16 %v1795_v21  ;;  %v2330_v40 = vunpack.c.l.b16 %v1811_v10  ;;  %v1694_v11 = vsel %vm1607_vm4, %v1435_v35, %v1693_v27  ;;  %v2346_v2 = vunpack.c.l.b16 %v1827_v1  ;;  %v7073_v0 = vld [vmem:[#allocation2 + $0x2f8] sm:$0xff] }
 0x1c5   :  { %v2362_v4 = vunpack.c.l.b16 %v1843_v31  ;;  %v2378_v48 = vunpack.c.l.b16 %v1859_v16  ;;  %v1695_v51 = vsel %vm1609_vm5, %v1451_v50, %v1694_v11  ;;  %v2394_v59 = vunpack.c.l.b16 %v1875_v25  ;;  %v7075_v26 = vld [vmem:[#allocation2 + $0x338] sm:$0xff] }
 0x1c6   :  { %v2482_v33 = vsel %vm1599_vm0, %v2298_v43, %v2282_v49  ;;  %v221_v42 = vunpack.c.l.bf16 %v7046_v15  ;;  %v1696_v20 = vsel %vm1611_vm6, %v1467_v44, %v1695_v51  ;;  %v237_v41 = vunpack.c.l.bf16 %v7049_v57  ;;  %v7080_v23 = vld [vmem:[#allocation2 + $0x378] sm:$0xff] }
 0x1c7   :  { %v2483_v17 = vsel %vm1601_vm1, %v2314_v18, %v2482_v33  ;;  %v253_v45 = vunpack.c.l.bf16 %v7051_v28  ;;  %1746 = vst [vmem:[#allocation9 + $0x60] sm:$0xff] %v1696_v20  ;;  %v7082_v58 = vld [vmem:[#allocation2 + $0x3b8] sm:$0xff]  ;;  %v269_v24 = vunpack.c.l.bf16 %v7054_v52  ;;  %v285_v5 = vunpack.c.l.bf16 %v7056_v29 }
 0x1c8   :  { %v2484_v47 = vsel %vm1603_vm2, %v2330_v40, %v2483_v17  ;;  %v7084_v12 = vld [vmem:[#allocation2 + $0x3f8] sm:$0xff]  ;;  %v301_v53 = vunpack.c.l.bf16 %v7058_v38  ;;  %v317_v6 = vunpack.c.l.bf16 %v7062_v55  ;;  %v333_v3 = vunpack.c.l.bf16 %v7064_v36 }
 0x1c9   :  { %v2485_v37 = vsel %vm1605_vm3, %v2346_v2, %v2484_v47  ;;  %v349_v9 = vunpack.c.l.bf16 %v7066_v54  ;;  %v365_v63 = vunpack.c.l.bf16 %v7071_v39  ;;  %v381_v7 = vunpack.c.l.bf16 %v7073_v0 }
 0x1ca   :  { %v2486_v14 = vsel %vm1607_vm4, %v2362_v4, %v2485_v37  ;;  %v397_v8 = vunpack.c.l.bf16 %v7075_v26  ;;  %v413_v32 = vunpack.c.l.bf16 %v7080_v23  ;;  %v429_v60 = vunpack.c.l.bf16 %v7082_v58 }
 0x1cb   :  { %v2487_v30 = vsel %vm1609_vm5, %v2378_v48, %v2486_v14  ;;  %v445_v35 = vunpack.c.l.bf16 %v7084_v12  ;;  %v545_v46 = vadd.f32 %v221_v42, %v205_v62  ;;  %v657_v44 = vadd.f32 %v253_v45, %v237_v41 }
 0x1cc   :  { %v2488_v50 = vsel %vm1611_vm6, %v2394_v59, %v2487_v30  ;;  %v769_v34 = vadd.f32 %v285_v5, %v269_v24  ;;  %v881_v21 = vadd.f32 %v317_v6, %v301_v53  ;;  %v993_v56 = vadd.f32 %v349_v9, %v333_v3 }
 0x1cd   :  { %v7104_v22 = vpack.c.b16 %v2488_v50, %v2488_v50  ;;  %v1105_v10 = vadd.f32 %v381_v7, %v365_v63  ;;  %v546_v1 = vrot.slane %v545_v46, 4  ;;  %v658_v31 = vrot.slane %v657_v44, 4 }
 0x1ce   :  { %v770_v13 = vrot.slane %v769_v34, 4  ;;  %v1217_v16 = vadd.f32 %v413_v32, %v397_v8  ;;  %v882_v25 = vrot.slane %v881_v21, 4  ;;  %v994_v49 = vrot.slane %v993_v56, 4 }
 0x1cf   :  { %3986 = vmatmul.bf16.vlgmr.msrb.gmra.mxu0 %v7104_v22  ;;  %v1106_v27 = vrot.slane %v1105_v10, 4  ;;  %v1329_v43 = vadd.f32 %v445_v35, %v429_v60  ;;  %v547_v18 = vadd.f32 %v546_v1, %v545_v46  ;;  %v659_v40 = vadd.f32 %v658_v31, %v657_v44 }
 0x1d0   :  { %v771_v62 = vadd.f32 %v770_v13, %v769_v34  ;;  %v1218_v11 = vrot.slane %v1217_v16, 4  ;;  %v883_v2 = vadd.f32 %v882_v25, %v881_v21  ;;  %v995_v4 = vadd.f32 %v994_v49, %v993_v56 }
 0x1d1   :  { %v1107_v48 = vadd.f32 %v1106_v27, %v1105_v10  ;;  %v1330_v51 = vrot.slane %v1329_v43, 4  ;;  %v548_v59 = vrot.slane %v547_v18, 2  ;;  %v660_v33 = vrot.slane %v659_v40, 2 }
 0x1d2   :  { %v772_v42 = vrot.slane %v771_v62, 2  ;;  %v1219_v20 = vadd.f32 %v1218_v11, %v1217_v16  ;;  %v884_v17 = vrot.slane %v883_v2, 2  ;;  %v996_v41 = vrot.slane %v995_v4, 2 }
 0x1d3   :  { %v1108_v45 = vrot.slane %v1107_v48, 2  ;;  %v1331_v47 = vadd.f32 %v1330_v51, %v1329_v43  ;;  %v549_v24 = vadd.f32 %v548_v59, %v547_v18  ;;  %v661_v5 = vadd.f32 %v660_v33, %v659_v40 }
 0x1d4   :  { %v773_v53 = vadd.f32 %v772_v42, %v771_v62  ;;  %v1220_v37 = vrot.slane %v1219_v20, 2  ;;  %v885_v6 = vadd.f32 %v884_v17, %v883_v2  ;;  %v997_v3 = vadd.f32 %v996_v41, %v995_v4 }
 0x1d5   :  { %v1109_v9 = vadd.f32 %v1108_v45, %v1107_v48  ;;  %v1332_v14 = vrot.slane %v1331_v47, 2  ;;  %v550_v63 = vrot.slane %v549_v24, 1  ;;  %v662_v7 = vrot.slane %v661_v5, 1 }
 0x1d6   :  { %v774_v8 = vrot.slane %v773_v53, 1  ;;  %v1221_v30 = vadd.f32 %v1220_v37, %v1219_v20  ;;  %v886_v32 = vrot.slane %v885_v6, 1  ;;  %v998_v60 = vrot.slane %v997_v3, 1 }
 0x1d7   :  { %v1110_v35 = vrot.slane %v1109_v9, 1  ;;  %v1333_v50 = vadd.f32 %v1332_v14, %v1331_v47  ;;  %v551_v46 = vadd.f32 %v550_v63, %v549_v24  ;;  %v663_v44 = vadd.f32 %v662_v7, %v661_v5 }
 0x1d8   :  { %v775_v34 = vadd.f32 %v774_v8, %v773_v53  ;;  %v1222_v21 = vrot.slane %v1221_v30, 1  ;;  %v887_v56 = vadd.f32 %v886_v32, %v885_v6  ;;  %v999_v10 = vadd.f32 %v998_v60, %v997_v3  ;;  %v7382_v60 = vld [vmem:[#allocation25_spill] sm:$0xff] }
 0x1d9   :  { %v1111_v1 = vadd.f32 %v1110_v35, %v1109_v9  ;;  %v1334_v31 = vrot.slane %v1333_v50, 1  ;;  %v1357_v16 = vmul.f32 0.0625, %v551_v46  ;;  %v1373_v25 = vmul.f32 0.0625, %v663_v44  ;;  %v7383_v46 = vld [vmem:[#allocation27_spill] sm:$0xff] }
 0x1da   :  { %v1223_v13 = vadd.f32 %v1222_v21, %v1221_v30  ;;  %v1389_v49 = vmul.f32 0.0625, %v775_v34  ;;  %v1405_v43 = vmul.f32 0.0625, %v887_v56  ;;  %v1421_v18 = vmul.f32 0.0625, %v999_v10  ;;  %v7384_v34 = vld [vmem:[#allocation28_spill] sm:$0xff]  ;;  %v7385_v56 = vld [vmem:[#allocation29_spill] sm:$0xff] }
 0x1db   :  { %v1335_v27 = vadd.f32 %v1334_v31, %v1333_v50  ;;  %v1437_v40 = vmul.f32 0.0625, %v1111_v1  ;;  %v1704_v11 = vsel %vm1599_vm0, %v1373_v25, %v1357_v16  ;;  %v1765_v2 = vpack.c.bf16 %v1357_v16, %v1357_v16  ;;  %v7386_v31 = vld [vmem:[#allocation31_spill] sm:$0xff]  ;;  %v7387_v16 = vld [vmem:[#allocation32_spill] sm:$0xff] }
 0x1dc   :  { %v1453_v62 = vmul.f32 0.0625, %v1223_v13  ;;  %v1781_v4 = vpack.c.bf16 %v1373_v25, %v1373_v25  ;;  %v1705_v51 = vsel %vm1601_vm1, %v1389_v49, %v1704_v11  ;;  %v1797_v59 = vpack.c.bf16 %v1389_v49, %v1389_v49  ;;  %v7388_v49 = vld [vmem:[#allocation36_spill] sm:$0xff]  ;;  %v7391_v11 = vld [vmem:[#allocation39_spill] sm:$0xff] }
 0x1dd   :  { %v1469_v48 = vmul.f32 0.0625, %v1335_v27  ;;  %v1813_v33 = vpack.c.bf16 %v1405_v43, %v1405_v43  ;;  %v1706_v42 = vsel %vm1603_vm2, %v1405_v43, %v1705_v51  ;;  %v1829_v20 = vpack.c.bf16 %v1421_v18, %v1421_v18  ;;  %v7389_v43 = vld [vmem:[#allocation37_spill] sm:$0xff] }
 0x1de   :  { %v1845_v17 = vpack.c.bf16 %v1437_v40, %v1437_v40  ;;  %v1861_v41 = vpack.c.bf16 %v1453_v62, %v1453_v62  ;;  %v1707_v45 = vsel %vm1605_vm3, %v1421_v18, %v1706_v42  ;;  %v2284_v24 = vunpack.c.l.b16 %v1765_v2  ;;  %v7394_v42 = vld [vmem:[#allocation42_spill] sm:$0xff] }
 0x1df   :  { %v1877_v47 = vpack.c.bf16 %v1469_v48, %v1469_v48  ;;  %v2300_v5 = vunpack.c.l.b16 %v1781_v4  ;;  %v1708_v53 = vsel %vm1607_vm4, %v1437_v40, %v1707_v45  ;;  %v2316_v37 = vunpack.c.l.b16 %v1797_v59  ;;  %v7390_v40 = vld [vmem:[#allocation38_spill] sm:$0xff]  ;;  %v7393_v59 = vld [vmem:[#allocation41_spill] sm:$0xff] }
 0x1e0   :  { %v2332_v6 = vunpack.c.l.b16 %v1813_v33  ;;  %v2348_v3 = vunpack.c.l.b16 %v1829_v20  ;;  %v1709_v9 = vsel %vm1609_vm5, %v1453_v62, %v1708_v53  ;;  %v2364_v14 = vunpack.c.l.b16 %v1845_v17 }
 0x1e1   :  { %v2380_v63 = vunpack.c.l.b16 %v1861_v41  ;;  %v2396_v7 = vunpack.c.l.b16 %v1877_v47  ;;  %v1710_v8 = vsel %vm1611_vm6, %v1469_v48, %v1709_v9  ;;  %v2496_v30 = vsel %vm1599_vm0, %v2300_v5, %v2284_v24  ;;  %v7392_v48 = vld [vmem:[#allocation40_spill] sm:$0xff]  ;;  %v7395_v41 = vld [vmem:[#allocation43_spill] sm:$0xff] }
 0x1e2   :  { %v204_v32 = vunpack.c.h.bf16 %v6739_v19  ;;  %v220_v35 = vunpack.c.h.bf16 %v7382_v60  ;;  %1748 = vst [vmem:[#allocation9 + $0x70] sm:$0xff] %v1710_v8  ;;  %v2497_v50 = vsel %vm1601_vm1, %v2316_v37, %v2496_v30  ;;  %v236_v44 = vunpack.c.h.bf16 %v7383_v46  ;;  %v7396_v47 = vld [vmem:[#allocation44_spill] sm:$0xff] }
 0x1e3   :  { %v252_v21 = vunpack.c.h.bf16 %v7384_v34  ;;  %v268_v10 = vunpack.c.h.bf16 %v7385_v56  ;;  %v2498_v1 = vsel %vm1603_vm2, %v2332_v6, %v2497_v50  ;;  %v284_v13 = vunpack.c.h.bf16 %v7386_v31 }
 0x1e4   :  { %v300_v25 = vunpack.c.h.bf16 %v7387_v16  ;;  %v316_v27 = vunpack.c.h.bf16 %v7388_v49  ;;  %v2499_v19 = vsel %vm1605_vm3, %v2348_v3, %v2498_v1  ;;  %v332_v18 = vunpack.c.h.bf16 %v7389_v43 }
 0x1e5   :  { %v348_v62 = vunpack.c.h.bf16 %v7390_v40  ;;  %v364_v2 = vunpack.c.h.bf16 %v7391_v11  ;;  %v2500_v4 = vsel %vm1607_vm4, %v2364_v14, %v2499_v19  ;;  %v380_v51 = vunpack.c.h.bf16 %v7392_v48 }
 0x1e6   :  { %v396_v33 = vunpack.c.h.bf16 %v7393_v59  ;;  %v412_v20 = vunpack.c.h.bf16 %v7394_v42  ;;  %v2501_v17 = vsel %vm1609_vm5, %v2380_v63, %v2500_v4  ;;  %v428_v45 = vunpack.c.h.bf16 %v7395_v41 }
 0x1e7   :  { %v444_v24 = vunpack.c.h.bf16 %v7396_v47  ;;  %v538_v5 = vadd.f32 %v220_v35, %v204_v32  ;;  %v2502_v53 = vsel %vm1611_vm6, %v2396_v7, %v2501_v17  ;;  %v650_v37 = vadd.f32 %v252_v21, %v236_v44 }
 0x1e8   :  { %v762_v6 = vadd.f32 %v284_v13, %v268_v10  ;;  %v874_v3 = vadd.f32 %v316_v27, %v300_v25  ;;  %v7137_v9 = vpack.c.b16 %v2502_v53, %v2502_v53  ;;  %v986_v8 = vadd.f32 %v348_v62, %v332_v18 }
 0x1e9   :  { %v539_v14 = vrot.slane %v538_v5, 4  ;;  %v1098_v30 = vadd.f32 %v380_v51, %v364_v2  ;;  %v651_v60 = vrot.slane %v650_v37, 4  ;;  %v1210_v34 = vadd.f32 %v412_v20, %v396_v33 }
 0x1ea   :  { %v763_v50 = vrot.slane %v762_v6, 4  ;;  %v875_v46 = vrot.slane %v874_v3, 4  ;;  %4012 = vmatmul.bf16.vlgmr.msrb.gmra.mxu2 %v7137_v9  ;;  %v987_v56 = vrot.slane %v986_v8, 4  ;;  %v1322_v32 = vadd.f32 %v444_v24, %v428_v45 }
 0x1eb   :  { %v540_v63 = vadd.f32 %v539_v14, %v538_v5  ;;  %v1099_v1 = vrot.slane %v1098_v30, 4  ;;  %v652_v35 = vadd.f32 %v651_v60, %v650_v37  ;;  %v1211_v21 = vrot.slane %v1210_v34, 4 }
 0x1ec   :  { %v764_v7 = vadd.f32 %v763_v50, %v762_v6  ;;  %v876_v44 = vadd.f32 %v875_v46, %v874_v3  ;;  %v988_v31 = vadd.f32 %v987_v56, %v986_v8  ;;  %v1323_v16 = vrot.slane %v1322_v32, 4 }
 0x1ed   :  { %v541_v10 = vrot.slane %v540_v63, 2  ;;  %v1100_v13 = vadd.f32 %v1099_v1, %v1098_v30  ;;  %v653_v25 = vrot.slane %v652_v35, 2  ;;  %v1212_v19 = vadd.f32 %v1211_v21, %v1210_v34 }
 0x1ee   :  { %v765_v49 = vrot.slane %v764_v7, 2  ;;  %v877_v27 = vrot.slane %v876_v44, 2  ;;  %v989_v18 = vrot.slane %v988_v31, 2  ;;  %v1324_v62 = vadd.f32 %v1323_v16, %v1322_v32 }
 0x1ef   :  { %v542_v43 = vadd.f32 %v541_v10, %v540_v63  ;;  %v1101_v40 = vrot.slane %v1100_v13, 2  ;;  %v654_v11 = vadd.f32 %v653_v25, %v652_v35  ;;  %v1213_v48 = vrot.slane %v1212_v19, 2 }
 0x1f0   :  { %v766_v2 = vadd.f32 %v765_v49, %v764_v7  ;;  %v878_v4 = vadd.f32 %v877_v27, %v876_v44  ;;  %v990_v59 = vadd.f32 %v989_v18, %v988_v31  ;;  %v1325_v42 = vrot.slane %v1324_v62, 2 }
 0x1f1   :  { %v543_v51 = vrot.slane %v542_v43, 1  ;;  %v1102_v33 = vadd.f32 %v1101_v40, %v1100_v13  ;;  %v655_v20 = vrot.slane %v654_v11, 1  ;;  %v1214_v45 = vadd.f32 %v1213_v48, %v1212_v19 }
 0x1f2   :  { %v767_v17 = vrot.slane %v766_v2, 1  ;;  %v879_v41 = vrot.slane %v878_v4, 1  ;;  %v991_v24 = vrot.slane %v990_v59, 1  ;;  %v1326_v53 = vadd.f32 %v1325_v42, %v1324_v62 }
 0x1f3   :  { %v544_v47 = vadd.f32 %v543_v51, %v542_v43  ;;  %v1103_v5 = vrot.slane %v1102_v33, 1  ;;  %v656_v37 = vadd.f32 %v655_v20, %v654_v11  ;;  %v1215_v14 = vrot.slane %v1214_v45, 1 }
 0x1f4   :  { %v768_v6 = vadd.f32 %v767_v17, %v766_v2  ;;  %v880_v3 = vadd.f32 %v879_v41, %v878_v4  ;;  %v992_v8 = vadd.f32 %v991_v24, %v990_v59  ;;  %v1327_v60 = vrot.slane %v1326_v53, 1 }
 0x1f5   :  { %v1104_v30 = vadd.f32 %v1103_v5, %v1102_v33  ;;  %v1356_v50 = vmul.f32 0.0625, %v544_v47  ;;  %v1216_v46 = vadd.f32 %v1215_v14, %v1214_v45  ;;  %v1372_v34 = vmul.f32 0.0625, %v656_v37 }
 0x1f6   :  { %v1388_v63 = vmul.f32 0.0625, %v768_v6  ;;  %v1404_v56 = vmul.f32 0.0625, %v880_v3  ;;  %v1328_v1 = vadd.f32 %v1327_v60, %v1326_v53  ;;  %v1420_v32 = vmul.f32 0.0625, %v992_v8 }
 0x1f7   :  { %v1436_v35 = vmul.f32 0.0625, %v1104_v30  ;;  %v1764_v7 = vpack.c.bf16 %v1356_v50, %v1356_v50  ;;  %v1452_v44 = vmul.f32 0.0625, %v1216_v46  ;;  %v1697_v21 = vsel %vm1599_vm0, %v1372_v34, %v1356_v50 }
 0x1f8   :  { %v1780_v10 = vpack.c.bf16 %v1372_v34, %v1372_v34  ;;  %v1796_v31 = vpack.c.bf16 %v1388_v63, %v1388_v63  ;;  %v1468_v13 = vmul.f32 0.0625, %v1328_v1  ;;  %v1698_v16 = vsel %vm1601_vm1, %v1388_v63, %v1697_v21 }
 0x1f9   :  { %v1812_v25 = vpack.c.bf16 %v1404_v56, %v1404_v56  ;;  %v1828_v49 = vpack.c.bf16 %v1420_v32, %v1420_v32  ;;  %v1699_v27 = vsel %vm1603_vm2, %v1404_v56, %v1698_v16  ;;  %v1844_v19 = vpack.c.bf16 %v1436_v35, %v1436_v35 }
 0x1fa   :  { %v1860_v43 = vpack.c.bf16 %v1452_v44, %v1452_v44  ;;  %v2283_v18 = vunpack.c.l.b16 %v1764_v7  ;;  %v1700_v40 = vsel %vm1605_vm3, %v1420_v32, %v1699_v27  ;;  %v1876_v62 = vpack.c.bf16 %v1468_v13, %v1468_v13 }
 0x1fb   :  { %v2299_v11 = vunpack.c.l.b16 %v1780_v10  ;;  %v2315_v2 = vunpack.c.l.b16 %v1796_v31  ;;  %v1701_v4 = vsel %vm1607_vm4, %v1436_v35, %v1700_v40  ;;  %v2331_v48 = vunpack.c.l.b16 %v1812_v25 }
 0x1fc   :  { %v2347_v51 = vunpack.c.l.b16 %v1828_v49  ;;  %v2363_v59 = vunpack.c.l.b16 %v1844_v19  ;;  %v1702_v33 = vsel %vm1609_vm5, %v1452_v44, %v1701_v4  ;;  %v2379_v42 = vunpack.c.l.b16 %v1860_v43 }
 0x1fd   :  { %v2395_v20 = vunpack.c.l.b16 %v1876_v62  ;;  %v2489_v17 = vsel %vm1599_vm0, %v2299_v11, %v2283_v18  ;;  %v1703_v41 = vsel %vm1611_vm6, %v1468_v13, %v1702_v33  ;;  %v206_v47 = vunpack.c.h.bf16 %v6969_v61 }
 0x1fe   :  { %v2490_v45 = vsel %vm1601_vm1, %v2315_v2, %v2489_v17  ;;  %v222_v24 = vunpack.c.h.bf16 %v7046_v15  ;;  %1747 = vst [vmem:[#allocation9 + $0x68] sm:$0xff] %v1703_v41  ;;  %v238_v53 = vunpack.c.h.bf16 %v7049_v57  ;;  %v254_v37 = vunpack.c.h.bf16 %v7051_v28 }
 0x1ff   :  { %v2491_v5 = vsel %vm1603_vm2, %v2331_v48, %v2490_v45  ;;  %v270_v6 = vunpack.c.h.bf16 %v7054_v52  ;;  %v286_v14 = vunpack.c.h.bf16 %v7056_v29  ;;  %v302_v8 = vunpack.c.h.bf16 %v7058_v38 }
 0x200   :  { %v2492_v3 = vsel %vm1605_vm3, %v2347_v51, %v2491_v5  ;;  %v318_v30 = vunpack.c.h.bf16 %v7062_v55  ;;  %v334_v15 = vunpack.c.h.bf16 %v7064_v36  ;;  %v350_v60 = vunpack.c.h.bf16 %v7066_v54 }
 0x201   :  { %v2493_v61 = vsel %vm1607_vm4, %v2363_v59, %v2492_v3  ;;  %v366_v57 = vunpack.c.h.bf16 %v7071_v39  ;;  %v382_v52 = vunpack.c.h.bf16 %v7073_v0  ;;  %v398_v50 = vunpack.c.h.bf16 %v7075_v26 }
 0x202   :  { %v2494_v28 = vsel %vm1609_vm5, %v2379_v42, %v2493_v61  ;;  %v414_v29 = vunpack.c.h.bf16 %v7080_v23  ;;  %v430_v55 = vunpack.c.h.bf16 %v7082_v58  ;;  %v446_v46 = vunpack.c.h.bf16 %v7084_v12 }
 0x203   :  { %v2495_v38 = vsel %vm1611_vm6, %v2395_v20, %v2494_v28  ;;  %v552_v34 = vadd.f32 %v222_v24, %v206_v47  ;;  %v664_v54 = vadd.f32 %v254_v37, %v238_v53  ;;  %v776_v63 = vadd.f32 %v286_v14, %v270_v6 }
 0x204   :  { %v7170_v36 = vpack.c.b16 %v2495_v38, %v2495_v38  ;;  %v888_v39 = vadd.f32 %v318_v30, %v302_v8  ;;  %v1000_v1 = vadd.f32 %v350_v60, %v334_v15  ;;  %v1112_v32 = vadd.f32 %v382_v52, %v366_v57 }
 0x205   :  { %v553_v56 = vrot.slane %v552_v34, 4  ;;  %v1224_v0 = vadd.f32 %v414_v29, %v398_v50  ;;  %v665_v26 = vrot.slane %v664_v54, 4  ;;  %v777_v23 = vrot.slane %v776_v63, 4 }
 0x206   :  { %3999 = vmatmul.bf16.vlgmr.msrb.gmra.mxu1 %v7170_v36  ;;  %v889_v35 = vrot.slane %v888_v39, 4  ;;  %v1336_v7 = vadd.f32 %v446_v46, %v430_v55  ;;  %v1001_v58 = vrot.slane %v1000_v1, 4  ;;  %v1113_v21 = vrot.slane %v1112_v32, 4 }
 0x207   :  { %v554_v44 = vadd.f32 %v553_v56, %v552_v34  ;;  %v1225_v12 = vrot.slane %v1224_v0, 4  ;;  %v666_v10 = vadd.f32 %v665_v26, %v664_v54  ;;  %v778_v31 = vadd.f32 %v777_v23, %v776_v63 }
 0x208   :  { %v890_v13 = vadd.f32 %v889_v35, %v888_v39  ;;  %v1337_v16 = vrot.slane %v1336_v7, 4  ;;  %v1002_v49 = vadd.f32 %v1001_v58, %v1000_v1  ;;  %v1114_v27 = vadd.f32 %v1113_v21, %v1112_v32 }
 0x209   :  { %v555_v25 = vrot.slane %v554_v44, 2  ;;  %v1226_v19 = vadd.f32 %v1225_v12, %v1224_v0  ;;  %v667_v43 = vrot.slane %v666_v10, 2  ;;  %v779_v18 = vrot.slane %v778_v31, 2 }
 0x20a   :  { %v891_v40 = vrot.slane %v890_v13, 2  ;;  %v1338_v62 = vadd.f32 %v1337_v16, %v1336_v7  ;;  %v1003_v2 = vrot.slane %v1002_v49, 2  ;;  %v1115_v4 = vrot.slane %v1114_v27, 2  ;;  %v5389_v7 = vld [vmem:[#allocation5 + $0x64] sm:$0xf] }
 0x20b   :  { %v556_v11 = vadd.f32 %v555_v25, %v554_v44  ;;  %v1227_v48 = vrot.slane %v1226_v19, 2  ;;  %v668_v51 = vadd.f32 %v667_v43, %v666_v10  ;;  %v780_v59 = vadd.f32 %v779_v18, %v778_v31  ;;  %v4405_v44 = vld [vmem:[#allocation5 + $0x68] sm:$0xf0]  ;;  %v5405_v31 = vld [vmem:[#allocation5 + $0xe4] sm:$0xf] }
 0x20c   :  { %v892_v33 = vadd.f32 %v891_v40, %v890_v13  ;;  %v1339_v42 = vrot.slane %v1338_v62, 2  ;;  %v1004_v17 = vadd.f32 %v1003_v2, %v1002_v49  ;;  %v1116_v41 = vadd.f32 %v1115_v4, %v1114_v27  ;;  %v4469_v13 = vld [vmem:[#allocation5 + $0xe8] sm:$0xf0]  ;;  %v5421_v16 = vld [vmem:[#allocation5 + $0x164] sm:$0xf] }
 0x20d   :  { %v557_v20 = vrot.slane %v556_v11, 1  ;;  %v1228_v45 = vadd.f32 %v1227_v48, %v1226_v19  ;;  %v669_v47 = vrot.slane %v668_v51, 1  ;;  %v781_v24 = vrot.slane %v780_v59, 1  ;;  %v4533_v43 = vld [vmem:[#allocation5 + $0x168] sm:$0xf0] }
 0x20e   :  { %v893_v5 = vrot.slane %v892_v33, 1  ;;  %v1340_v53 = vadd.f32 %v1339_v42, %v1338_v62  ;;  %v1005_v6 = vrot.slane %v1004_v17, 1  ;;  %v1117_v3 = vrot.slane %v1116_v41, 1  ;;  %v5437_v18 = vld [vmem:[#allocation5 + $0x1e4] sm:$0xf] }
 0x20f   :  { %v558_v37 = vadd.f32 %v557_v20, %v556_v11  ;;  %v1229_v14 = vrot.slane %v1228_v45, 1  ;;  %v670_v8 = vadd.f32 %v669_v47, %v668_v51  ;;  %v782_v30 = vadd.f32 %v781_v24, %v780_v59  ;;  %v4597_v40 = vld [vmem:[#allocation5 + $0x1e8] sm:$0xf0]  ;;  %v5387_v4 = vld [vmem:[#allocation5 + $0x54] sm:$0xf] }
 0x210   :  { %v894_v61 = vadd.f32 %v893_v5, %v892_v33  ;;  %v1341_v15 = vrot.slane %v1340_v53, 1  ;;  %v1006_v60 = vadd.f32 %v1005_v6, %v1004_v17  ;;  %v1118_v57 = vadd.f32 %v1117_v3, %v1116_v41  ;;  %v4397_v48 = vld [vmem:[#allocation5 + $0x58] sm:$0xf0]  ;;  %v5403_v51 = vld [vmem:[#allocation5 + $0xd4] sm:$0xf] }
 0x211   :  { %v1230_v28 = vadd.f32 %v1229_v14, %v1228_v45  ;;  %v1358_v52 = vmul.f32 0.0625, %v558_v37  ;;  %v1374_v29 = vmul.f32 0.0625, %v670_v8  ;;  %v1390_v38 = vmul.f32 0.0625, %v782_v30  ;;  %v4461_v17 = vld [vmem:[#allocation5 + $0xd8] sm:$0xf0] }
 0x212   :  { %v1342_v50 = vadd.f32 %v1341_v15, %v1340_v53  ;;  %v1406_v55 = vmul.f32 0.0625, %v894_v61  ;;  %v1422_v46 = vmul.f32 0.0625, %v1006_v60  ;;  %v1438_v34 = vmul.f32 0.0625, %v1118_v57  ;;  %v5419_v41 = vld [vmem:[#allocation5 + $0x154] sm:$0xf] }
 0x213   :  { %v1454_v54 = vmul.f32 0.0625, %v1230_v28  ;;  %v1766_v63 = vpack.c.bf16 %v1358_v52, %v1358_v52  ;;  %v1711_v56 = vsel %vm1599_vm0, %v1374_v29, %v1358_v52  ;;  %v1782_v1 = vpack.c.bf16 %v1374_v29, %v1374_v29  ;;  %v4525_v45 = vld [vmem:[#allocation5 + $0x158] sm:$0xf0]  ;;  %v5435_v37 = vld [vmem:[#allocation5 + $0x1d4] sm:$0xf] }
 0x214   :  { %v1470_v39 = vmul.f32 0.0625, %v1342_v50  ;;  %v1798_v32 = vpack.c.bf16 %v1390_v38, %v1390_v38  ;;  %v1712_v0 = vsel %vm1601_vm1, %v1390_v38, %v1711_v56  ;;  %v1814_v26 = vpack.c.bf16 %v1406_v55, %v1406_v55  ;;  %v4589_v6 = vld [vmem:[#allocation5 + $0x1d8] sm:$0xf0]  ;;  %v5385_v57 = vld [vmem:[#allocation5 + $0x44] sm:$0xf] }
 0x215   :  { %v1830_v23 = vpack.c.bf16 %v1422_v46, %v1422_v46  ;;  %v1846_v35 = vpack.c.bf16 %v1438_v34, %v1438_v34  ;;  %v1713_v58 = vsel %vm1603_vm2, %v1406_v55, %v1712_v0  ;;  %v1862_v21 = vpack.c.bf16 %v1454_v54, %v1454_v54  ;;  %v4389_v28 = vld [vmem:[#allocation5 + $0x48] sm:$0xf0]  ;;  %v5401_v52 = vld [vmem:[#allocation5 + $0xc4] sm:$0xf] }
 0x216   :  { %v1878_v12 = vpack.c.bf16 %v1470_v39, %v1470_v39  ;;  %v2285_v10 = vunpack.c.l.b16 %v1766_v63  ;;  %v1714_v25 = vsel %vm1605_vm3, %v1422_v46, %v1713_v58  ;;  %v2301_v49 = vunpack.c.l.b16 %v1782_v1  ;;  %v4453_v38 = vld [vmem:[#allocation5 + $0xc8] sm:$0xf0]  ;;  %v5417_v55 = vld [vmem:[#allocation5 + $0x144] sm:$0xf]  ;;  %v5415_v58 = vld [vmem:[#allocation5 + $0x134] sm:$0xf] }
 0x217   :  { %v2317_v27 = vunpack.c.l.b16 %v1798_v32  ;;  %v2333_v19 = vunpack.c.l.b16 %v1814_v26  ;;  %v1715_v62 = vsel %vm1607_vm4, %v1438_v34, %v1714_v25  ;;  %v2349_v11 = vunpack.c.l.b16 %v1830_v23  ;;  %v4517_v46 = vld [vmem:[#allocation5 + $0x148] sm:$0xf0]  ;;  %v5383_v26 = vld [vmem:[#allocation5 + $0x34] sm:$0xf]  ;;  %v4381_v23 = vld [vmem:[#allocation5 + $0x38] sm:$0xf0] }
 0x218   :  { %v2365_v2 = vunpack.c.l.b16 %v1846_v35  ;;  %v1716_v59 = vsel %vm1609_vm5, %v1454_v54, %v1715_v62  ;;  %v2381_v33 = vunpack.c.l.b16 %v1862_v21  ;;  %v2503_v42 = vsel %vm1599_vm0, %v2301_v49, %v2285_v10  ;;  %v5433_v54 = vld [vmem:[#allocation5 + $0x1c4] sm:$0xf]  ;;  %v4581_v63 = vld [vmem:[#allocation5 + $0x1c8] sm:$0xf0]  ;;  %v5399_v35 = vld [vmem:[#allocation5 + $0xb4] sm:$0xf] }
 0x219   :  { %v4408_v20 = vor.u32 %v5389_v7, %v4405_v44  ;;  %v1717_v47 = vsel %vm1611_vm6, %v1470_v39, %v1716_v59  ;;  %v2504_v24 = vsel %vm1601_vm1, %v2317_v27, %v2503_v42  ;;  %v4472_v5 = vor.u32 %v5405_v31, %v4469_v13  ;;  %v4445_v44 = vld [vmem:[#allocation5 + $0xb8] sm:$0xf0]  ;;  %v5381_v25 = vld [vmem:[#allocation5 + $0x24] sm:$0xf]  ;;  %v4373_v49 = vld [vmem:[#allocation5 + $0x28] sm:$0xf0] }
 0x21a   :  { %v4536_v53 = vor.u32 %v5421_v16, %v4533_v43  ;;  %1749 = vst [vmem:[#allocation9 + $0x78] sm:$0xff] %v1717_v47  ;;  %v2397_v3 = vunpack.c.l.b16 %v1878_v12  ;;  %v2505_v14 = vsel %vm1603_vm2, %v2333_v19, %v2504_v24  ;;  %v4600_v8 = vor.u32 %v5437_v18, %v4597_v40  ;;  %v4509_v21 = vld [vmem:[#allocation5 + $0x138] sm:$0xf0]  ;;  %v5431_v12 = vld [vmem:[#allocation5 + $0x1b4] sm:$0xf] }
 0x21b   :  { %4031 = vmatpush.bf16.msra.mxu0 %v4408_v20  ;;  %v4400_v30 = vor.u32 %v5387_v4, %v4397_v48  ;;  %v2506_v61 = vsel %vm1605_vm3, %v2349_v11, %v2505_v14  ;;  %4044 = vmatpush.bf16.msra.mxu1 %v4472_v5  ;;  %v4464_v15 = vor.u32 %v5403_v51, %v4461_v17  ;;  %v4573_v10 = vld [vmem:[#allocation5 + $0x1b8] sm:$0xf0]  ;;  %v5397_v27 = vld [vmem:[#allocation5 + $0xa4] sm:$0xf]  ;;  %v4437_v43 = vld [vmem:[#allocation5 + $0xa8] sm:$0xf0] }
 0x21c   :  { %4057 = vmatpush.bf16.msra.mxu2 %v4536_v53  ;;  %v4528_v60 = vor.u32 %v5419_v41, %v4525_v45  ;;  %v2507_v50 = vsel %vm1607_vm4, %v2365_v2, %v2506_v61  ;;  %4070 = vmatpush.bf16.msra.mxu3 %v4600_v8  ;;  %v4592_v29 = vor.u32 %v5435_v37, %v4589_v6  ;;  %v5413_v18 = vld [vmem:[#allocation5 + $0x124] sm:$0xf]  ;;  %v4501_v40 = vld [vmem:[#allocation5 + $0x128] sm:$0xf0]  ;;  %v5379_v51 = vld [vmem:[#allocation5 + $0x14] sm:$0xf] }
 0x21d   :  { %v2508_v34 = vsel %vm1609_vm5, %v2381_v33, %v2507_v50  ;;  %v4392_v56 = vor.u32 %v5385_v57, %v4389_v28  ;;  %v4456_v32 = vor.u32 %v5401_v52, %v4453_v38  ;;  %v4520_v0 = vor.u32 %v5417_v55, %v4517_v46  ;;  %v5429_v62 = vld [vmem:[#allocation5 + $0x1a4] sm:$0xf]  ;;  %v4565_v11 = vld [vmem:[#allocation5 + $0x1a8] sm:$0xf0]  ;;  %v4365_v59 = vld [vmem:[#allocation5 + $0x18] sm:$0xf0] }
 0x21e   :  { %v2509_v39 = vsel %vm1611_vm6, %v2397_v3, %v2508_v34  ;;  %v4584_v7 = vor.u32 %v5433_v54, %v4581_v63  ;;  %v4384_v31 = vor.u32 %v5383_v26, %v4381_v23  ;;  %v4448_v13 = vor.u32 %v5399_v35, %v4445_v44  ;;  %v5395_v33 = vld [vmem:[#allocation5 + $0x94] sm:$0xf]  ;;  %v4429_v20 = vld [vmem:[#allocation5 + $0x98] sm:$0xf0]  ;;  %v5377_v5 = vld [vmem:[#allocation5 + $0x4] sm:$0xf] }
 0x21f   :  { %4032 = vmatpush.bf16.msra.mxu0 %v4400_v30  ;;  %v7187_v1 = vpack.c.b16 %v2509_v39, %v2509_v39  ;;  %4045 = vmatpush.bf16.msra.mxu1 %v4464_v15  ;;  %v4512_v16 = vor.u32 %v5415_v58, %v4509_v21  ;;  %v4576_v19 = vor.u32 %v5431_v12, %v4573_v10  ;;  %v5411_v17 = vld [vmem:[#allocation5 + $0x114] sm:$0xf]  ;;  %v4493_v41 = vld [vmem:[#allocation5 + $0x118] sm:$0xf0]  ;;  %v4357_v53 = vld [vmem:[#allocation5 + $0x8] sm:$0xf0] }
 0x220   :  { %4058 = vmatpush.bf16.msra.mxu2 %v4528_v60  ;;  %4071 = vmatpush.bf16.msra.mxu3 %v4592_v29  ;;  %v4376_v2 = vor.u32 %v5381_v25, %v4373_v49  ;;  %v4440_v4 = vor.u32 %v5397_v27, %v4437_v43  ;;  %v4504_v48 = vor.u32 %v5413_v18, %v4501_v40  ;;  %v5427_v45 = vld [vmem:[#allocation5 + $0x194] sm:$0xf]  ;;  %v4557_v47 = vld [vmem:[#allocation5 + $0x198] sm:$0xf0]  ;;  %v5393_v3 = vld [vmem:[#allocation5 + $0x84] sm:$0xf]  ;;  %v3831_v25 = vpop.f32.mrf.mxu0 }
 0x221   :  { %4025 = vmatmul.bf16.vlgmr.msrb.gmra.mxu3 %v7187_v1  ;;  %v4568_v42 = vor.u32 %v5429_v62, %v4565_v11  ;;  %v4368_v24 = vor.u32 %v5379_v51, %v4365_v59  ;;  %v4432_v37 = vor.u32 %v5395_v33, %v4429_v20  ;;  %v4496_v6 = vor.u32 %v5411_v17, %v4493_v41  ;;  %v4421_v14 = vld [vmem:[#allocation5 + $0x88] sm:$0xf0]  ;;  %v5409_v8 = vld [vmem:[#allocation5 + $0x104] sm:$0xf]  ;;  %v5455_v57 = vld [vmem:[#allocation5 + $0x274] sm:$0xf]  ;;  %v3844_v41 = vpop.f32.mrf.mxu1 }
 0x222   :  { %v4560_v30 = vor.u32 %v5427_v45, %v4557_v47  ;;  %v4485_v61 = vld [vmem:[#allocation5 + $0x108] sm:$0xf0]  ;;  %v5425_v15 = vld [vmem:[#allocation5 + $0x184] sm:$0xf]  ;;  %v4669_v28 = vld [vmem:[#allocation5 + $0x278] sm:$0xf0]  ;;  %v4360_v50 = vor.u32 %v5377_v5, %v4357_v53  ;;  %v4424_v46 = vor.u32 %v5393_v3, %v4421_v14  ;;  %v3857_v45 = vpop.f32.mrf.mxu2 }
 0x223   :  { %4033 = vmatpush.bf16.msra.mxu0 %v4392_v56  ;;  %4046 = vmatpush.bf16.msra.mxu1 %v4456_v32  ;;  %v4549_v60 = vld [vmem:[#allocation5 + $0x188] sm:$0xf0]  ;;  %v5471_v52 = vld [vmem:[#allocation5 + $0x2f4] sm:$0xf]  ;;  %v4733_v29 = vld [vmem:[#allocation5 + $0x2f8] sm:$0xf0]  ;;  %v4488_v34 = vor.u32 %v5409_v8, %v4485_v61  ;;  %v4672_v56 = vor.u32 %v5455_v57, %v4669_v28  ;;  %v3870_v28 = vpop.f32.mrf.mxu3 }
 0x224   :  { %4059 = vmatpush.bf16.msra.mxu2 %v4520_v0  ;;  %4072 = vmatpush.bf16.msra.mxu3 %v4584_v7  ;;  %v5487_v38 = vld [vmem:[#allocation5 + $0x374] sm:$0xf]  ;;  %v4797_v55 = vld [vmem:[#allocation5 + $0x378] sm:$0xf0]  ;;  %v4552_v39 = vor.u32 %v5425_v15, %v4549_v60  ;;  %v4736_v32 = vor.u32 %v5471_v52, %v4733_v29  ;;  %v5453_v26 = vld [vmem:[#allocation5 + $0x264] sm:$0xf] }
 0x225   :  { %v5503_v54 = vld [vmem:[#allocation5 + $0x3f4] sm:$0xf]  ;;  %v4861_v63 = vld [vmem:[#allocation5 + $0x3f8] sm:$0xf0]  ;;  %v4800_v0 = vor.u32 %v5487_v38, %v4797_v55  ;;  %v4661_v23 = vld [vmem:[#allocation5 + $0x268] sm:$0xf0] }
 0x226   :  { %v5469_v35 = vld [vmem:[#allocation5 + $0x2e4] sm:$0xf]  ;;  %v4864_v7 = vor.u32 %v5503_v54, %v4861_v63  ;;  %v4725_v44 = vld [vmem:[#allocation5 + $0x2e8] sm:$0xf0]  ;;  %v4717_v43 = vld [vmem:[#allocation5 + $0x2d8] sm:$0xf0] }
 0x227   :  { %4034 = vmatpush.bf16.msra.mxu0 %v4384_v31  ;;  %4047 = vmatpush.bf16.msra.mxu1 %v4448_v13  ;;  %v5485_v58 = vld [vmem:[#allocation5 + $0x364] sm:$0xf]  ;;  %v4789_v21 = vld [vmem:[#allocation5 + $0x368] sm:$0xf0]  ;;  %v4664_v31 = vor.u32 %v5453_v26, %v4661_v23  ;;  %v5451_v13 = vld [vmem:[#allocation5 + $0x254] sm:$0xf]  ;;  %v4728_v49 = vor.u32 %v5469_v35, %v4725_v44 }
 0x228   :  { %4060 = vmatpush.bf16.msra.mxu2 %v4512_v16  ;;  %4073 = vmatpush.bf16.msra.mxu3 %v4576_v19  ;;  %v5501_v12 = vld [vmem:[#allocation5 + $0x3e4] sm:$0xf]  ;;  %v4853_v10 = vld [vmem:[#allocation5 + $0x3e8] sm:$0xf0]  ;;  %v4653_v16 = vld [vmem:[#allocation5 + $0x258] sm:$0xf0]  ;;  %v4792_v27 = vor.u32 %v5485_v58, %v4789_v21  ;;  %v3833_v52 = vpop.f32.mrf.mxu0 }
 0x229   :  { %v5467_v19 = vld [vmem:[#allocation5 + $0x2d4] sm:$0xf]  ;;  %v7190_v18 = vld [vmem:[#allocation7] sm:$0x77]  ;;  %v4856_v40 = vor.u32 %v5501_v12, %v4853_v10  ;;  %v4781_v11 = vld [vmem:[#allocation5 + $0x358] sm:$0xf0]  ;;  %v3846_v35 = vpop.f32.mrf.mxu1 }
 0x22a   :  { %v5483_v62 = vld [vmem:[#allocation5 + $0x354] sm:$0xf]  ;;  %v4845_v51 = vld [vmem:[#allocation5 + $0x3d8] sm:$0xf0]  ;;  %v7399_v33 = vld [vmem:[#allocation16_spill] sm:$0xff]  ;;  %v4720_v47 = vor.u32 %v5467_v19, %v4717_v43 }
 0x22b   :  { %4035 = vmatpush.bf16.msra.mxu0 %v4376_v2  ;;  %4048 = vmatpush.bf16.msra.mxu1 %v4440_v4  ;;  %v7397_v2 = vld [vmem:[#allocation19_spill] sm:$0xff]  ;;  %v2136_v4 = vperm.slane %v7190_v18, 0  ;;  %v7400_v20 = vld [vmem:[#allocation17_spill] sm:$0xff]  ;;  %v5449_v5 = vld [vmem:[#allocation5 + $0x244] sm:$0xf]  ;;  %v3872_v43 = vpop.f32.mrf.mxu3 }
 0x22c   :  { %4061 = vmatpush.bf16.msra.mxu2 %v4504_v48  ;;  %4074 = vmatpush.bf16.msra.mxu3 %v4568_v42  ;;  %v5499_v48 = vld [vmem:[#allocation5 + $0x3d4] sm:$0xf]  ;;  %v7398_v59 = vld [vmem:[#allocation15_spill] sm:$0xff]  ;;  %v4656_v42 = vor.u32 %v5451_v13, %v4653_v16  ;;  %v4645_v53 = vld [vmem:[#allocation5 + $0x248] sm:$0xf0] }
 0x22d   :  { %v2140_v17 = vperm.slane %v2136_v4, 0  ;;  %v4709_v3 = vld [vmem:[#allocation5 + $0x2c8] sm:$0xf0]  ;;  %v5481_v14 = vld [vmem:[#allocation5 + $0x344] sm:$0xf]  ;;  %v4648_v60 = vor.u32 %v5449_v5, %v4645_v53 }
 0x22e   :  { %v4773_v8 = vld [vmem:[#allocation5 + $0x348] sm:$0xf0]  ;;  %v5497_v61 = vld [vmem:[#allocation5 + $0x3c4] sm:$0xf]  ;;  %v5447_v38 = vld [vmem:[#allocation5 + $0x234] sm:$0xf] }
 0x22f   :  { %4036 = vmatpush.bf16.msra.mxu0 %v4368_v24  ;;  %4049 = vmatpush.bf16.msra.mxu1 %v4432_v37  ;;  %v4784_v24 = vor.u32 %v5483_v62, %v4781_v11  ;;  %v5465_v37 = vld [vmem:[#allocation5 + $0x2c4] sm:$0xf]  ;;  %v4837_v15 = vld [vmem:[#allocation5 + $0x3c8] sm:$0xf0]  ;;  %v4776_v29 = vor.u32 %v5481_v14, %v4773_v8  ;;  %v4637_v55 = vld [vmem:[#allocation5 + $0x238] sm:$0xf0] }
 0x230   :  { %4062 = vmatpush.bf16.msra.mxu2 %v4496_v6  ;;  %4075 = vmatpush.bf16.msra.mxu3 %v4560_v30  ;;  %v4848_v6 = vor.u32 %v5499_v48, %v4845_v51  ;;  %v3832_v30 = vadd.f32 %v3831_v25, %v2140_v17  ;;  %v4701_v54 = vld [vmem:[#allocation5 + $0x2b8] sm:$0xf0]  ;;  %v5479_v63 = vld [vmem:[#allocation5 + $0x334] sm:$0xf]  ;;  %v4640_v26 = vor.u32 %v5447_v38, %v4637_v55  ;;  %v5445_v21 = vld [vmem:[#allocation5 + $0x224] sm:$0xf] }
 0x231   :  { %v4629_v12 = vld [vmem:[#allocation5 + $0x228] sm:$0xf0]  ;;  %v5461_v10 = vld [vmem:[#allocation5 + $0x2a4] sm:$0xf]  ;;  %v4621_v4 = vld [vmem:[#allocation5 + $0x218] sm:$0xf0]  ;;  %v3896_v5 = vpop.f32.mrf.mxu1 }
 0x232   :  { %v3845_v57 = vadd.f32 %v3844_v41, %v3832_v30  ;;  %v4693_v13 = vld [vmem:[#allocation5 + $0x2a8] sm:$0xf0]  ;;  %v5477_v16 = vld [vmem:[#allocation5 + $0x324] sm:$0xf]  ;;  %v4632_v19 = vor.u32 %v5445_v21, %v4629_v12  ;;  %v5459_v48 = vld [vmem:[#allocation5 + $0x294] sm:$0xf] }
 0x233   :  { %4037 = vmatpush.bf16.msra.mxu0 %v4360_v50  ;;  %4050 = vmatpush.bf16.msra.mxu1 %v4424_v46  ;;  %v4712_v50 = vor.u32 %v5465_v37, %v4709_v3  ;;  %v5463_v46 = vld [vmem:[#allocation5 + $0x2b4] sm:$0xf]  ;;  %v4757_v25 = vld [vmem:[#allocation5 + $0x328] sm:$0xf0]  ;;  %v4696_v62 = vor.u32 %v5461_v10, %v4693_v13  ;;  %v4813_v41 = vld [vmem:[#allocation5 + $0x398] sm:$0xf0] }
 0x234   :  { %4063 = vmatpush.bf16.msra.mxu2 %v4488_v34  ;;  %4076 = vmatpush.bf16.msra.mxu3 %v4552_v39  ;;  %v4840_v34 = vor.u32 %v5497_v61, %v4837_v15  ;;  %v4765_v39 = vld [vmem:[#allocation5 + $0x338] sm:$0xf0]  ;;  %v4704_v44 = vor.u32 %v5463_v46, %v4701_v54  ;;  %v4760_v11 = vor.u32 %v5477_v16, %v4757_v25  ;;  %v5491_v17 = vld [vmem:[#allocation5 + $0x394] sm:$0xf]  ;;  %v5457_v3 = vld [vmem:[#allocation5 + $0x284] sm:$0xf]  ;;  %v3922_v54 = vpop.f32.mrf.mxu3 }
 0x235   :  { %v4768_v58 = vor.u32 %v5479_v63, %v4765_v39  ;;  %v4677_v14 = vld [vmem:[#allocation5 + $0x288] sm:$0xf0]  ;;  %v5473_v8 = vld [vmem:[#allocation5 + $0x304] sm:$0xf]  ;;  %v4816_v61 = vor.u32 %v5491_v17, %v4813_v41  ;;  %v4925_v52 = vld [vmem:[#allocation5 + $0x478] sm:$0xf0] }
 0x236   :  { %4038 = vmatmul.bf16.vlgmr.msra.gmra.mxu0 %v7398_v59  ;;  %4051 = vmatmul.bf16.vlgmr.msra.gmra.mxu1 %v7400_v20  ;;  %v4749_v20 = vld [vmem:[#allocation5 + $0x318] sm:$0xf0]  ;;  %v4741_v15 = vld [vmem:[#allocation5 + $0x308] sm:$0xf0]  ;;  %v5551_v46 = vld [vmem:[#allocation5 + $0x574] sm:$0xf]  ;;  %v4680_v39 = vor.u32 %v5457_v3, %v4677_v14 }
 0x237   :  { %4082 = vmatpush.bf16.msrb.mxu0 %v4672_v56  ;;  %4095 = vmatpush.bf16.msrb.mxu1 %v4736_v32  ;;  %v3858_v56 = vadd.f32 %v3857_v45, %v3845_v57  ;;  %v5495_v32 = vld [vmem:[#allocation5 + $0x3b4] sm:$0xf]  ;;  %v4805_v57 = vld [vmem:[#allocation5 + $0x388] sm:$0xf0]  ;;  %v4989_v55 = vld [vmem:[#allocation5 + $0x4f8] sm:$0xf0] }
 0x238   :  { %4108 = vmatpush.bf16.msrb.mxu2 %v4800_v0  ;;  %4121 = vmatpush.bf16.msrb.mxu3 %v4864_v7  ;;  %v4829_v0 = vld [vmem:[#allocation5 + $0x3b8] sm:$0xf0]  ;;  %v3859_v7 = vpop.f32.mrf.mxu2  ;;  %v4917_v21 = vld [vmem:[#allocation5 + $0x468] sm:$0xf0]  ;;  %v5533_v12 = vld [vmem:[#allocation5 + $0x4e4] sm:$0xf] }
 0x239   :  { %4064 = vmatmul.bf16.vlgmr.msra.gmra.mxu2 %v7397_v2  ;;  %4077 = vmatmul.bf16.vlgmr.msra.gmra.mxu3 %v7399_v33  ;;  %v3871_v23 = vadd.f32 %v3870_v28, %v3858_v56  ;;  %v5443_v2 = vld [vmem:[#allocation5 + $0x214] sm:$0xf]  ;;  %v4685_v33 = vld [vmem:[#allocation5 + $0x298] sm:$0xf0]  ;;  %v4744_v56 = vor.u32 %v5473_v8, %v4741_v15  ;;  %v5549_v13 = vld [vmem:[#allocation5 + $0x564] sm:$0xf]  ;;  %v3898_v25 = vpop.f32.mrf.mxu1 }
 0x23a   :  { %v4624_v45 = vor.u32 %v5443_v2, %v4621_v4  ;;  %v4688_v37 = vor.u32 %v5459_v48, %v4685_v33  ;;  %v5519_v28 = vld [vmem:[#allocation5 + $0x474] sm:$0xf]  ;;  %v5045_v16 = vld [vmem:[#allocation5 + $0x568] sm:$0xf0]  ;;  %v4909_v2 = vld [vmem:[#allocation5 + $0x458] sm:$0xf0] }
 0x23b   :  { %4083 = vmatpush.bf16.msrb.mxu0 %v4664_v31  ;;  %4096 = vmatpush.bf16.msrb.mxu1 %v4728_v49  ;;  %v4832_v31 = vor.u32 %v5495_v32, %v4829_v0  ;;  %v5493_v49 = vld [vmem:[#allocation5 + $0x3a4] sm:$0xf]  ;;  %v5567_v32 = vld [vmem:[#allocation5 + $0x5f4] sm:$0xf]  ;;  %v5117_v0 = vld [vmem:[#allocation5 + $0x5f8] sm:$0xf0]  ;;  %v4928_v35 = vor.u32 %v5519_v28, %v4925_v52 }
 0x23c   :  { %4109 = vmatpush.bf16.msrb.mxu2 %v4792_v27  ;;  %4122 = vmatpush.bf16.msrb.mxu3 %v4856_v40  ;;  %v4821_v27 = vld [vmem:[#allocation5 + $0x3a8] sm:$0xf0]  ;;  %v3883_v40 = vpop.f32.mrf.mxu0  ;;  %v5120_v10 = vor.u32 %v5567_v32, %v5117_v0  ;;  %v5531_v4 = vld [vmem:[#allocation5 + $0x4d4] sm:$0xf]  ;;  %v5101_v41 = vld [vmem:[#allocation5 + $0x5d8] sm:$0xf0] }
 0x23d   :  { %v3884_v51 = vadd.f32 %v3883_v40, %v3871_v23  ;;  %v4824_v59 = vor.u32 %v5493_v49, %v4821_v27  ;;  %v5565_v27 = vld [vmem:[#allocation5 + $0x5e4] sm:$0xf]  ;;  %v5547_v33 = vld [vmem:[#allocation5 + $0x554] sm:$0xf]  ;;  %v4901_v3 = vld [vmem:[#allocation5 + $0x448] sm:$0xf0] }
 0x23e   :  { %v5563_v17 = vld [vmem:[#allocation5 + $0x5d4] sm:$0xf]  ;;  %v5529_v14 = vld [vmem:[#allocation5 + $0x4c4] sm:$0xf]  ;;  %v5029_v15 = vld [vmem:[#allocation5 + $0x548] sm:$0xf0] }
 0x23f   :  { %4084 = vmatpush.bf16.msrb.mxu0 %v4656_v42  ;;  %4097 = vmatpush.bf16.msrb.mxu1 %v4720_v47  ;;  %v5475_v42 = vld [vmem:[#allocation5 + $0x314] sm:$0xf]  ;;  %v5441_v47 = vld [vmem:[#allocation5 + $0x204] sm:$0xf]  ;;  %v3897_v30 = vadd.f32 %v3896_v5, %v3884_v51  ;;  %v5104_v8 = vor.u32 %v5563_v17, %v5101_v41  ;;  %v5085_v32 = vld [vmem:[#allocation5 + $0x5b8] sm:$0xf0] }
 0x240   :  { %4110 = vmatpush.bf16.msrb.mxu2 %v4784_v24  ;;  %4123 = vmatpush.bf16.msrb.mxu3 %v4848_v6  ;;  %v4613_v24 = vld [vmem:[#allocation5 + $0x208] sm:$0xf0]  ;;  %v3909_v53 = vpop.f32.mrf.mxu2  ;;  %v4752_v6 = vor.u32 %v5475_v42, %v4749_v20  ;;  %v7401_v51 = vld [vmem:[#allocation22_spill] sm:$0xff]  ;;  %v5037_v42 = vld [vmem:[#allocation5 + $0x558] sm:$0xf0]  ;;  %v3924_v20 = vpop.f32.mrf.mxu3 }
 0x241   :  { %v4616_v38 = vor.u32 %v5441_v47, %v4613_v24  ;;  %v7403_v47 = vld [vmem:[#allocation18_spill] sm:$0xff]  ;;  %v7404_v5 = vld [vmem:[#allocation20_spill] sm:$0xff]  ;;  %v5077_v25 = vld [vmem:[#allocation5 + $0x5a8] sm:$0xf0]  ;;  %4340 = dma.vmem_to_hbm [thread:$0]  %s4336_s2, 2048, %s4338_s9, [#allocation10]  }
 0x242   :  { %v5069_v20 = vld [vmem:[#allocation5 + $0x598] sm:$0xf0]  ;;  %v5505_v41 = vld [vmem:[#allocation5 + $0x404] sm:$0xf] }
 0x243   :  { %4085 = vmatpush.bf16.msrb.mxu0 %v4648_v60  ;;  %4098 = vmatpush.bf16.msrb.mxu1 %v4712_v50  ;;  %v5489_v60 = vld [vmem:[#allocation5 + $0x384] sm:$0xf]  ;;  %v5535_v50 = vld [vmem:[#allocation5 + $0x4f4] sm:$0xf] }
 0x244   :  { %4111 = vmatpush.bf16.msrb.mxu2 %v4776_v29  ;;  %4124 = vmatpush.bf16.msrb.mxu3 %v4840_v34  ;;  %v3910_v29 = vadd.f32 %v3909_v53, %v3897_v30  ;;  %v5053_v34 = vld [vmem:[#allocation5 + $0x578] sm:$0xf0]  ;;  %v3885_v63 = vpop.f32.mrf.mxu0  ;;  %v4808_v23 = vor.u32 %v5489_v60, %v4805_v57  ;;  %v4992_v7 = vor.u32 %v5535_v50, %v4989_v55  ;;  %v4965_v30 = vld [vmem:[#allocation5 + $0x4c8] sm:$0xf0]  ;;  %v5561_v60 = vld [vmem:[#allocation5 + $0x5c4] sm:$0xf] }
 0x245   :  { %v5093_v57 = vld [vmem:[#allocation5 + $0x5c8] sm:$0xf0]  ;;  %v4968_v52 = vor.u32 %v5529_v14, %v4965_v30  ;;  %v5527_v55 = vld [vmem:[#allocation5 + $0x4b4] sm:$0xf] }
 0x246   :  { %v5543_v63 = vld [vmem:[#allocation5 + $0x534] sm:$0xf]  ;;  %v4997_v14 = vld [vmem:[#allocation5 + $0x508] sm:$0xf0] }
 0x247   :  { %4086 = vmatpush.bf16.msrb.mxu0 %v4640_v26  ;;  %4099 = vmatpush.bf16.msrb.mxu1 %v4704_v44  ;;  %v7197_v26 = vadd.f32 %v3922_v54, %v3910_v29  ;;  %v5056_v44 = vor.u32 %v5551_v46, %v5053_v34  ;;  %v5511_v29 = vld [vmem:[#allocation5 + $0x434] sm:$0xf]  ;;  %v5096_v34 = vor.u32 %v5561_v60, %v5093_v57  ;;  %v4957_v54 = vld [vmem:[#allocation5 + $0x4b8] sm:$0xf0]  ;;  %v5061_v30 = vld [vmem:[#allocation5 + $0x588] sm:$0xf0] }
 0x248   :  { %4112 = vmatpush.bf16.msrb.mxu2 %v4768_v58  ;;  %4125 = vmatpush.bf16.msrb.mxu3 %v4832_v31  ;;  %v5517_v58 = vld [vmem:[#allocation5 + $0x464] sm:$0xf]  ;;  %v4981_v31 = vld [vmem:[#allocation5 + $0x4e8] sm:$0xf0]  ;;  %v3911_v49 = vpop.f32.mrf.mxu2  ;;  %v5599_v60 = vld [vmem:[#allocation5 + $0x6f4] sm:$0xf] }
 0x249   :  { %v4920_v43 = vor.u32 %v5517_v58, %v4917_v21  ;;  %v4984_v40 = vor.u32 %v5533_v12, %v4981_v31  ;;  %v4885_v58 = vld [vmem:[#allocation5 + $0x428] sm:$0xf0]  ;;  %v5525_v21 = vld [vmem:[#allocation5 + $0x4a4] sm:$0xf] }
 0x24a   :  { %v5541_v31 = vld [vmem:[#allocation5 + $0x524] sm:$0xf] }
 0x24b   :  { %4087 = vmatpush.bf16.msrb.mxu0 %v4632_v19  ;;  %4100 = vmatpush.bf16.msrb.mxu1 %v4696_v62  ;;  %v5109_v19 = vld [vmem:[#allocation5 + $0x5e8] sm:$0xf0]  ;;  %v5048_v62 = vor.u32 %v5549_v13, %v5045_v16  ;;  %v5557_v16 = vld [vmem:[#allocation5 + $0x5a4] sm:$0xf] }
 0x24c   :  { %4113 = vmatpush.bf16.msrb.mxu2 %v4760_v11  ;;  %4126 = vmatpush.bf16.msrb.mxu3 %v4824_v59  ;;  %v5515_v11 = vld [vmem:[#allocation5 + $0x454] sm:$0xf]  ;;  %v5112_v48 = vor.u32 %v5565_v27, %v5109_v19  ;;  %v4973_v59 = vld [vmem:[#allocation5 + $0x4d8] sm:$0xf0]  ;;  %v7203_v46 = vpop.f32.mrf.mxu0  ;;  %v5013_v13 = vld [vmem:[#allocation5 + $0x528] sm:$0xf0]  ;;  %v7209_v19 = vpop.f32.mrf.mxu3 }
 0x24d   :  { %v4912_v24 = vor.u32 %v5515_v11, %v4909_v2  ;;  %v4976_v53 = vor.u32 %v5531_v4, %v4973_v59  ;;  %v4877_v11 = vld [vmem:[#allocation5 + $0x418] sm:$0xf0]  ;;  %v5523_v2 = vld [vmem:[#allocation5 + $0x494] sm:$0xf] }
 0x24e   :  { %v5539_v59 = vld [vmem:[#allocation5 + $0x514] sm:$0xf] }
 0x24f   :  { %4088 = vmatpush.bf16.msrb.mxu0 %v4624_v45  ;;  %4101 = vmatpush.bf16.msrb.mxu1 %v4688_v37  ;;  %v7402_v45 = vld [vmem:[#allocation23_spill] sm:$0xff]  ;;  %v5040_v37 = vor.u32 %v5547_v33, %v5037_v42  ;;  %v5555_v42 = vld [vmem:[#allocation5 + $0x594] sm:$0xf] }
 0x250   :  { %4114 = vmatpush.bf16.msrb.mxu2 %v4752_v6  ;;  %4127 = vmatpush.bf16.msrb.mxu3 %v4816_v61  ;;  %v5513_v6 = vld [vmem:[#allocation5 + $0x444] sm:$0xf]  ;;  %v7207_v27 = vpop.f32.mrf.mxu2  ;;  %v5005_v33 = vld [vmem:[#allocation5 + $0x518] sm:$0xf0] }
 0x251   :  { %v5545_v61 = vld [vmem:[#allocation5 + $0x544] sm:$0xf]  ;;  %v4904_v28 = vor.u32 %v5513_v6, %v4901_v3  ;;  %v5072_v3 = vor.u32 %v5555_v42, %v5069_v20  ;;  %v7406_v42 = vld [vmem:[#allocation21_spill] sm:$0xff] }
 0x252   :  { %v5032_v50 = vor.u32 %v5545_v61, %v5029_v15  ;;  %v5537_v6 = vld [vmem:[#allocation5 + $0x504] sm:$0xf]  ;;  %v5583_v61 = vld [vmem:[#allocation5 + $0x674] sm:$0xf]  ;;  %v5181_v15 = vld [vmem:[#allocation5 + $0x678] sm:$0xf0] }
 0x253   :  { %4089 = vmatpush.bf16.msrb.mxu0 %v4616_v38  ;;  %4102 = vmatpush.bf16.msrb.mxu1 %v4680_v39  ;;  %v4893_v38 = vld [vmem:[#allocation5 + $0x438] sm:$0xf0]  ;;  %v7407_v20 = vld [vmem:[#allocation24_spill] sm:$0xff] }
 0x254   :  { %4115 = vmatpush.bf16.msrb.mxu2 %v4744_v56  ;;  %4128 = vmatpush.bf16.msrb.mxu3 %v4808_v23  ;;  %v5021_v39 = vld [vmem:[#allocation5 + $0x538] sm:$0xf0]  ;;  %v5559_v56 = vld [vmem:[#allocation5 + $0x5b4] sm:$0xf]  ;;  %v4896_v0 = vor.u32 %v5511_v29, %v4893_v38  ;;  %v7205_v23 = vpop.f32.mrf.mxu1  ;;  %v3937_v4 = vpop.f32.mrf.mxu0 }
 0x255   :  { %v5088_v12 = vor.u32 %v5559_v56, %v5085_v32  ;;  %v3976_v38 = vpop.f32.mrf.mxu3  ;;  %v5184_v56 = vor.u32 %v5583_v61, %v5181_v15  ;;  %v5625_v61 = vld [vmem:[#allocation5 + $0x7c4] sm:$0xf]  ;;  %v5349_v15 = vld [vmem:[#allocation5 + $0x7c8] sm:$0xf0] }
 0x256   :  { %4090 = vmatmul.bf16.vlgmr.msrb.gmra.mxu0 %v7402_v45  ;;  %4103 = vmatmul.bf16.vlgmr.msrb.gmra.mxu1 %v7404_v5  ;;  %v4869_v45 = vld [vmem:[#allocation5 + $0x408] sm:$0xf0]  ;;  %v5008_v5 = vor.u32 %v5539_v59, %v5005_v33  ;;  %v5293_v59 = vld [vmem:[#allocation5 + $0x758] sm:$0xf0] }
 0x257   :  { %4134 = vmatpush.bf16.msra.mxu0 %v4928_v35  ;;  %4147 = vmatpush.bf16.msra.mxu1 %v4992_v7  ;;  %v4960_v35 = vor.u32 %v5527_v55, %v4957_v54  ;;  %v5024_v7 = vor.u32 %v5543_v63, %v5021_v39  ;;  %v4872_v57 = vor.u32 %v5505_v41, %v4869_v45  ;;  %v5631_v54 = vld [vmem:[#allocation5 + $0x7f4] sm:$0xf]  ;;  %v5373_v63 = vld [vmem:[#allocation5 + $0x7f8] sm:$0xf0] }
 0x258   :  { %4160 = vmatpush.bf16.msra.mxu2 %v5056_v44  ;;  %4173 = vmatpush.bf16.msra.mxu3 %v5120_v10  ;;  %v5509_v44 = vld [vmem:[#allocation5 + $0x424] sm:$0xf]  ;;  %v4949_v10 = vld [vmem:[#allocation5 + $0x4a8] sm:$0xf0]  ;;  %v3963_v29 = vpop.f32.mrf.mxu2  ;;  %v5357_v41 = vld [vmem:[#allocation5 + $0x7d8] sm:$0xf0] }
 0x259   :  { %4116 = vmatmul.bf16.vlgmr.msrb.gmra.mxu2 %v7401_v51  ;;  %4129 = vmatmul.bf16.vlgmr.msrb.gmra.mxu3 %v7403_v47  ;;  %v4888_v49 = vor.u32 %v5509_v44, %v4885_v58  ;;  %v4941_v51 = vld [vmem:[#allocation5 + $0x498] sm:$0xf0]  ;;  %v5597_v44 = vld [vmem:[#allocation5 + $0x6e4] sm:$0xf]  ;;  %v5376_v58 = vor.u32 %v5631_v54, %v5373_v63  ;;  %v7408_v45 = vld [vmem:[#allocation30_spill] sm:$0xff] }
 0x25a   :  { %v5591_v29 = vld [vmem:[#allocation5 + $0x6b4] sm:$0xf]  ;;  %v5277_v63 = vld [vmem:[#allocation5 + $0x738] sm:$0xf0] }
 0x25b   :  { %4135 = vmatpush.bf16.msra.mxu0 %v4920_v43  ;;  %4148 = vmatpush.bf16.msra.mxu1 %v4984_v40  ;;  %v4952_v43 = vor.u32 %v5525_v21, %v4949_v10  ;;  %v5016_v40 = vor.u32 %v5541_v31, %v5013_v13  ;;  %v5237_v21 = vld [vmem:[#allocation5 + $0x6e8] sm:$0xf0]  ;;  %v5629_v31 = vld [vmem:[#allocation5 + $0x7e4] sm:$0xf]  ;;  %v5607_v54 = vld [vmem:[#allocation5 + $0x734] sm:$0xf] }
 0x25c   :  { %4161 = vmatpush.bf16.msra.mxu2 %v5048_v62  ;;  %4174 = vmatpush.bf16.msra.mxu3 %v5112_v48  ;;  %v5507_v62 = vld [vmem:[#allocation5 + $0x414] sm:$0xf]  ;;  %v5080_v48 = vor.u32 %v5557_v16, %v5077_v25  ;;  %v3950_v47 = vpop.f32.mrf.mxu1  ;;  %v5301_v10 = vld [vmem:[#allocation5 + $0x768] sm:$0xf0]  ;;  %v5240_v25 = vor.u32 %v5597_v44, %v5237_v21  ;;  %v5573_v44 = vld [vmem:[#allocation5 + $0x624] sm:$0xf] }
 0x25d   :  { %v4880_v17 = vor.u32 %v5507_v62, %v4877_v11  ;;  %v5365_v13 = vld [vmem:[#allocation5 + $0x7e8] sm:$0xf0]  ;;  %v5595_v62 = vld [vmem:[#allocation5 + $0x6d4] sm:$0xf]  ;;  %v7211_v11 = vpop.f32.mrf.mxu0  ;;  %v5589_v21 = vld [vmem:[#allocation5 + $0x6a4] sm:$0xf] }
 0x25e   :  { %v5368_v4 = vor.u32 %v5629_v31, %v5365_v13  ;;  %v5605_v31 = vld [vmem:[#allocation5 + $0x724] sm:$0xf]  ;;  %v5269_v13 = vld [vmem:[#allocation5 + $0x728] sm:$0xf0] }
 0x25f   :  { %4136 = vmatpush.bf16.msra.mxu0 %v4912_v24  ;;  %4149 = vmatpush.bf16.msra.mxu1 %v4976_v53  ;;  %v4944_v24 = vor.u32 %v5523_v2, %v4941_v51  ;;  %v5521_v53 = vld [vmem:[#allocation5 + $0x484] sm:$0xf]  ;;  %v7405_v2 = vld [vmem:[#allocation26_spill] sm:$0xff] }
 0x260   :  { %4162 = vmatpush.bf16.msra.mxu2 %v5040_v37  ;;  %4175 = vmatpush.bf16.msra.mxu3 %v5104_v8  ;;  %v4933_v37 = vld [vmem:[#allocation5 + $0x488] sm:$0xf0]  ;;  %v5553_v8 = vld [vmem:[#allocation5 + $0x584] sm:$0xf]  ;;  %v5611_v51 = vld [vmem:[#allocation5 + $0x754] sm:$0xf] }
 0x261   :  { %v4936_v55 = vor.u32 %v5521_v53, %v4933_v37  ;;  %v5064_v39 = vor.u32 %v5553_v8, %v5061_v30  ;;  %v5577_v53 = vld [vmem:[#allocation5 + $0x644] sm:$0xf]  ;;  %v5157_v37 = vld [vmem:[#allocation5 + $0x648] sm:$0xf0] }
 0x262   :  { %v5609_v8 = vld [vmem:[#allocation5 + $0x744] sm:$0xf]  ;;  %v5285_v30 = vld [vmem:[#allocation5 + $0x748] sm:$0xf0] }
 0x263   :  { %4137 = vmatpush.bf16.msra.mxu0 %v4904_v28  ;;  %4150 = vmatpush.bf16.msra.mxu1 %v4968_v52  ;;  %v5245_v28 = vld [vmem:[#allocation5 + $0x6f8] sm:$0xf0]  ;;  %v5615_v52 = vld [vmem:[#allocation5 + $0x774] sm:$0xf] }
 0x264   :  { %4163 = vmatpush.bf16.msra.mxu2 %v5032_v50  ;;  %4176 = vmatpush.bf16.msra.mxu3 %v5096_v34  ;;  %v5309_v50 = vld [vmem:[#allocation5 + $0x778] sm:$0xf0]  ;;  %v5000_v34 = vor.u32 %v5537_v6, %v4997_v14  ;;  %v5248_v32 = vor.u32 %v5599_v60, %v5245_v28  ;;  %v5593_v6 = vld [vmem:[#allocation5 + $0x6c4] sm:$0xf]  ;;  %v5221_v14 = vld [vmem:[#allocation5 + $0x6c8] sm:$0xf0]  ;;  %v5160_v60 = vor.u32 %v5577_v53, %v5157_v37 }
 0x265   :  { %v5288_v28 = vor.u32 %v5609_v8, %v5285_v30  ;;  %v3989_v38 = vpop.f32.mrf.mxu0  ;;  %v5125_v53 = vld [vmem:[#allocation5 + $0x608] sm:$0xf0]  ;;  %v5585_v37 = vld [vmem:[#allocation5 + $0x684] sm:$0xf] }
 0x266   :  { %v5253_v8 = vld [vmem:[#allocation5 + $0x708] sm:$0xf0]  ;;  %v5617_v30 = vld [vmem:[#allocation5 + $0x784] sm:$0xf] }
 0x267   :  { %4138 = vmatpush.bf16.msra.mxu0 %v4896_v0  ;;  %4151 = vmatpush.bf16.msra.mxu1 %v4960_v35  ;;  %v5312_v0 = vor.u32 %v5615_v52, %v5309_v50  ;;  %v5581_v35 = vld [vmem:[#allocation5 + $0x664] sm:$0xf]  ;;  %v5575_v52 = vld [vmem:[#allocation5 + $0x634] sm:$0xf]  ;;  %v5149_v50 = vld [vmem:[#allocation5 + $0x638] sm:$0xf0] }
 0x268   :  { %4164 = vmatpush.bf16.msra.mxu2 %v5024_v7  ;;  %4177 = vmatpush.bf16.msra.mxu3 %v5088_v12  ;;  %v5173_v7 = vld [vmem:[#allocation5 + $0x668] sm:$0xf0]  ;;  %v5613_v12 = vld [vmem:[#allocation5 + $0x764] sm:$0xf] }
 0x269   :  { %v5176_v16 = vor.u32 %v5581_v35, %v5173_v7  ;;  %v5280_v7 = vor.u32 %v5607_v54, %v5277_v63 }
 0x26b   :  { %4139 = vmatpush.bf16.msra.mxu0 %v4888_v49  ;;  %4152 = vmatpush.bf16.msra.mxu1 %v4952_v43  ;;  %v5304_v49 = vor.u32 %v5613_v12, %v5301_v10  ;;  %v5579_v43 = vld [vmem:[#allocation5 + $0x654] sm:$0xf]  ;;  %v5205_v10 = vld [vmem:[#allocation5 + $0x6a8] sm:$0xf0] }
 0x26c   :  { %4165 = vmatpush.bf16.msra.mxu2 %v5016_v40  ;;  %4178 = vmatpush.bf16.msra.mxu3 %v5080_v48  ;;  %v5165_v40 = vld [vmem:[#allocation5 + $0x658] sm:$0xf0] }
 0x26d   :  { %v5229_v48 = vld [vmem:[#allocation5 + $0x6d8] sm:$0xf0]  ;;  %v7214_v33 = vpop.f32.mrf.mxu2  ;;  %v5168_v47 = vor.u32 %v5579_v43, %v5165_v40  ;;  %v5208_v43 = vor.u32 %v5589_v21, %v5205_v10  ;;  %v5272_v40 = vor.u32 %v5605_v31, %v5269_v13 }
 0x26f   :  { %4140 = vmatpush.bf16.msra.mxu0 %v4880_v17  ;;  %4153 = vmatpush.bf16.msra.mxu1 %v4944_v24  ;;  %v5627_v17 = vld [vmem:[#allocation5 + $0x7d4] sm:$0xf]  ;;  %v5232_v24 = vor.u32 %v5595_v62, %v5229_v48 }
 0x270   :  { %4166 = vmatpush.bf16.msra.mxu2 %v5008_v5  ;;  %4179 = vmatpush.bf16.msra.mxu3 %v5072_v3  ;;  %v5296_v5 = vor.u32 %v5611_v51, %v5293_v59  ;;  %v5360_v3 = vor.u32 %v5627_v17, %v5357_v41  ;;  %v5571_v62 = vld [vmem:[#allocation5 + $0x614] sm:$0xf]  ;;  %v5197_v51 = vld [vmem:[#allocation5 + $0x698] sm:$0xf0] }
 0x271   :  { %v5603_v59 = vld [vmem:[#allocation5 + $0x714] sm:$0xf]  ;;  %v5325_v41 = vld [vmem:[#allocation5 + $0x798] sm:$0xf0] }
 0x272   :  { %v5619_v17 = vld [vmem:[#allocation5 + $0x794] sm:$0xf] }
 0x273   :  { %4141 = vmatpush.bf16.msra.mxu0 %v4872_v57  ;;  %4154 = vmatpush.bf16.msra.mxu1 %v4936_v55  ;;  %v5224_v57 = vor.u32 %v5593_v6, %v5221_v14  ;;  %v5352_v55 = vor.u32 %v5625_v61, %v5349_v15  ;;  %v5328_v6 = vor.u32 %v5619_v17, %v5325_v41  ;;  %v5601_v14 = vld [vmem:[#allocation5 + $0x704] sm:$0xf]  ;;  %v5317_v61 = vld [vmem:[#allocation5 + $0x788] sm:$0xf0] }
 0x274   :  { %4167 = vmatpush.bf16.msra.mxu2 %v5000_v34  ;;  %4180 = vmatpush.bf16.msra.mxu3 %v5064_v39  ;;  %v5213_v34 = vld [vmem:[#allocation5 + $0x6b8] sm:$0xf0] }
 0x275   :  { %v4015_v39 = vpop.f32.mrf.mxu2  ;;  %v5216_v35 = vor.u32 %v5591_v29, %v5213_v34 }
 0x276   :  { %4142 = vmatmul.bf16.vlgmr.msra.gmra.mxu0 %v7405_v2  ;;  %4155 = vmatmul.bf16.vlgmr.msra.gmra.mxu1 %v7407_v20  ;;  %v5133_v2 = vld [vmem:[#allocation5 + $0x618] sm:$0xf0] }
 0x277   :  { %4186 = vmatpush.bf16.msrb.mxu0 %v5184_v56  ;;  %4199 = vmatpush.bf16.msrb.mxu1 %v5248_v32  ;;  %v5623_v56 = vld [vmem:[#allocation5 + $0x7b4] sm:$0xf]  ;;  %v5341_v32 = vld [vmem:[#allocation5 + $0x7b8] sm:$0xf0] }
 0x278   :  { %4212 = vmatpush.bf16.msrb.mxu2 %v5312_v0  ;;  %4225 = vmatpush.bf16.msrb.mxu3 %v5376_v58  ;;  %v5152_v0 = vor.u32 %v5575_v52, %v5149_v50  ;;  %v5141_v58 = vld [vmem:[#allocation5 + $0x628] sm:$0xf0]  ;;  %v5344_v12 = vor.u32 %v5623_v56, %v5341_v32  ;;  %v3936_v50 = vadd.f32 %v7203_v46, %v7197_v26 }
 0x279   :  { %4168 = vmatmul.bf16.vlgmr.msra.gmra.mxu2 %v7406_v42  ;;  %4181 = vmatmul.bf16.vlgmr.msra.gmra.mxu3 %v7408_v45  ;;  %v5261_v42 = vld [vmem:[#allocation5 + $0x718] sm:$0xf0]  ;;  %v5136_v45 = vor.u32 %v5571_v62, %v5133_v2 }
 0x27a   :  { %v3949_v29 = vadd.f32 %v7205_v23, %v3936_v50 }
 0x27b   :  { %4187 = vmatpush.bf16.msrb.mxu0 %v5176_v16  ;;  %4200 = vmatpush.bf16.msrb.mxu1 %v5240_v25  ;;  %v5621_v16 = vld [vmem:[#allocation5 + $0x7a4] sm:$0xf]  ;;  %v5333_v25 = vld [vmem:[#allocation5 + $0x7a8] sm:$0xf0] }
 0x27c   :  { %4213 = vmatpush.bf16.msrb.mxu2 %v5304_v49  ;;  %4226 = vmatpush.bf16.msrb.mxu3 %v5368_v4  ;;  %v5144_v49 = vor.u32 %v5573_v44, %v5141_v58  ;;  %v5587_v4 = vld [vmem:[#allocation5 + $0x694] sm:$0xf]  ;;  %v5336_v48 = vor.u32 %v5621_v16, %v5333_v25  ;;  %v3962_v38 = vadd.f32 %v7207_v27, %v3949_v29  ;;  %v2137_v58 = vperm.slane %v7190_v18, 4 }
 0x27e   :  { %v3975_v34 = vadd.f32 %v7209_v19, %v3962_v38 }
 0x27f   :  { %4188 = vmatpush.bf16.msrb.mxu0 %v5168_v47  ;;  %4201 = vmatpush.bf16.msrb.mxu1 %v5232_v24  ;;  %v5200_v47 = vor.u32 %v5587_v4, %v5197_v51  ;;  %v5264_v24 = vor.u32 %v5603_v59, %v5261_v42 }
 0x280   :  { %4214 = vmatpush.bf16.msrb.mxu2 %v5296_v5  ;;  %4227 = vmatpush.bf16.msrb.mxu3 %v5360_v3  ;;  %v5569_v5 = vld [vmem:[#allocation5 + $0x604] sm:$0xf]  ;;  %v5189_v3 = vld [vmem:[#allocation5 + $0x688] sm:$0xf0]  ;;  %v3988_v54 = vadd.f32 %v7211_v11, %v3975_v34 }
 0x281   :  { %v5128_v15 = vor.u32 %v5569_v5, %v5125_v53 }
 0x283   :  { %4189 = vmatpush.bf16.msrb.mxu0 %v5160_v60  ;;  %4202 = vmatpush.bf16.msrb.mxu1 %v5224_v57  ;;  %v4000_v20 = vpop.f32.mrf.mxu1  ;;  %v5192_v60 = vor.u32 %v5585_v37, %v5189_v3  ;;  %v5256_v57 = vor.u32 %v5601_v14, %v5253_v8  ;;  %v4301_v14 = vperm.slane %v7190_v18, 1 }
 0x284   :  { %4215 = vmatpush.bf16.msrb.mxu2 %v5288_v28  ;;  %4228 = vmatpush.bf16.msrb.mxu3 %v5352_v55  ;;  %v5320_v28 = vor.u32 %v5617_v30, %v5317_v61  ;;  %v5785_v55 = vmov 8.0   ;;  %v4001_v26 = vadd.f32 %v4000_v20, %v3988_v54  ;;  %v4309_v61 = vperm.slane %v7190_v18, 2 }
 0x285   :  { %5643 = vrcp.f32 %v5785_v55 }
 0x286   :  { %v4313_v38 = vperm.slane %v4309_v61, 2 }
 0x287   :  { %4190 = vmatpush.bf16.msrb.mxu0 %v5152_v0  ;;  %4203 = vmatpush.bf16.msrb.mxu1 %v5216_v35 }
 0x288   :  { %4216 = vmatpush.bf16.msrb.mxu2 %v5280_v7  ;;  %4229 = vmatpush.bf16.msrb.mxu3 %v5344_v12  ;;  %v2141_v12 = vperm.slane %v2137_v58, 0 }
 0x28b   :  { %4191 = vmatpush.bf16.msrb.mxu0 %v5144_v49  ;;  %4204 = vmatpush.bf16.msrb.mxu1 %v5208_v43  ;;  %v4002_v52 = vpop.f32.mrf.mxu1  ;;  %v5644_v63 = vpop.eup %5643 }
 0x28c   :  { %4217 = vmatpush.bf16.msrb.mxu2 %v5272_v40  ;;  %4230 = vmatpush.bf16.msrb.mxu3 %v5336_v48  ;;  %v4251_v46 = vmul.f32 8.0, %v5644_v63  ;;  %vm4255_vm7 = vweird.f32 %v5644_v63 }
 0x28e   :  { %v4252_v39 = vsub.f32 1.0, %v4251_v46 }
 0x28f   :  { %4192 = vmatpush.bf16.msrb.mxu0 %v5136_v45  ;;  %4205 = vmatpush.bf16.msrb.mxu1 %v5200_v47 }
 0x290   :  { %4218 = vmatpush.bf16.msrb.mxu2 %v5264_v24  ;;  %4231 = vmatpush.bf16.msrb.mxu3 %v5328_v6 }
 0x293   :  { %4193 = vmatpush.bf16.msrb.mxu0 %v5128_v15  ;;  %4206 = vmatpush.bf16.msrb.mxu1 %v5192_v60 }
 0x294   :  { %4219 = vmatpush.bf16.msrb.mxu2 %v5256_v57  ;;  %4232 = vmatpush.bf16.msrb.mxu3 %v5320_v28  ;;  %v4305_v57 = vperm.slane %v4301_v14, 1 }
 0x296   :  { %4194 = vmatmul.bf16.vlgmr.msrb.gmra.mxu0 %v7104_v22  ;;  %4207 = vmatmul.bf16.vlgmr.msrb.gmra.mxu1 %v7170_v36  ;;  %v4014_v22 = vadd.f32 %v7214_v33, %v4001_v26 }
 0x297   :  { %4220 = vmatmul.bf16.vlgmr.msrb.gmra.mxu2 %v7137_v9  ;;  %4233 = vmatmul.bf16.vlgmr.msrb.gmra.mxu3 %v7187_v1  ;;  %v4253_v1 = vmul.f32 %v5644_v63, %v4252_v39 }
 0x299   :  { %v4254_v0 = vadd.f32 %v5644_v63, %v4253_v1 }
 0x29b   :  { %v7230_v19 = vsel %vm4255_vm7, %v5644_v63, %v4254_v0 }
 0x2a4   :  { %v4026_v36 = vpop.f32.mrf.mxu3 }
 0x2a5   :  { %v4027_v9 = vadd.f32 %v4026_v36, %v4014_v22 }
 0x2a7   :  { %v4238_v56 = vrot.slane %v4027_v9, 4 }
 0x2a9   :  { %v4239_v32 = vadd.f32 %v4238_v56, %v4027_v9 }
 0x2ab   :  { %v4240_v23 = vrot.slane %v4239_v32, 2 }
 0x2ac   :  { %v4028_v27 = vpop.f32.mrf.mxu3 }
 0x2ad   :  { %v4241_v35 = vadd.f32 %v4240_v23, %v4239_v32 }
 0x2af   :  { %v4242_v7 = vrot.slane %v4241_v35, 1 }
 0x2b1   :  { %v4243_v11 = vadd.f32 %v4242_v7, %v4241_v35 }
 0x2b3   :  { %v4257_v44 = vmul.f32 %v7230_v19, %v4243_v11  ;;  %v4039_v33 = vpop.f32.mrf.mxu0  ;;  %v4052_v10 = vpop.f32.mrf.mxu1 }
 0x2b4   :  { %v4040_v13 = vadd.f32 %v4039_v33, %v2141_v12 }
 0x2b5   :  { %v4259_v21 = vsub.f32 %v4027_v9, %v4257_v44 }
 0x2b6   :  { %v4053_v25 = vadd.f32 %v4052_v10, %v4040_v13 }
 0x2b7   :  { %v4261_v31 = vmul.f32 %v4259_v21, %v4259_v21 }
 0x2b9   :  { %v4263_v16 = vrot.slane %v4261_v31, 4 }
 0x2bb   :  { %v4264_v40 = vadd.f32 %v4263_v16, %v4261_v31  ;;  %v4041_v2 = vpop.f32.mrf.mxu0  ;;  %v4054_v51 = vpop.f32.mrf.mxu1 }
 0x2bc   :  { %v4065_v49 = vpop.f32.mrf.mxu2  ;;  %v4078_v43 = vpop.f32.mrf.mxu3 }
 0x2bd   :  { %v4066_v62 = vadd.f32 %v4065_v49, %v4053_v25  ;;  %v4265_v4 = vrot.slane %v4264_v40, 2 }
 0x2bf   :  { %v4079_v48 = vadd.f32 %v4078_v43, %v4066_v62  ;;  %v4266_v59 = vadd.f32 %v4265_v4, %v4264_v40 }
 0x2c1   :  { %v4267_v42 = vrot.slane %v4266_v59, 1 }
 0x2c3   :  { %v4268_v41 = vadd.f32 %v4267_v42, %v4266_v59 }
 0x2c4   :  { %v4067_v20 = vpop.f32.mrf.mxu2  ;;  %v4080_v17 = vpop.f32.mrf.mxu3 }
 0x2c5   :  { %v4275_v45 = vmul.f32 %v4268_v41, %v7230_v19 }
 0x2c7   :  { %v4277_v47 = vadd.f32 1e-05, %v4275_v45 }
 0x2c9   :  { %5645 = vrsqrt.f32 %v4277_v47  ;;  %vm4285_vm9 = vweird.f32 %v4277_v47 }
 0x2cf   :  { %v5646_v24 = vpop.eup %5645 }
 0x2d0   :  { %v4280_v5 = vmul.f32 %v5646_v24, %v4277_v47  ;;  %vm4286_vm8 = vweird.f32 %v5646_v24 }
 0x2d1   :  { %vm4287_vm10 = vmor %vm4285_vm9, %vm4286_vm8 }
 0x2d2   :  { %v4281_v53 = vmul.f32 %v5646_v24, %v4280_v5 }
 0x2d3   :  { %v4091_v37 = vpop.f32.mrf.mxu0  ;;  %v4104_v6 = vpop.f32.mrf.mxu1 }
 0x2d4   :  { %v4282_v3 = vmul.f32 0.5, %v4281_v53  ;;  %v4092_v22 = vadd.f32 %v4091_v37, %v4079_v48 }
 0x2d6   :  { %v4283_v8 = vsub.f32 1.5, %v4282_v3  ;;  %v4105_v9 = vadd.f32 %v4104_v6, %v4092_v22 }
 0x2d8   :  { %v4284_v15 = vmul.f32 %v5646_v24, %v4283_v8 }
 0x2da   :  { %v4288_v28 = vsel %vm4287_vm10, %v5646_v24, %v4284_v15 }
 0x2db   :  { %v4093_v52 = vpop.f32.mrf.mxu0  ;;  %v4299_v50 = vmul.f32 %v4288_v28, %v4259_v21  ;;  %v4106_v29 = vpop.f32.mrf.mxu1 }
 0x2dc   :  { %v4117_v30 = vpop.f32.mrf.mxu2  ;;  %v4130_v60 = vpop.f32.mrf.mxu3 }
 0x2dd   :  { %v4307_v55 = vmul.f32 %v4305_v57, %v4299_v50  ;;  %v4118_v1 = vadd.f32 %v4117_v30, %v4105_v9  ;;  %v5649_v30 = vld [vmem:[#allocation7] sm:$0x77] }
 0x2de   :  { %v4302_v61 = vperm.slane %v5649_v30, 5 }
 0x2df   :  { %v4315_v54 = vadd.f32 %v4313_v38, %v4307_v55  ;;  %v4131_v0 = vadd.f32 %v4130_v60, %v4118_v1  ;;  %v4310_v60 = vperm.slane %v5649_v30, 6 }
 0x2e0   :  { %v4306_v28 = vperm.slane %v4302_v61, 1 }
 0x2e1   :  { %4317 = vst [vmem:[#allocation8] sm:$0xff] %v4315_v54  ;;  %v4314_v29 = vperm.slane %v4310_v60, 2 }
 0x2e4   :  { %v4119_v34 = vpop.f32.mrf.mxu2  ;;  %v4132_v63 = vpop.f32.mrf.mxu3 }
 0x2f3   :  { %v4143_v26 = vpop.f32.mrf.mxu0  ;;  %v4156_v46 = vpop.f32.mrf.mxu1 }
 0x2f4   :  { %v4144_v27 = vadd.f32 %v4143_v26, %v4131_v0 }
 0x2f6   :  { %v4157_v35 = vadd.f32 %v4156_v46, %v4144_v27 }
 0x2fb   :  { %v4145_v39 = vpop.f32.mrf.mxu0  ;;  %v4158_v56 = vpop.f32.mrf.mxu1 }
 0x2fc   :  { %v4169_v18 = vpop.f32.mrf.mxu2  ;;  %v4182_v36 = vpop.f32.mrf.mxu3 }
 0x2fd   :  { %v4170_v7 = vadd.f32 %v4169_v18, %v4157_v35 }
 0x2ff   :  { %v4183_v11 = vadd.f32 %v4182_v36, %v4170_v7 }
 0x304   :  { %v4171_v32 = vpop.f32.mrf.mxu2  ;;  %v4184_v23 = vpop.f32.mrf.mxu3 }
 0x313   :  { %v4195_v44 = vpop.f32.mrf.mxu0  ;;  %v4208_v58 = vpop.f32.mrf.mxu1 }
 0x314   :  { %v4196_v33 = vadd.f32 %v4195_v44, %v4183_v11 }
 0x316   :  { %v4209_v21 = vadd.f32 %v4208_v58, %v4196_v33 }
 0x31a   :  { %v4221_v12 = vpop.f32.mrf.mxu2  ;;  %v4234_v31 = vpop.f32.mrf.mxu3 }
 0x31b   :  { %v4222_v10 = vadd.f32 %v4221_v12, %v4209_v21  ;;  %v4197_v13 = vpop.f32.mrf.mxu0  ;;  %v4210_v16 = vpop.f32.mrf.mxu1 }
 0x31d   :  { %v4235_v25 = vadd.f32 %v4234_v31, %v4222_v10 }
 0x31f   :  { %v4244_v49 = vrot.slane %v4235_v25, 4 }
 0x321   :  { %v4245_v43 = vadd.f32 %v4244_v49, %v4235_v25 }
 0x322   :  { %v4223_v40 = vpop.f32.mrf.mxu2  ;;  %v4236_v2 = vpop.f32.mrf.mxu3 }
 0x323   :  { %v4246_v62 = vrot.slane %v4245_v43, 2 }
 0x325   :  { %v4247_v4 = vadd.f32 %v4246_v62, %v4245_v43 }
 0x327   :  { %v4248_v48 = vrot.slane %v4247_v4, 1 }
 0x329   :  { %v4249_v51 = vadd.f32 %v4248_v48, %v4247_v4 }
 0x32b   :  { %v4258_v59 = vmul.f32 %v7230_v19, %v4249_v51 }
 0x32d   :  { %v4260_v42 = vsub.f32 %v4235_v25, %v4258_v59 }
 0x32f   :  { %v4262_v20 = vmul.f32 %v4260_v42, %v4260_v42 }
 0x331   :  { %v4269_v17 = vrot.slane %v4262_v20, 4 }
 0x333   :  { %v4270_v41 = vadd.f32 %v4269_v17, %v4262_v20 }
 0x335   :  { %v4271_v45 = vrot.slane %v4270_v41, 2 }
 0x337   :  { %v4272_v47 = vadd.f32 %v4271_v45, %v4270_v41 }
 0x339   :  { %v4273_v24 = vrot.slane %v4272_v47, 1 }
 0x33b   :  { %v4274_v5 = vadd.f32 %v4273_v24, %v4272_v47 }
 0x33d   :  { %v4276_v53 = vmul.f32 %v4274_v5, %v7230_v19 }
 0x33f   :  { %v4278_v37 = vadd.f32 1e-05, %v4276_v53 }
 0x341   :  { %5647 = vrsqrt.f32 %v4278_v37  ;;  %vm4295_vm12 = vweird.f32 %v4278_v37 }
 0x347   :  { %v5648_v6 = vpop.eup %5647 }
 0x348   :  { %v4290_v3 = vmul.f32 %v5648_v6, %v4278_v37  ;;  %vm4296_vm11 = vweird.f32 %v5648_v6 }
 0x349   :  { %vm4297_vm13 = vmor %vm4295_vm12, %vm4296_vm11 }
 0x34a   :  { %v4291_v14 = vmul.f32 %v5648_v6, %v4290_v3 }
 0x34c   :  { %v4292_v8 = vmul.f32 0.5, %v4291_v14 }
 0x34e   :  { %v4293_v15 = vsub.f32 1.5, %v4292_v8 }
 0x350   :  { %v4294_v57 = vmul.f32 %v5648_v6, %v4293_v15 }
 0x352   :  { %v4298_v52 = vsel %vm4297_vm13, %v5648_v6, %v4294_v57 }
 0x353   :  { %v4300_v50 = vmul.f32 %v4298_v52, %v4260_v42 }
 0x355   :  { %v4308_v19 = vmul.f32 %v4306_v28, %v4300_v50 }
 0x357   :  { %v4316_v38 = vadd.f32 %v4314_v29, %v4308_v19 }
 0x359   :  { %4318 = vst [vmem:[#allocation8 + $0x8] sm:$0xff] %v4316_v38 }
 0x35a   :  { %4329 = dma.vmem_to_hbm [thread:$0]  %s4325_s10, 256, %s4327_s13, [#allocation4]  }
 0x35b   :  { %5774 = dma.done.wait [#allocation4], 256  }
 0x35c   :  { %5775 = vsyncadd [#allocation4], 4294967040 }
 0x35d   :  { %5776 = dma.done.wait [#allocation10], 2048  }
 0x35e   :  { %5777 = vsyncadd [#allocation10], 4294965248 }
 0x35f   :  { %4349 = vsyncpa [#allocation3], 1 }
 0x360   :  { %4350 = vsyncpa [#allocation6], 1 }
 0x361   :  { %4351 = vsyncpa [#allocation4], 1 }
 0x362   :  { %4352 = vsyncpa [#allocation10], 1 }

</bundles_post_ra>
